<compile_context>
chip_gen: v7x
topology: tpu7x:2x2x1
jax: 0.10.0
libtpu: 0.0.40
codegen_flags: <defaults>
</compile_context>

<pallas_src>
import functools
import math

import numpy as np

import jax
import jax.numpy as jnp
from jax.experimental import pallas as pl
from jax.experimental.pallas import tpu as pltpu

EPS = 1e-7

# Target frames per grid step: >=256 rows for pipeline efficiency, small enough that
# 2 inputs x 2 pipeline buffers + the constant DFT basis fit v7x's 64 MiB VMEM at n_fft=2048.
_T_TILE_TARGET = 256
_LANE = 128
_SUBLANE = 8


def _round_up(x, m):
    return ((x + m - 1) // m) * m


# ------------------------------------------------------------------ numpy-side constants
def _hann_periodic(n):
    k = np.arange(n)
    return 0.5 - 0.5 * np.cos(2.0 * np.pi * k / n)


def _dft_basis_padded(n_fft):
    """Windowed one-sided real-DFT basis, [cos | sin] concatenated on the lane axis.

    Each half is zero-padded from n_freq = n_fft//2+1 up to a multiple of 128 lanes so the
    in-kernel re/im split is tile-aligned (free).  The zero columns contribute exactly 0 to
    every reduction (power 0, diff 0, log-ratio log(eps/eps) = 0), so results are exact.
    """
    n_freq = n_fft // 2 + 1
    n_freq_pad = _round_up(n_freq, _LANE)
    k = np.arange(n_fft)[:, None].astype(np.float64)
    f = np.arange(n_freq)[None, :].astype(np.float64)
    ang = 2.0 * np.pi * k * f / n_fft
    win = _hann_periodic(n_fft)[:, None]
    basis = np.zeros((n_fft, 2 * n_freq_pad), dtype=np.float32)
    basis[:, :n_freq] = win * np.cos(ang)
    basis[:, n_freq_pad:n_freq_pad + n_freq] = -win * np.sin(ang)
    # TODO(synk): optionally store the basis in bf16 (halves VMEM/HBM cost) once the loss
    # tolerance vs. the f32 reference is validated.
    return jnp.asarray(basis), n_freq, n_freq_pad


def _hz_to_mel_slaney(hz):
    hz = np.asarray(hz, dtype=np.float64)
    f_sp = 200.0 / 3.0
    mels = hz / f_sp
    min_log_hz = 1000.0
    min_log_mel = min_log_hz / f_sp
    logstep = math.log(6.4) / 27.0
    mels = np.where(
        hz >= min_log_hz,
        min_log_mel + np.log(np.maximum(hz, min_log_hz) / min_log_hz) / logstep,
        mels,
    )
    return mels


def _mel_to_hz_slaney(mels):
    mels = np.asarray(mels, dtype=np.float64)
    f_sp = 200.0 / 3.0
    hz = mels * f_sp
    min_log_hz = 1000.0
    min_log_mel = min_log_hz / f_sp
    logstep = math.log(6.4) / 27.0
    hz = np.where(
        mels >= min_log_mel,
        min_log_hz * np.exp(logstep * (mels - min_log_mel)),
        hz,
    )
    return hz


def _mel_filterbank_np(n_freqs, f_min, f_max, n_mels, sample_rate):
    """torchaudio-style slaney-scale mel filterbank, norm=None.  Shape (n_freqs, n_mels)."""
    all_freqs = np.linspace(0.0, sample_rate / 2.0, n_freqs)
    m_pts = np.linspace(_hz_to_mel_slaney(f_min), _hz_to_mel_slaney(f_max), n_mels + 2)
    f_pts = _mel_to_hz_slaney(m_pts)
    f_diff = f_pts[1:] - f_pts[:-1]                  # (n_mels+1,)
    slopes = f_pts[None, :] - all_freqs[:, None]     # (n_freqs, n_mels+2)
    down = -slopes[:, :-2] / f_diff[:-1]
    up = slopes[:, 2:] / f_diff[1:]
    fb = np.maximum(0.0, np.minimum(down, up))
    return fb.astype(np.float32)


def _mel_filterbank_padded(n_freq, n_freq_pad, f_min, f_max, n_mels, sample_rate):
    fb = _mel_filterbank_np(n_freq, f_min, f_max, n_mels, sample_rate)
    fbp = np.zeros((n_freq_pad, n_mels), dtype=np.float32)
    fbp[:n_freq] = fb
    return jnp.asarray(fbp)


# ------------------------------------------------------------------ framing (wrapper side)
def _frame_signal(x, n_fft, hop):
    """torch.stft(center=True, pad_mode='reflect') framing. x: (B, L) -> (B*n_frames, n_fft)."""
    assert x.shape[1] > n_fft // 2, "signal too short for reflect padding"
    pad = n_fft // 2
    xp = jnp.pad(x, ((0, 0), (pad, pad)), mode="reflect")
    lp = xp.shape[1]
    n_frames = 1 + (lp - n_fft) // hop
    idx = jnp.arange(n_frames)[:, None] * hop + jnp.arange(n_fft)[None, :]
    frames = xp[:, idx]                              # (B, n_frames, n_fft)
    # TODO(synk): construct frames in-kernel from the padded signal to avoid this 4x
    # (overlap=0.75) duplication through HBM.
    return frames.reshape(-1, n_fft)


# ------------------------------------------------------------------ Pallas kernels
def _sss_kernel(ft_ref, fp_ref, basis_ref, out_ref, *, n_freq_pad, eps):
    """One frame-tile of the single-scale spectral-loss partial sums.

    out_ref (SMEM, resident accumulator across the grid):
      [0] sum (S_t - S_p)^2   [1] sum S_t^2   [2] sum |log(S_t+eps) - log(S_p+eps)|
    """
    @pl.when(pl.program_id(0) == 0)
    def _init():
        for i in range(3):
            out_ref[i] = jnp.float32(0.0)

    tt = ft_ref.shape[0]
    # Stack [true; pred] frames -> a single MXU matmul against the [cos | sin] basis.
    lhs = jnp.concatenate([ft_ref[...], fp_ref[...]], axis=0)              # (2*Tt, n_fft)
    proj = jnp.dot(lhs, basis_ref[...], preferred_element_type=jnp.float32)
    power = proj[:, :n_freq_pad] ** 2 + proj[:, n_freq_pad:] ** 2          # (2*Tt, n_freq_pad)
    st = power[:tt]
    sp = power[tt:]

    d = st - sp
    out_ref[0] += jnp.sum(d * d)
    out_ref[1] += jnp.sum(st * st)
    # log(a+eps) - log(b+eps) == log((a+eps)/(b+eps)): one EUP log instead of two.
    out_ref[2] += jnp.sum(jnp.abs(jnp.log((st + eps) / (sp + eps))))


def _sss_mel_kernel(ft_ref, fp_ref, basis_ref, mel_ref, out_ref, *, n_freq_pad, eps):
    """Fused SSS + mel partial sums for the scale that shares its STFT with the mel loss.

    out_ref: [0..2] as in _sss_kernel, [3..5] the analogous mel-spectrogram sums (log2).
    """
    @pl.when(pl.program_id(0) == 0)
    def _init():
        for i in range(6):
            out_ref[i] = jnp.float32(0.0)

    tt = ft_ref.shape[0]
    lhs = jnp.concatenate([ft_ref[...], fp_ref[...]], axis=0)              # (2*Tt, n_fft)
    proj = jnp.dot(lhs, basis_ref[...], preferred_element_type=jnp.float32)
    power = proj[:, :n_freq_pad] ** 2 + proj[:, n_freq_pad:] ** 2          # (2*Tt, n_freq_pad)
    st = power[:tt]
    sp = power[tt:]

    d = st - sp
    out_ref[0] += jnp.sum(d * d)
    out_ref[1] += jnp.sum(st * st)
    out_ref[2] += jnp.sum(jnp.abs(jnp.log((st + eps) / (sp + eps))))

    # Mel projection reuses the stacked power spectrograms (one extra MXU matmul).
    melp = jnp.dot(power, mel_ref[...], preferred_element_type=jnp.float32)  # (2*Tt, n_mels)
    mt = melp[:tt]
    mp = melp[tt:]
    dm = mt - mp
    out_ref[3] += jnp.sum(dm * dm)
    out_ref[4] += jnp.sum(mt * mt)
    out_ref[5] += jnp.sum(jnp.abs(jnp.log2((mt + eps) / (mp + eps))))      # MelLoss uses log2


# ------------------------------------------------------------------ pallas_call wrapper
def _spectral_sums(kernel_body, ft, fp, basis, melfb, *, n_freq_pad, eps):
    """Tile the frame axis, run the reduction kernel over a 1-D grid, return the sums."""
    t_real, n_fft = ft.shape

    # Balanced tiling of the frame axis: tiles <= ~_T_TILE_TARGET rows, minimal padding.
    t8 = _round_up(max(t_real, _SUBLANE), _SUBLANE)
    num_tiles = -(-t8 // _T_TILE_TARGET)
    t_tile = _round_up(-(-t_real // num_tiles), _SUBLANE)
    t_pad = t_tile * num_tiles
    if t_pad != t_real:
        # Zero frames produce zero power rows and contribute exactly 0 to every sum.
        ft = jnp.pad(ft, ((0, t_pad - t_real), (0, 0)))
        fp = jnp.pad(fp, ((0, t_pad - t_real), (0, 0)))

    frame_spec = pl.BlockSpec((t_tile, n_fft), lambda i: (i, 0))
    in_specs = [frame_spec, frame_spec,
                pl.BlockSpec(basis.shape, lambda i: (0, 0))]      # constant across the grid
    args = [ft, fp, basis]
    n_out = 3
    n_mels = 0
    if melfb is not None:
        in_specs.append(pl.BlockSpec(melfb.shape, lambda i: (0, 0)))
        args.append(melfb)
        n_out = 6
        n_mels = melfb.shape[1]

    kern = functools.partial(kernel_body, n_freq_pad=n_freq_pad, eps=eps)

    # Advisory cost model for XLA scheduling around the custom call.
    flops = (2 * (2 * t_pad) * n_fft * (2 * n_freq_pad)
             + 2 * (2 * t_pad) * n_freq_pad * n_mels)
    transcendentals = 2 * t_pad * (n_freq_pad + n_mels)
    bytes_accessed = 4 * (2 * t_pad * n_fft + basis.size
                          + (melfb.size if melfb is not None else 0) + n_out)

    # Explicit VMEM budget: double-buffered frame tiles + constant bases + intermediates,
    # clamped so it is safe on v5e/v6e (128 MiB) and v7x (64 MiB).
    vmem_need = 4 * (2 * 2 * t_tile * n_fft
                     + basis.size + (melfb.size if melfb is not None else 0)
                     + 8 * 2 * t_tile * n_freq_pad)
    vmem_limit = int(min(max(vmem_need + (2 << 20), 32 << 20), 48 << 20))

    return pl.pallas_call(
        kern,
        out_shape=jax.ShapeDtypeStruct((n_out,), jnp.float32),
        grid=(num_tiles,),
        in_specs=in_specs,
        # Resident SMEM accumulator (same block every grid step -> "arbitrary" semantics).
        out_specs=pl.BlockSpec(memory_space=pltpu.MemorySpace.SMEM),
        compiler_params=pltpu.CompilerParams(
            dimension_semantics=("arbitrary",),
            vmem_limit_bytes=vmem_limit),
        cost_estimate=pl.CostEstimate(
            flops=int(flops),
            transcendentals=int(transcendentals),
            bytes_accessed=int(bytes_accessed)),
    )(*args)


# ------------------------------------------------------------------ loss composition
def hybrid_loss(y_pred, y_true, *, n_ffts, sample_rate, win_length, block_size,
                n_mels, mel_fmin=0.0, mel_fmax=None, alpha=1.0, ratio=1.0,
                overlap=0.75, eps=EPS):
    if mel_fmax is None:
        mel_fmax = sample_rate / 2.0

    # MSSLoss: trim pred to true length, then each scale aligns both on min_len.
    y_pred_t = y_pred[..., : y_true.shape[-1]]
    min_len = min(y_true.shape[1], y_pred_t.shape[1])
    xt = y_true[:, -min_len:]
    xp = y_pred_t[:, -min_len:]

    # Fuse the mel loss with the MSS scale that shares its exact STFT (same n_fft, same
    # hop, same aligned signal segments).
    fuse_mel = (win_length in n_ffts
                and int(win_length * (1 - overlap)) == block_size
                and y_pred.shape[-1] <= y_true.shape[-1])

    total_mss = jnp.float32(0.0)
    loss_mel = None

    for n_fft in n_ffts:
        hop = int(n_fft * (1 - overlap))
        basis, n_freq, n_freq_pad = _dft_basis_padded(n_fft)
        ft = _frame_signal(xt, n_fft, hop)
        fp = _frame_signal(xp, n_fft, hop)
        t_real = ft.shape[0]                       # = batch * n_frames

        if fuse_mel and n_fft == win_length and loss_mel is None:
            melfb = _mel_filterbank_padded(n_freq, n_freq_pad, mel_fmin, mel_fmax,
                                           n_mels, sample_rate)
            sums = _spectral_sums(_sss_mel_kernel, ft, fp, basis, melfb,
                                  n_freq_pad=n_freq_pad, eps=eps)
            conv_m = jnp.sqrt(sums[3]) / (jnp.sqrt(sums[4]) + eps)
            loss_mel = conv_m + sums[5] / (t_real * n_mels)
        else:
            sums = _spectral_sums(_sss_kernel, ft, fp, basis, None,
                                  n_freq_pad=n_freq_pad, eps=eps)

        converge = jnp.sqrt(sums[0]) / (jnp.sqrt(sums[1]) + eps)
        total_mss = total_mss + converge + alpha * sums[2] / (t_real * n_freq)

    loss_mss = ratio * total_mss

    if loss_mel is None:
        # Mel framing does not match any MSS scale: compute it standalone (reusing the
        # fused kernel; the extra 3 SSS sums on the same power spectrogram are negligible).
        min_len_m = min(y_true.shape[1], y_pred.shape[1])
        xt_m = y_true[:, -min_len_m:]
        xp_m = y_pred[:, -min_len_m:]
        basis, n_freq, n_freq_pad = _dft_basis_padded(win_length)
        melfb = _mel_filterbank_padded(n_freq, n_freq_pad, mel_fmin, mel_fmax,
                                       n_mels, sample_rate)
        ftm = _frame_signal(xt_m, win_length, block_size)
        fpm = _frame_signal(xp_m, win_length, block_size)
        sums = _spectral_sums(_sss_mel_kernel, ftm, fpm, basis, melfb,
                              n_freq_pad=n_freq_pad, eps=eps)
        conv_m = jnp.sqrt(sums[3]) / (jnp.sqrt(sums[4]) + eps)
        loss_mel = conv_m + sums[5] / (ftm.shape[0] * n_mels)

    return loss_mss + loss_mel


# ------------------------------------------------------------------ main
if __name__ == "__main__":
    key = jax.random.PRNGKey(0)
    k1, k2 = jax.random.split(key)

    B, L = 2, 2048                      # (batch, 1d-wave); large enough to exercise the grid
    y_true = jax.random.normal(k1, (B, L), dtype=jnp.float32)
    y_pred = jax.random.normal(k2, (B, L), dtype=jnp.float32)

    # Synthetic "args" config (small, consistent with the module's __init__).
    cfg = dict(
        n_ffts=(64, 32),                # args.loss.n_ffts
        sample_rate=8000,               # args.data.sampling_rate
        win_length=64,                  # args.data.win_length
        block_size=16,                  # args.data.block_size (mel hop length)
        n_mels=8,                       # args.data.n_mels
        mel_fmin=0.0,                   # args.data.mel_fmin
        mel_fmax=None,                  # args.data.mel_fmax
    )

    # jit so the numpy-built DFT bases / mel filterbank are baked as compile-time constants.
    loss_fn = jax.jit(functools.partial(hybrid_loss, **cfg))

    loss = jax.block_until_ready(loss_fn(y_pred, y_true))
    assert loss.shape == () and bool(jnp.isfinite(loss))
    print("KERNEL_OK")
</pallas_src>

<mosaic_0001>
module attributes {stable_mosaic.version = 11 : i64} {
  func.func @_sss_mel_kernel(%arg0: i32, %arg1: memref<136x64xf32, #tpu.memory_space<vmem>>, %arg2: memref<136x64xf32, #tpu.memory_space<vmem>>, %arg3: memref<64x256xf32, #tpu.memory_space<vmem>>, %arg4: memref<128x8xf32, #tpu.memory_space<vmem>>, %arg5: memref<6xf32, #tpu.memory_space<smem>>) attributes {dimension_semantics = [#tpu.dimension_semantics<arbitrary>], iteration_bounds = array<i64: 2>, scalar_prefetch = 0 : i64, scratch_operands = 0 : i64, tpu.core_type = #tpu.core_type<tc>, window_params = [{transform_indices = @transform_0, window_bounds = array<i64: 136, 64>}, {transform_indices = @transform_1, window_bounds = array<i64: 136, 64>}, {pipeline_mode = #tpu.pipeline_mode<synchronous>, transform_indices = @transform_2, window_bounds = array<i64: 64, 256>}, {pipeline_mode = #tpu.pipeline_mode<synchronous>, transform_indices = @transform_3, window_bounds = array<i64: 128, 8>}, {transform_indices = @transform_4, window_bounds = array<i64: 6>}]} {
    %c0_i32 = arith.constant 0 : i32
    %0 = arith.cmpi eq, %arg0, %c0_i32 : i32
    %1 = arith.extui %0 : i1 to i32
    %c0_i32_0 = arith.constant 0 : i32
    %2 = arith.cmpi ne, %1, %c0_i32_0 : i32
    scf.if %2 {
      %cst_27 = arith.constant 0.000000e+00 : f32
      %c0_28 = arith.constant 0 : index
      %84 = memref.load %arg5[%c0_28] : memref<6xf32, #tpu.memory_space<smem>>
      memref.store %cst_27, %arg5[%c0_28] : memref<6xf32, #tpu.memory_space<smem>>
      %cst_29 = arith.constant 0.000000e+00 : f32
      %c1_30 = arith.constant 1 : index
      %85 = memref.load %arg5[%c1_30] : memref<6xf32, #tpu.memory_space<smem>>
      memref.store %cst_29, %arg5[%c1_30] : memref<6xf32, #tpu.memory_space<smem>>
      %cst_31 = arith.constant 0.000000e+00 : f32
      %c2_32 = arith.constant 2 : index
      %86 = memref.load %arg5[%c2_32] : memref<6xf32, #tpu.memory_space<smem>>
      memref.store %cst_31, %arg5[%c2_32] : memref<6xf32, #tpu.memory_space<smem>>
      %cst_33 = arith.constant 0.000000e+00 : f32
      %c3_34 = arith.constant 3 : index
      %87 = memref.load %arg5[%c3_34] : memref<6xf32, #tpu.memory_space<smem>>
      memref.store %cst_33, %arg5[%c3_34] : memref<6xf32, #tpu.memory_space<smem>>
      %cst_35 = arith.constant 0.000000e+00 : f32
      %c4_36 = arith.constant 4 : index
      %88 = memref.load %arg5[%c4_36] : memref<6xf32, #tpu.memory_space<smem>>
      memref.store %cst_35, %arg5[%c4_36] : memref<6xf32, #tpu.memory_space<smem>>
      %cst_37 = arith.constant 0.000000e+00 : f32
      %c5_38 = arith.constant 5 : index
      %89 = memref.load %arg5[%c5_38] : memref<6xf32, #tpu.memory_space<smem>>
      memref.store %cst_37, %arg5[%c5_38] : memref<6xf32, #tpu.memory_space<smem>>
    } else {
    }
    %c0 = arith.constant 0 : index
    %c0_1 = arith.constant 0 : index
    %3 = vector.load %arg1[%c0, %c0_1] : memref<136x64xf32, #tpu.memory_space<vmem>>, vector<136x64xf32>
    %c0_2 = arith.constant 0 : index
    %c0_3 = arith.constant 0 : index
    %4 = vector.load %arg2[%c0_2, %c0_3] : memref<136x64xf32, #tpu.memory_space<vmem>>, vector<136x64xf32>
    %5 = tpu.concatenate %3, %4 in 0 : vector<136x64xf32>, vector<136x64xf32> -> vector<272x64xf32>
    %c0_4 = arith.constant 0 : index
    %c0_5 = arith.constant 0 : index
    %6 = vector.load %arg3[%c0_4, %c0_5] : memref<64x256xf32, #tpu.memory_space<vmem>>, vector<64x256xf32>
    %cst = arith.constant dense<0.000000e+00> : vector<272x256xf32>
    %7 = tpu.matmul %5, %6, %cst {dimension_numbers = #tpu.dot_dimension_numbers<[1], [0], [0], [1], [0, 0, 1, 1], [], []>} : vector<272x64xf32>, vector<64x256xf32>, vector<272x256xf32> -> vector<272x256xf32>
    %8 = vector.extract_strided_slice %7 {offsets = [0, 0], sizes = [272, 128], strides = [1, 1]} : vector<272x256xf32> to vector<272x128xf32>
    %9 = arith.mulf %8, %8 : vector<272x128xf32>
    %10 = vector.extract_strided_slice %7 {offsets = [0, 128], sizes = [272, 128], strides = [1, 1]} : vector<272x256xf32> to vector<272x128xf32>
    %11 = arith.mulf %10, %10 : vector<272x128xf32>
    %12 = arith.addf %9, %11 : vector<272x128xf32>
    %13 = vector.extract_strided_slice %12 {offsets = [0, 0], sizes = [136, 128], strides = [1, 1]} : vector<272x128xf32> to vector<136x128xf32>
    %14 = vector.extract_strided_slice %12 {offsets = [136, 0], sizes = [136, 128], strides = [1, 1]} : vector<272x128xf32> to vector<136x128xf32>
    %15 = arith.subf %13, %14 : vector<136x128xf32>
    %c0_6 = arith.constant 0 : index
    %16 = memref.load %arg5[%c0_6] : memref<6xf32, #tpu.memory_space<smem>>
    %17 = arith.mulf %15, %15 : vector<136x128xf32>
    %18 = vector.shape_cast %17 : vector<136x128xf32> to vector<1x136x128xf32>
    %cst_7 = arith.constant dense<0.000000e+00> : vector<1xf32>
    %19 = vector.multi_reduction <add>, %18, %cst_7 [1, 2] : vector<1x136x128xf32> to vector<1xf32>
    %20 = vector.shape_cast %19 : vector<1xf32> to vector<1x1x1xf32>
    %21 = vector.extract %20[0, 0, 0] : f32 from vector<1x1x1xf32>
    %22 = arith.addf %16, %21 : f32
    %c0_8 = arith.constant 0 : index
    %23 = memref.load %arg5[%c0_8] : memref<6xf32, #tpu.memory_space<smem>>
    memref.store %22, %arg5[%c0_8] : memref<6xf32, #tpu.memory_space<smem>>
    %c1 = arith.constant 1 : index
    %24 = memref.load %arg5[%c1] : memref<6xf32, #tpu.memory_space<smem>>
    %25 = arith.mulf %13, %13 : vector<136x128xf32>
    %26 = vector.shape_cast %25 : vector<136x128xf32> to vector<1x136x128xf32>
    %cst_9 = arith.constant dense<0.000000e+00> : vector<1xf32>
    %27 = vector.multi_reduction <add>, %26, %cst_9 [1, 2] : vector<1x136x128xf32> to vector<1xf32>
    %28 = vector.shape_cast %27 : vector<1xf32> to vector<1x1x1xf32>
    %29 = vector.extract %28[0, 0, 0] : f32 from vector<1x1x1xf32>
    %30 = arith.addf %24, %29 : f32
    %c1_10 = arith.constant 1 : index
    %31 = memref.load %arg5[%c1_10] : memref<6xf32, #tpu.memory_space<smem>>
    memref.store %30, %arg5[%c1_10] : memref<6xf32, #tpu.memory_space<smem>>
    %c2 = arith.constant 2 : index
    %32 = memref.load %arg5[%c2] : memref<6xf32, #tpu.memory_space<smem>>
    %cst_11 = arith.constant 1.000000e-07 : f32
    %33 = vector.broadcast %cst_11 : f32 to vector<136x128xf32>
    %34 = arith.addf %13, %33 : vector<136x128xf32>
    %cst_12 = arith.constant 1.000000e-07 : f32
    %35 = vector.broadcast %cst_12 : f32 to vector<136x128xf32>
    %36 = arith.addf %14, %35 : vector<136x128xf32>
    %37 = arith.divf %34, %36 : vector<136x128xf32>
    %38 = math.log %37 : vector<136x128xf32>
    %39 = math.absf %38 : vector<136x128xf32>
    %40 = vector.shape_cast %39 : vector<136x128xf32> to vector<1x136x128xf32>
    %cst_13 = arith.constant dense<0.000000e+00> : vector<1xf32>
    %41 = vector.multi_reduction <add>, %40, %cst_13 [1, 2] : vector<1x136x128xf32> to vector<1xf32>
    %42 = vector.shape_cast %41 : vector<1xf32> to vector<1x1x1xf32>
    %43 = vector.extract %42[0, 0, 0] : f32 from vector<1x1x1xf32>
    %44 = arith.addf %32, %43 : f32
    %c2_14 = arith.constant 2 : index
    %45 = memref.load %arg5[%c2_14] : memref<6xf32, #tpu.memory_space<smem>>
    memref.store %44, %arg5[%c2_14] : memref<6xf32, #tpu.memory_space<smem>>
    %c0_15 = arith.constant 0 : index
    %c0_16 = arith.constant 0 : index
    %46 = vector.load %arg4[%c0_15, %c0_16] : memref<128x8xf32, #tpu.memory_space<vmem>>, vector<128x8xf32>
    %cst_17 = arith.constant dense<0.000000e+00> : vector<272x8xf32>
    %47 = tpu.matmul %12, %46, %cst_17 {dimension_numbers = #tpu.dot_dimension_numbers<[1], [0], [0], [1], [0, 0, 1, 1], [], []>} : vector<272x128xf32>, vector<128x8xf32>, vector<272x8xf32> -> vector<272x8xf32>
    %48 = vector.extract_strided_slice %47 {offsets = [0, 0], sizes = [136, 8], strides = [1, 1]} : vector<272x8xf32> to vector<136x8xf32>
    %49 = vector.extract_strided_slice %47 {offsets = [136, 0], sizes = [136, 8], strides = [1, 1]} : vector<272x8xf32> to vector<136x8xf32>
    %50 = arith.subf %48, %49 : vector<136x8xf32>
    %c3 = arith.constant 3 : index
    %51 = memref.load %arg5[%c3] : memref<6xf32, #tpu.memory_space<smem>>
    %52 = arith.mulf %50, %50 : vector<136x8xf32>
    %53 = vector.shape_cast %52 : vector<136x8xf32> to vector<1x136x8xf32>
    %cst_18 = arith.constant dense<0.000000e+00> : vector<1xf32>
    %54 = vector.multi_reduction <add>, %53, %cst_18 [1, 2] : vector<1x136x8xf32> to vector<1xf32>
    %55 = vector.shape_cast %54 : vector<1xf32> to vector<1x1x1xf32>
    %56 = vector.extract %55[0, 0, 0] : f32 from vector<1x1x1xf32>
    %57 = arith.addf %51, %56 : f32
    %c3_19 = arith.constant 3 : index
    %58 = memref.load %arg5[%c3_19] : memref<6xf32, #tpu.memory_space<smem>>
    memref.store %57, %arg5[%c3_19] : memref<6xf32, #tpu.memory_space<smem>>
    %c4 = arith.constant 4 : index
    %59 = memref.load %arg5[%c4] : memref<6xf32, #tpu.memory_space<smem>>
    %60 = arith.mulf %48, %48 : vector<136x8xf32>
    %61 = vector.shape_cast %60 : vector<136x8xf32> to vector<1x136x8xf32>
    %cst_20 = arith.constant dense<0.000000e+00> : vector<1xf32>
    %62 = vector.multi_reduction <add>, %61, %cst_20 [1, 2] : vector<1x136x8xf32> to vector<1xf32>
    %63 = vector.shape_cast %62 : vector<1xf32> to vector<1x1x1xf32>
    %64 = vector.extract %63[0, 0, 0] : f32 from vector<1x1x1xf32>
    %65 = arith.addf %59, %64 : f32
    %c4_21 = arith.constant 4 : index
    %66 = memref.load %arg5[%c4_21] : memref<6xf32, #tpu.memory_space<smem>>
    memref.store %65, %arg5[%c4_21] : memref<6xf32, #tpu.memory_space<smem>>
    %c5 = arith.constant 5 : index
    %67 = memref.load %arg5[%c5] : memref<6xf32, #tpu.memory_space<smem>>
    %cst_22 = arith.constant 1.000000e-07 : f32
    %68 = vector.broadcast %cst_22 : f32 to vector<136x8xf32>
    %69 = arith.addf %48, %68 : vector<136x8xf32>
    %cst_23 = arith.constant 1.000000e-07 : f32
    %70 = vector.broadcast %cst_23 : f32 to vector<136x8xf32>
    %71 = arith.addf %49, %70 : vector<136x8xf32>
    %72 = arith.divf %69, %71 : vector<136x8xf32>
    %73 = math.log %72 : vector<136x8xf32>
    %cst_24 = arith.constant 2.000000e+00 : f32
    %74 = math.log %cst_24 : f32
    %75 = vector.broadcast %74 : f32 to vector<136x8xf32>
    %76 = arith.divf %73, %75 : vector<136x8xf32>
    %77 = math.absf %76 : vector<136x8xf32>
    %78 = vector.shape_cast %77 : vector<136x8xf32> to vector<1x136x8xf32>
    %cst_25 = arith.constant dense<0.000000e+00> : vector<1xf32>
    %79 = vector.multi_reduction <add>, %78, %cst_25 [1, 2] : vector<1x136x8xf32> to vector<1xf32>
    %80 = vector.shape_cast %79 : vector<1xf32> to vector<1x1x1xf32>
    %81 = vector.extract %80[0, 0, 0] : f32 from vector<1x1x1xf32>
    %82 = arith.addf %67, %81 : f32
    %c5_26 = arith.constant 5 : index
    %83 = memref.load %arg5[%c5_26] : memref<6xf32, #tpu.memory_space<smem>>
    memref.store %82, %arg5[%c5_26] : memref<6xf32, #tpu.memory_space<smem>>
    return
  }
  func.func @transform_0(%arg0: i32) -> (i32, i32) {
    %c0_i32 = arith.constant 0 : i32
    %c0_i32_0 = arith.constant 0 : i32
    return %arg0, %c0_i32 : i32, i32
  }
  func.func @transform_1(%arg0: i32) -> (i32, i32) {
    %c0_i32 = arith.constant 0 : i32
    %c0_i32_0 = arith.constant 0 : i32
    return %arg0, %c0_i32 : i32, i32
  }
  func.func @transform_2(%arg0: i32) -> (i32, i32) {
    %c0_i32 = arith.constant 0 : i32
    %c0_i32_0 = arith.constant 0 : i32
    %c0_i32_1 = arith.constant 0 : i32
    return %c0_i32, %c0_i32_0 : i32, i32
  }
  func.func @transform_3(%arg0: i32) -> (i32, i32) {
    %c0_i32 = arith.constant 0 : i32
    %c0_i32_0 = arith.constant 0 : i32
    %c0_i32_1 = arith.constant 0 : i32
    return %c0_i32, %c0_i32_0 : i32, i32
  }
  func.func @transform_4(%arg0: i32) -> i32 {
    %c0_i32 = arith.constant 0 : i32
    %c0_i32_0 = arith.constant 0 : i32
    return %c0_i32 : i32
  }
}

module attributes {stable_mosaic.version = 11 : i64} {
  func.func @_sss_kernel(%arg0: i32, %arg1: memref<176x32xf32, #tpu.memory_space<vmem>>, %arg2: memref<176x32xf32, #tpu.memory_space<vmem>>, %arg3: memref<32x256xf32, #tpu.memory_space<vmem>>, %arg4: memref<3xf32, #tpu.memory_space<smem>>) attributes {dimension_semantics = [#tpu.dimension_semantics<arbitrary>], iteration_bounds = array<i64: 3>, scalar_prefetch = 0 : i64, scratch_operands = 0 : i64, tpu.core_type = #tpu.core_type<tc>, window_params = [{transform_indices = @transform_0, window_bounds = array<i64: 176, 32>}, {transform_indices = @transform_1, window_bounds = array<i64: 176, 32>}, {pipeline_mode = #tpu.pipeline_mode<synchronous>, transform_indices = @transform_2, window_bounds = array<i64: 32, 256>}, {transform_indices = @transform_3, window_bounds = array<i64: 3>}]} {
    %c0_i32 = arith.constant 0 : i32
    %0 = arith.cmpi eq, %arg0, %c0_i32 : i32
    %1 = arith.extui %0 : i1 to i32
    %c0_i32_0 = arith.constant 0 : i32
    %2 = arith.cmpi ne, %1, %c0_i32_0 : i32
    scf.if %2 {
      %cst_15 = arith.constant 0.000000e+00 : f32
      %c0_16 = arith.constant 0 : index
      %46 = memref.load %arg4[%c0_16] : memref<3xf32, #tpu.memory_space<smem>>
      memref.store %cst_15, %arg4[%c0_16] : memref<3xf32, #tpu.memory_space<smem>>
      %cst_17 = arith.constant 0.000000e+00 : f32
      %c1_18 = arith.constant 1 : index
      %47 = memref.load %arg4[%c1_18] : memref<3xf32, #tpu.memory_space<smem>>
      memref.store %cst_17, %arg4[%c1_18] : memref<3xf32, #tpu.memory_space<smem>>
      %cst_19 = arith.constant 0.000000e+00 : f32
      %c2_20 = arith.constant 2 : index
      %48 = memref.load %arg4[%c2_20] : memref<3xf32, #tpu.memory_space<smem>>
      memref.store %cst_19, %arg4[%c2_20] : memref<3xf32, #tpu.memory_space<smem>>
    } else {
    }
    %c0 = arith.constant 0 : index
    %c0_1 = arith.constant 0 : index
    %3 = vector.load %arg1[%c0, %c0_1] : memref<176x32xf32, #tpu.memory_space<vmem>>, vector<176x32xf32>
    %c0_2 = arith.constant 0 : index
    %c0_3 = arith.constant 0 : index
    %4 = vector.load %arg2[%c0_2, %c0_3] : memref<176x32xf32, #tpu.memory_space<vmem>>, vector<176x32xf32>
    %5 = tpu.concatenate %3, %4 in 0 : vector<176x32xf32>, vector<176x32xf32> -> vector<352x32xf32>
    %c0_4 = arith.constant 0 : index
    %c0_5 = arith.constant 0 : index
    %6 = vector.load %arg3[%c0_4, %c0_5] : memref<32x256xf32, #tpu.memory_space<vmem>>, vector<32x256xf32>
    %cst = arith.constant dense<0.000000e+00> : vector<352x256xf32>
    %7 = tpu.matmul %5, %6, %cst {dimension_numbers = #tpu.dot_dimension_numbers<[1], [0], [0], [1], [0, 0, 1, 1], [], []>} : vector<352x32xf32>, vector<32x256xf32>, vector<352x256xf32> -> vector<352x256xf32>
    %8 = vector.extract_strided_slice %7 {offsets = [0, 0], sizes = [352, 128], strides = [1, 1]} : vector<352x256xf32> to vector<352x128xf32>
    %9 = arith.mulf %8, %8 : vector<352x128xf32>
    %10 = vector.extract_strided_slice %7 {offsets = [0, 128], sizes = [352, 128], strides = [1, 1]} : vector<352x256xf32> to vector<352x128xf32>
    %11 = arith.mulf %10, %10 : vector<352x128xf32>
    %12 = arith.addf %9, %11 : vector<352x128xf32>
    %13 = vector.extract_strided_slice %12 {offsets = [0, 0], sizes = [176, 128], strides = [1, 1]} : vector<352x128xf32> to vector<176x128xf32>
    %14 = vector.extract_strided_slice %12 {offsets = [176, 0], sizes = [176, 128], strides = [1, 1]} : vector<352x128xf32> to vector<176x128xf32>
    %15 = arith.subf %13, %14 : vector<176x128xf32>
    %c0_6 = arith.constant 0 : index
    %16 = memref.load %arg4[%c0_6] : memref<3xf32, #tpu.memory_space<smem>>
    %17 = arith.mulf %15, %15 : vector<176x128xf32>
    %18 = vector.shape_cast %17 : vector<176x128xf32> to vector<1x176x128xf32>
    %cst_7 = arith.constant dense<0.000000e+00> : vector<1xf32>
    %19 = vector.multi_reduction <add>, %18, %cst_7 [1, 2] : vector<1x176x128xf32> to vector<1xf32>
    %20 = vector.shape_cast %19 : vector<1xf32> to vector<1x1x1xf32>
    %21 = vector.extract %20[0, 0, 0] : f32 from vector<1x1x1xf32>
    %22 = arith.addf %16, %21 : f32
    %c0_8 = arith.constant 0 : index
    %23 = memref.load %arg4[%c0_8] : memref<3xf32, #tpu.memory_space<smem>>
    memref.store %22, %arg4[%c0_8] : memref<3xf32, #tpu.memory_space<smem>>
    %c1 = arith.constant 1 : index
    %24 = memref.load %arg4[%c1] : memref<3xf32, #tpu.memory_space<smem>>
    %25 = arith.mulf %13, %13 : vector<176x128xf32>
    %26 = vector.shape_cast %25 : vector<176x128xf32> to vector<1x176x128xf32>
    %cst_9 = arith.constant dense<0.000000e+00> : vector<1xf32>
    %27 = vector.multi_reduction <add>, %26, %cst_9 [1, 2] : vector<1x176x128xf32> to vector<1xf32>
    %28 = vector.shape_cast %27 : vector<1xf32> to vector<1x1x1xf32>
    %29 = vector.extract %28[0, 0, 0] : f32 from vector<1x1x1xf32>
    %30 = arith.addf %24, %29 : f32
    %c1_10 = arith.constant 1 : index
    %31 = memref.load %arg4[%c1_10] : memref<3xf32, #tpu.memory_space<smem>>
    memref.store %30, %arg4[%c1_10] : memref<3xf32, #tpu.memory_space<smem>>
    %c2 = arith.constant 2 : index
    %32 = memref.load %arg4[%c2] : memref<3xf32, #tpu.memory_space<smem>>
    %cst_11 = arith.constant 1.000000e-07 : f32
    %33 = vector.broadcast %cst_11 : f32 to vector<176x128xf32>
    %34 = arith.addf %13, %33 : vector<176x128xf32>
    %cst_12 = arith.constant 1.000000e-07 : f32
    %35 = vector.broadcast %cst_12 : f32 to vector<176x128xf32>
    %36 = arith.addf %14, %35 : vector<176x128xf32>
    %37 = arith.divf %34, %36 : vector<176x128xf32>
    %38 = math.log %37 : vector<176x128xf32>
    %39 = math.absf %38 : vector<176x128xf32>
    %40 = vector.shape_cast %39 : vector<176x128xf32> to vector<1x176x128xf32>
    %cst_13 = arith.constant dense<0.000000e+00> : vector<1xf32>
    %41 = vector.multi_reduction <add>, %40, %cst_13 [1, 2] : vector<1x176x128xf32> to vector<1xf32>
    %42 = vector.shape_cast %41 : vector<1xf32> to vector<1x1x1xf32>
    %43 = vector.extract %42[0, 0, 0] : f32 from vector<1x1x1xf32>
    %44 = arith.addf %32, %43 : f32
    %c2_14 = arith.constant 2 : index
    %45 = memref.load %arg4[%c2_14] : memref<3xf32, #tpu.memory_space<smem>>
    memref.store %44, %arg4[%c2_14] : memref<3xf32, #tpu.memory_space<smem>>
    return
  }
  func.func @transform_0(%arg0: i32) -> (i32, i32) {
    %c0_i32 = arith.constant 0 : i32
    %c0_i32_0 = arith.constant 0 : i32
    return %arg0, %c0_i32 : i32, i32
  }
  func.func @transform_1(%arg0: i32) -> (i32, i32) {
    %c0_i32 = arith.constant 0 : i32
    %c0_i32_0 = arith.constant 0 : i32
    return %arg0, %c0_i32 : i32, i32
  }
  func.func @transform_2(%arg0: i32) -> (i32, i32) {
    %c0_i32 = arith.constant 0 : i32
    %c0_i32_0 = arith.constant 0 : i32
    %c0_i32_1 = arith.constant 0 : i32
    return %c0_i32, %c0_i32_0 : i32, i32
  }
  func.func @transform_3(%arg0: i32) -> i32 {
    %c0_i32 = arith.constant 0 : i32
    %c0_i32_0 = arith.constant 0 : i32
    return %c0_i32 : i32
  }
}

</mosaic_0001>

<bundles_post_ra>
// kernel: hybrid_loss.2
= control target key start
LH: loop header
LB: loop body
LE: loop exit
PB: predicated region body
PF: predicated region fallthrough
CT: control target
= control target key end

     0   :  { %9 = vsyncpa [#allocation3], 0  ;;  %s2108_s15 = smov 0   ;;  %s2691_s0 = inlined_call_operand.vmem [shape: f32[272,64], index: 0, kind: input, shape index: {}]   ;;  %s2692_s1 = inlined_call_operand.vmem [shape: f32[272,64], index: 1, kind: input, shape index: {}]   ;;  %s2693_s2 = inlined_call_operand.vmem [shape: f32[64,256], index: 2, kind: input, shape index: {}]   ;;  %s2694_s3 = inlined_call_operand.vmem [shape: f32[128,8], index: 3, kind: input, shape index: {}]   ;;  %s2695_s4 = inlined_call_operand.vmem [shape: f32[6], index: 4, kind: output, shape index: {}]  }
   0x1 LB: > { %s2114_s16 = sadd.s32 4294967295, %s2078_s15   ;;  %p1645_p0 = scmp.ge.s32.totalorder %s2078_s15, 1  ;;  %s2078_s15 = sphi %s2108_s15, %s15_s15  }
   0x2   : > { %p170_p1 = scmp.lt.s32.totalorder %s2078_s15, 3 }
   0x4   : > { %p171_p2 = pnand %p1645_p0, %p170_p1 }
   0x5   : > { %v259_v0 = vld [vmem:[%s2693_s2 + $0x8] sm:$0xff] (!%p171_p2)  ;;  %v261_v1 = vld [vmem:[%s2693_s2 + $0x18] sm:$0xff] (!%p171_p2)  ;;  %v258_v2 = vld [vmem:[%s2693_s2] sm:$0xff] (!%p171_p2)  ;;  %s196_s23 = smul.u32 (!%p171_p2), 17, %s2114_s16  ;;  %v2080_v7 = vmov (!%p171_p2), 0.0   ;;  %vm274_vm0 = vcmask (!%p171_p2), 523264  }
   0x6   : > { %174 = sbr.rel (%p171_p2) target bundleno = 828 (0x33c), region = 36  ;;  %v1825_v3 = vpack.c.bf16 (!%p171_p2), %v261_v1, %v259_v0  ;;  %v260_v4 = vld [vmem:[%s2693_s2 + $0x10] sm:$0xff] (!%p171_p2)  ;;  %v263_v5 = vld [vmem:[%s2693_s2 + $0x28] sm:$0xff] (!%p171_p2)  ;;  %v265_v6 = vld [vmem:[%s2693_s2 + $0x38] sm:$0xff] (!%p171_p2)  ;;  %441 = vmatprep.mubr.f32.mxu0 (!%p171_p2), %v2080_v7  ;;  %597 = vmatprep.mubr.f32.mxu1 (!%p171_p2), %v2080_v7  ;;  %p1904_p4 = scmp.eq.s32.totalorder (!%p171_p2), %s2114_s16, 0  ;;  %vm1291_vm1 = vcmask (!%p171_p2), 64512  }
   0x7   : > { %v1827_v8 = vpack.c.bf16 (!%p171_p2), %v260_v4, %v258_v2  ;;  %v1829_v9 = vpack.c.bf16 (!%p171_p2), %v265_v6, %v263_v5  ;;  %v262_v10 = vld [vmem:[%s2693_s2 + $0x20] sm:$0xff] (!%p171_p2)  ;;  %v264_v11 = vld [vmem:[%s2693_s2 + $0x30] sm:$0xff] (!%p171_p2)  ;;  %v267_v12 = vld [vmem:[%s2693_s2 + $0x48] sm:$0xff] (!%p171_p2)  ;;  %p2148_p3 = scmp.lt.s32.totalorder (!%p171_p2), %s196_s23, 33  ;;  %s1590_s12 = sshll.u32 (!%p171_p2), %s2695_s4, 4  ;;  %s1591_s12 = int_to_ptr.vmem [resolvable:$true] %s1590_s12 }
   0x8   : > { %1826 = vmatprep.subr.bf16.mxu0 (!%p171_p2), %v1825_v3  ;;  %v269_v13 = vld [vmem:[%s2693_s2 + $0x58] sm:$0xff] (!%p171_p2)  ;;  %1873 = vmatprep.subr.bf16.mxu1 (!%p171_p2), %v1825_v3  ;;  %v1831_v14 = vpack.c.bf16 (!%p171_p2), %v264_v11, %v262_v10  ;;  %v266_v16 = vld [vmem:[%s2693_s2 + $0x40] sm:$0xff] (!%p171_p2)  ;;  %v268_v17 = vld [vmem:[%s2693_s2 + $0x50] sm:$0xff] (!%p171_p2)  ;;  %p1905_p5 = scmp.eq.s32.totalorder (!%p171_p2), %s2114_s16, 1  ;;  %s2054_s17 = scalar_lea.vmem (!%p171_p2), %s1591_s12, 16 }
   0x9   : > { %1828 = vmatpush1.bf16.msra.mxu0 (!%p171_p2), %v1827_v8  ;;  %1877 = vmatpush1.bf16.msra.mxu1 (!%p171_p2), %v1827_v8  ;;  %v1833_v15 = vpack.c.bf16 (!%p171_p2), %v269_v13, %v267_v12  ;;  %v271_v18 = vld [vmem:[%s2693_s2 + $0x68] sm:$0xff] (!%p171_p2)  ;;  %v273_v19 = vld [vmem:[%s2693_s2 + $0x78] sm:$0xff] (!%p171_p2)  ;;  %v1835_v20 = vpack.c.bf16 (!%p171_p2), %v268_v17, %v266_v16  ;;  %v270_v22 = vld [vmem:[%s2693_s2 + $0x60] sm:$0xff] (!%p171_p2)  ;;  %p2055_p6 = scmp.ne.s32.totalorder (!%p171_p2), %s1591_s12, %s2054_s17  ;;  %p2061_p9 = scmp.lt.s32.totalorder (!%p171_p2), %s1591_s12, %s1591_s12 }
   0xa   : > { %1830 = vmatprep.subr.bf16.mxu0 (!%p171_p2), %v1829_v9  ;;  %1874 = vmatprep.subr.bf16.mxu1 (!%p171_p2), %v1829_v9  ;;  %v1837_v21 = vpack.c.bf16 (!%p171_p2), %v273_v19, %v271_v18  ;;  %v272_v23 = vld [vmem:[%s2693_s2 + $0x70] sm:$0xff] (!%p171_p2)  ;;  %v1005_v24 = vld [vmem:[%s2694_s3] sm:$0xff] (!%p171_p2)  ;;  %v1006_v25 = vld [vmem:[%s2694_s3 + $0x8] sm:$0xff] (!%p171_p2)  ;;  %p2062_p10 = scmp.lt.s32.totalorder (!%p171_p2), %s2054_s17, %s2054_s17 }
   0xb   : > { %v1839_v26 = vpack.c.bf16 (!%p171_p2), %v272_v23, %v270_v22  ;;  %v1841_v27 = vpack.c.bf16 (!%p171_p2), %v1006_v25, %v1005_v24  ;;  %v1007_v28 = vld [vmem:[%s2694_s3 + $0x10] sm:$0xff] (!%p171_p2)  ;;  %v1008_v29 = vld [vmem:[%s2694_s3 + $0x18] sm:$0xff] (!%p171_p2)  ;;  %v1009_v33 = vld [vmem:[%s2694_s3 + $0x20] sm:$0xff] (!%p171_p2)  ;;  %p2056_p7 = pnand (!%p171_p2), %p2055_p6, %p1905_p5 }
   0xc   : > { %v1845_v32 = vpack.c.bf16 (!%p171_p2), %v1008_v29, %v1007_v28  ;;  %v1010_v34 = vld [vmem:[%s2694_s3 + $0x28] sm:$0xff] (!%p171_p2)  ;;  %v1011_v38 = vld [vmem:[%s2694_s3 + $0x30] sm:$0xff] (!%p171_p2)  ;;  %v1012_v39 = vld [vmem:[%s2694_s3 + $0x38] sm:$0xff] (!%p171_p2)  ;;  %p2063_p11 = por (!%p171_p2), %p2062_p10, %p2061_p9 }
   0xd   : > { %s2698_s23 = smov (!%p2148_p3, %s196_s23), 33  ;;  %1832 = vmatpush1.bf16.msra.mxu0 %v1831_v14  ;;  %1878 = vmatpush1.bf16.msra.mxu1 %v1831_v14  ;;  %v1849_v37 = vpack.c.bf16 %v1010_v34, %v1009_v33  ;;  %v1853_v42 = vpack.c.bf16 %v1012_v39, %v1011_v38  ;;  %v1013_v43 = vld [vmem:[%s2694_s3 + $0x40] sm:$0xff]  ;;  %v1014_v44 = vld [vmem:[%s2694_s3 + $0x48] sm:$0xff]  ;;  %v1015_v48 = vld [vmem:[%s2694_s3 + $0x50] sm:$0xff]  ;;  %p2057_p8 = pneg %p2056_p7 }
   0xe   : > { %1834 = vmatprep.subr.bf16.mxu0 %v1833_v15  ;;  %1875 = vmatprep.subr.bf16.mxu1 %v1833_v15  ;;  %s1646_s28 = sshll.u32 %s2698_s23, 3  ;;  %v1857_v47 = vpack.c.bf16 %v1014_v44, %v1013_v43  ;;  %v1016_v49 = vld [vmem:[%s2694_s3 + $0x58] sm:$0xff]  ;;  %v1017_v10 = vld [vmem:[%s2694_s3 + $0x60] sm:$0xff]  ;;  %v1018_v11 = vld [vmem:[%s2694_s3 + $0x68] sm:$0xff] }
   0xf   : > { %s2184_s9 = scalar_lea.vmem %s2691_s0, %s1646_s28  ;;  %s2189_s11 = scalar_lea.vmem %s2692_s1, %s1646_s28  ;;  %v1861_v52 = vpack.c.bf16 %v1016_v49, %v1015_v48  ;;  %v1865_v12 = vpack.c.bf16 %v1018_v11, %v1017_v10  ;;  %v1019_v14 = vld [vmem:[%s2694_s3 + $0x70] sm:$0xff]  ;;  %v1020_v15 = vld [vmem:[%s2694_s3 + $0x78] sm:$0xff] }
  0x10   : > { %v224_v30 = vld [vmem:[%s2184_s9] sm:$0xff]  ;;  %v250_v31 = vld [vmem:[%s2189_s11 + $0x48] sm:$0xff]  ;;  %v251_v36 = vld [vmem:[%s2189_s11 + $0x50] sm:$0xff]  ;;  %v1869_v16 = vpack.c.bf16 %v1020_v15, %v1019_v14  ;;  %p2064_p12 = pnand %p2063_p11, %p2057_p8 }
  0x11   : > { %1836 = vmatpush1.bf16.msra.mxu0 %v1835_v20  ;;  %1879 = vmatpush1.bf16.msra.mxu1 %v1835_v20  ;;  %v225_v35 = vld [vmem:[%s2184_s9 + $0x8] sm:$0xff]  ;;  %v226_v40 = vld [vmem:[%s2184_s9 + $0x10] sm:$0xff]  ;;  %v252_v41 = vld [vmem:[%s2189_s11 + $0x58] sm:$0xff] }
  0x12   : > { %1838 = vmatprep.subr.bf16.mxu0 %v1837_v21  ;;  %1876 = vmatprep.subr.bf16.mxu1 %v1837_v21  ;;  %v227_v45 = vld [vmem:[%s2184_s9 + $0x18] sm:$0xff]  ;;  %v253_v46 = vld [vmem:[%s2189_s11 + $0x60] sm:$0xff]  ;;  %v254_v51 = vld [vmem:[%s2189_s11 + $0x68] sm:$0xff] }
  0x13   : > { %v228_v50 = vld [vmem:[%s2184_s9 + $0x20] sm:$0xff]  ;;  %v229_v53 = vld [vmem:[%s2184_s9 + $0x28] sm:$0xff]  ;;  %v255_v54 = vld [vmem:[%s2189_s11 + $0x70] sm:$0xff] }
  0x14   : > { %v230_v55 = vld [vmem:[%s2184_s9 + $0x30] sm:$0xff]  ;;  %v256_v56 = vld [vmem:[%s2189_s11 + $0x78] sm:$0xff]  ;;  %v257_v58 = vld [vmem:[%s2189_s11 + $0x80] sm:$0xff] }
  0x15   : > { %1840 = vmatpush1.bf16.msra.mxu0 %v1839_v26  ;;  %1880 = vmatpush1.bf16.msra.mxu1 %v1839_v26  ;;  %v231_v57 = vld [vmem:[%s2184_s9 + $0x38] sm:$0xff]  ;;  %v232_v59 = vld [vmem:[%s2184_s9 + $0x40] sm:$0xff]  ;;  %v233_v60 = vld [vmem:[%s2184_s9 + $0x48] sm:$0xff] }
  0x16   : > { %1842 = vmatprep.subr.bf16.mxu1 %v1841_v27  ;;  %v234_v61 = vld [vmem:[%s2184_s9 + $0x50] sm:$0xff]  ;;  %v235_v62 = vld [vmem:[%s2184_s9 + $0x58] sm:$0xff]  ;;  %v236_v63 = vld [vmem:[%s2184_s9 + $0x60] sm:$0xff] }
  0x17   : > { %v237_v0 = vld [vmem:[%s2184_s9 + $0x68] sm:$0xff]  ;;  %v238_v1 = vld [vmem:[%s2184_s9 + $0x70] sm:$0xff]  ;;  %v239_v2 = vld [vmem:[%s2184_s9 + $0x78] sm:$0xff] }
  0x18   : > { %1649 = vmatmul.mubr.msk.f32.vlgmr.msra.gmra.mrb[0].mxu0 %vm274_vm0, %v224_v30  ;;  %1675 = vmatmul.mubr.msk.f32.vlgmr.msra.gmra.mrb[0].mxu1 %vm274_vm0, %v250_v31  ;;  %v240_v3 = vld [vmem:[%s2184_s9 + $0x80] sm:$0xff]  ;;  %v242_v5 = vld [vmem:[%s2189_s11 + $0x8] sm:$0xff]  ;;  %v243_v6 = vld [vmem:[%s2189_s11 + $0x10] sm:$0xff] }
  0x19   : > { %447 = vmatprep.mubr.f32.mxu0 %v2080_v7  ;;  %603 = vmatprep.mubr.f32.mxu1 %v2080_v7  ;;  %v241_v4 = vld [vmem:[%s2189_s11] sm:$0xff]  ;;  %v244_v8 = vld [vmem:[%s2189_s11 + $0x18] sm:$0xff]  ;;  %v246_v13 = vld [vmem:[%s2189_s11 + $0x28] sm:$0xff] }
  0x1a   : > { %1844 = vmatpush3.bf16.msra.mxu1 %v1841_v27  ;;  %v245_v9 = vld [vmem:[%s2189_s11 + $0x20] sm:$0xff]  ;;  %v247_v17 = vld [vmem:[%s2189_s11 + $0x30] sm:$0xff]  ;;  %v248_v18 = vld [vmem:[%s2189_s11 + $0x38] sm:$0xff] }
  0x1b   : > { %1846 = vmatprep.subr.bf16.mxu1 %v1845_v32  ;;  %v249_v19 = vld [vmem:[%s2189_s11 + $0x40] sm:$0xff]  ;;  %s2081_s11 = smov 0.0  }
  0x1c   : > { %1650 = vmatmul.mubr.msk.f32.gmra.mrb[2].mxu0 %vm274_vm0, %v225_v35  ;;  %1676 = vmatmul.mubr.msk.f32.gmra.mrb[2].mxu1 %vm274_vm0, %v251_v36  ;;  %1894 = sst [smem:[#allocation2]] (%p1904_p4), %s2081_s11 }
  0x1d   : > { %453 = vmatprep.mubr.f32.mxu0 %v2080_v7  ;;  %609 = vmatprep.mubr.f32.mxu1 %v2080_v7  ;;  %1895 = sst [smem:[#allocation2 + $0x1]] (%p1904_p4), %s2081_s11  ;;  %s2623_s19 = sld [smem:[#allocation2]] }
  0x1e   : > { %1848 = vmatpush3.bf16.msra.mxu1 %v1845_v32  ;;  %1896 = sst [smem:[#allocation2 + $0x2]] (%p1904_p4), %s2081_s11  ;;  %s2627_s20 = sld [smem:[#allocation2 + $0x1]] }
  0x1f   : > { %1850 = vmatprep.subr.bf16.mxu1 %v1849_v37  ;;  %1897 = sst [smem:[#allocation2 + $0x3]] (%p1904_p4), %s2081_s11  ;;  %s2661_s26 = sld [smem:[#allocation2 + $0x2]] }
  0x20   : > { %1651 = vmatmul.mubr.msk.f32.gmra.mrb[4].mxu0 %vm274_vm0, %v226_v40  ;;  %1677 = vmatmul.mubr.msk.f32.gmra.mrb[4].mxu1 %vm274_vm0, %v252_v41  ;;  %1898 = sst [smem:[#allocation2 + $0x4]] (%p1904_p4), %s2081_s11  ;;  %s1685_s29 = sld [smem:[#allocation2 + $0x3]] }
  0x21   : > { %459 = vmatprep.mubr.f32.mxu0 %v2080_v7  ;;  %615 = vmatprep.mubr.f32.mxu1 %v2080_v7  ;;  %1899 = sst [smem:[#allocation2 + $0x5]] (%p1904_p4), %s2081_s11  ;;  %s1686_s30 = sld [smem:[#allocation2 + $0x4]] }
  0x22   : > { %1852 = vmatpush3.bf16.msra.mxu1 %v1849_v37  ;;  %s1687_s9 = sld [smem:[#allocation2 + $0x5]] }
  0x23   : > { %1854 = vmatprep.subr.bf16.mxu1 %v1853_v42 }
  0x24   : > { %1652 = vmatmul.mubr.msk.f32.gmra.mrb[6].mxu0 %vm274_vm0, %v227_v45  ;;  %1678 = vmatmul.mubr.msk.f32.gmra.mrb[6].mxu1 %vm274_vm0, %v253_v46 }
  0x25   : > { %465 = vmatprep.mubr.f32.mxu0 %v2080_v7  ;;  %621 = vmatprep.mubr.f32.mxu1 %v2080_v7 }
  0x26   : > { %1856 = vmatpush3.bf16.msra.mxu1 %v1853_v42 }
  0x27   : > { %1858 = vmatprep.subr.bf16.mxu1 %v1857_v47 }
  0x28   : > { %1653 = vmatmul.mubr.msk.f32.gmra.mrb[8].mxu0 %vm274_vm0, %v228_v50  ;;  %1679 = vmatmul.mubr.msk.f32.gmra.mrb[8].mxu1 %vm274_vm0, %v254_v51 }
  0x29   : > { %471 = vmatprep.mubr.f32.mxu0 %v2080_v7  ;;  %627 = vmatprep.mubr.f32.mxu1 %v2080_v7 }
  0x2a   : > { %1860 = vmatpush3.bf16.msra.mxu1 %v1857_v47 }
  0x2b   : > { %1862 = vmatprep.subr.bf16.mxu1 %v1861_v52 }
  0x2c   : > { %1654 = vmatmul.mubr.msk.f32.gmra.mrb[10].mxu0 %vm274_vm0, %v229_v53  ;;  %1680 = vmatmul.mubr.msk.f32.gmra.mrb[10].mxu1 %vm274_vm0, %v255_v54 }
  0x2d   : > { %477 = vmatprep.mubr.f32.mxu0 %v2080_v7  ;;  %633 = vmatprep.mubr.f32.mxu1 %v2080_v7 }
  0x2e   : > { %1864 = vmatpush3.bf16.msra.mxu1 %v1861_v52 }
  0x2f   : > { %1866 = vmatprep.subr.bf16.mxu1 %v1865_v12 }
  0x30   : > { %1655 = vmatmul.mubr.msk.f32.gmra.mrb[12].mxu0 %vm274_vm0, %v230_v55  ;;  %1681 = vmatmul.mubr.msk.f32.gmra.mrb[12].mxu1 %vm274_vm0, %v256_v56 }
  0x31   : > { %483 = vmatprep.mubr.f32.mxu0 %v2080_v7  ;;  %639 = vmatprep.mubr.f32.mxu1 %v2080_v7 }
  0x32   : > { %1868 = vmatpush3.bf16.msra.mxu1 %v1865_v12 }
  0x33   : > { %1870 = vmatprep.subr.bf16.mxu1 %v1869_v16 }
  0x34   : > { %1656 = vmatmul.mubr.msk.f32.gmra.mrb[14].mxu0 %vm274_vm0, %v231_v57  ;;  %1682 = vmatmul.mubr.msk.f32.gmra.mrb[14].mxu1 %vm274_vm0, %v257_v58 }
  0x35   : > { %489 = vmatprep.mubr.f32.mxu0 %v2080_v7 }
  0x36   : > { %1872 = vmatpush3.bf16.msra.mxu1 %v1869_v16 }
  0x38   : > { %1657 = vmatmul.mubr.msk.f32.gmra.mrb[16].mxu0 %vm274_vm0, %v232_v59 }
  0x39   : > { %495 = vmatprep.mubr.f32.mxu0 %v2080_v7 }
  0x3c   : > { %1658 = vmatmul.mubr.msk.f32.gmra.mrb[18].mxu0 %vm274_vm0, %v233_v60 }
  0x3d   : > { %501 = vmatprep.mubr.f32.mxu0 %v2080_v7 }
  0x40   : > { %1659 = vmatmul.mubr.msk.f32.gmra.mrb[20].mxu0 %vm274_vm0, %v234_v61 }
  0x41   : > { %507 = vmatprep.mubr.f32.mxu0 %v2080_v7 }
  0x44   : > { %1660 = vmatmul.mubr.msk.f32.gmra.mrb[22].mxu0 %vm274_vm0, %v235_v62 }
  0x45   : > { %513 = vmatprep.mubr.f32.mxu0 %v2080_v7 }
  0x48   : > { %1661 = vmatmul.mubr.msk.f32.gmra.mrb[24].mxu0 %vm274_vm0, %v236_v63 }
  0x49   : > { %519 = vmatprep.mubr.f32.mxu0 %v2080_v7 }
  0x4c   : > { %1662 = vmatmul.mubr.msk.f32.gmra.mrb[26].mxu0 %vm274_vm0, %v237_v0 }
  0x4d   : > { %525 = vmatprep.mubr.f32.mxu0 %v2080_v7 }
  0x50   : > { %1663 = vmatmul.mubr.msk.f32.gmra.mrb[28].mxu0 %vm274_vm0, %v238_v1 }
  0x51   : > { %531 = vmatprep.mubr.f32.mxu0 %v2080_v7 }
  0x54   : > { %1664 = vmatmul.mubr.msk.f32.gmra.mrb[30].mxu0 %vm274_vm0, %v239_v2 }
  0x55   : > { %537 = vmatprep.mubr.f32.mxu0 %v2080_v7 }
  0x58   : > { %1665 = vmatmul.mubr.msk.f32.gmra.mrb[32].mxu0 %vm274_vm0, %v240_v3 }
  0x59   : > { %543 = vmatprep.mubr.f32.mxu0 %v2080_v7 }
  0x5c   : > { %1666 = vmatmul.mubr.msk.f32.gmra.mrb[34].mxu0 %vm274_vm0, %v241_v4 }
  0x5d   : > { %549 = vmatprep.mubr.f32.mxu0 %v2080_v7 }
  0x60   : > { %1667 = vmatmul.mubr.msk.f32.gmra.mrb[36].mxu0 %vm274_vm0, %v242_v5 }
  0x61   : > { %555 = vmatprep.mubr.f32.mxu0 %v2080_v7 }
  0x64   : > { %1668 = vmatmul.mubr.msk.f32.gmra.mrb[38].mxu0 %vm274_vm0, %v243_v6 }
  0x65   : > { %561 = vmatprep.mubr.f32.mxu0 %v2080_v7 }
  0x68   : > { %1669 = vmatmul.mubr.msk.f32.gmra.mrb[40].mxu0 %vm274_vm0, %v244_v8 }
  0x69   : > { %567 = vmatprep.mubr.f32.mxu0 %v2080_v7 }
  0x6c   : > { %1670 = vmatmul.mubr.msk.f32.gmra.mrb[42].mxu0 %vm274_vm0, %v245_v9 }
  0x6d   : > { %573 = vmatprep.mubr.f32.mxu0 %v2080_v7 }
  0x70   : > { %1671 = vmatmul.mubr.msk.f32.gmra.mrb[44].mxu0 %vm274_vm0, %v246_v13 }
  0x71   : > { %579 = vmatprep.mubr.f32.mxu0 %v2080_v7 }
  0x74   : > { %1672 = vmatmul.mubr.msk.f32.gmra.mrb[46].mxu0 %vm274_vm0, %v247_v17 }
  0x75   : > { %585 = vmatprep.mubr.f32.mxu0 %v2080_v7 }
  0x78   : > { %1673 = vmatmul.mubr.msk.f32.gmra.mrb[48].mxu0 %vm274_vm0, %v248_v18 }
  0x79   : > { %591 = vmatprep.mubr.f32.mxu0 %v2080_v7 }
  0x7c   : > { %1674 = vmatmul.mubr.msk.f32.gmra.mrb[50].mxu0 %vm274_vm0, %v249_v19 }
  0xeb   : > { %v443_v20 = vpop.f32.mrb[0].mxu0  ;;  %v599_v21 = vpop.f32.mrb[0].mxu1 }
  0xec   : > { %v646_v22 = vmul.f32 %v443_v20, %v443_v20  ;;  %v445_v23 = vpop.f32.mrb[1].mxu0  ;;  %v672_v24 = vmul.f32 %v599_v21, %v599_v21  ;;  %v601_v25 = vpop.f32.mrb[1].mxu1 }
  0xed   : > { %v680_v26 = vmul.f32 %v445_v23, %v445_v23  ;;  %v706_v27 = vmul.f32 %v601_v25, %v601_v25 }
  0xef   : > { %v2333_v28 = vadd.f32 %v680_v26, %v646_v22  ;;  %v449_v29 = vpop.f32.mrb[2].mxu0  ;;  %v2335_v30 = vadd.f32 %v706_v27, %v672_v24  ;;  %v605_v31 = vpop.f32.mrb[2].mxu1 }
  0xf0   : > { %v647_v32 = vmul.f32 %v449_v29, %v449_v29  ;;  %v451_v33 = vpop.f32.mrb[3].mxu0  ;;  %v673_v7 = vmul.f32 %v605_v31, %v605_v31  ;;  %v607_v34 = vpop.f32.mrb[3].mxu1 }
  0xf1   : > { %v681_v35 = vmul.f32 %v451_v33, %v451_v33  ;;  %1774 = vmatprep.mubr.f32.mxu1 %v2333_v28  ;;  %v707_v36 = vmul.f32 %v607_v34, %v607_v34  ;;  %v884_v24 = vadd.f32 1e-07, %v2335_v30  ;;  %v812_v26 = vmul.f32 %v2333_v28, %v2333_v28 }
  0xf3   : > { %v2338_v37 = vadd.f32 %v681_v35, %v647_v32  ;;  %v455_v38 = vpop.f32.mrb[4].mxu0  ;;  %v611_v39 = vpop.f32.mrb[4].mxu1  ;;  %v2340_v42 = vadd.f32 %v707_v36, %v673_v7  ;;  %1918 = vrcp.f32 %v884_v24 }
  0xf4   : > { %v648_v40 = vmul.f32 %v455_v38, %v455_v38  ;;  %v457_v41 = vpop.f32.mrb[5].mxu0  ;;  %v674_v43 = vmul.f32 %v611_v39, %v611_v39  ;;  %v613_v44 = vpop.f32.mrb[5].mxu1 }
  0xf5   : > { %v682_v45 = vmul.f32 %v457_v41, %v457_v41  ;;  %1775 = vmatmul.mubr.f32.vlgmr.msra.gmra.mrb[16].mxu1 %v2338_v37  ;;  %v708_v46 = vmul.f32 %v613_v44, %v613_v44  ;;  %v813_v17 = vmul.f32 %v2338_v37, %v2338_v37  ;;  %v885_v44 = vadd.f32 1e-07, %v2340_v42 }
  0xf7   : > { %v2343_v47 = vadd.f32 %v682_v45, %v648_v40  ;;  %v461_v48 = vpop.f32.mrb[6].mxu0  ;;  %v2345_v49 = vadd.f32 %v708_v46, %v674_v43  ;;  %v617_v50 = vpop.f32.mrb[6].mxu1  ;;  %v829_v7 = vadd.f32 %v813_v17, %v812_v26  ;;  %1920 = vrcp.f32 %v885_v44 }
  0xf8   : > { %v649_v51 = vmul.f32 %v461_v48, %v461_v48  ;;  %v463_v52 = vpop.f32.mrb[7].mxu0  ;;  %v675_v53 = vmul.f32 %v617_v50, %v617_v50  ;;  %v619_v54 = vpop.f32.mrb[7].mxu1 }
  0xf9   : > { %v683_v55 = vmul.f32 %v463_v52, %v463_v52  ;;  %1777 = vmatprep.mubr.f32.mxu1 %v2343_v47  ;;  %v709_v56 = vmul.f32 %v619_v54, %v619_v54  ;;  %v814_v27 = vmul.f32 %v2343_v47, %v2343_v47 }
  0xfb   : > { %v2348_v57 = vadd.f32 %v683_v55, %v649_v51  ;;  %v467_v58 = vpop.f32.mrb[8].mxu0  ;;  %v623_v59 = vpop.f32.mrb[8].mxu1  ;;  %v2350_v62 = vadd.f32 %v709_v56, %v675_v53  ;;  %v830_v41 = vadd.f32 %v829_v7, %v814_v27 }
  0xfc   : > { %v650_v60 = vmul.f32 %v467_v58, %v467_v58  ;;  %v469_v61 = vpop.f32.mrb[9].mxu0  ;;  %v676_v63 = vmul.f32 %v623_v59, %v623_v59  ;;  %v625_v0 = vpop.f32.mrb[9].mxu1 }
  0xfd   : > { %v684_v1 = vmul.f32 %v469_v61, %v469_v61  ;;  %1778 = vmatmul.mubr.f32.gmra.mrb[18].mxu1 %v2348_v57  ;;  %v710_v2 = vmul.f32 %v625_v0, %v625_v0  ;;  %v815_v34 = vmul.f32 %v2348_v57, %v2348_v57 }
  0xff   : > { %v2353_v3 = vadd.f32 %v684_v1, %v650_v60  ;;  %v473_v4 = vpop.f32.mrb[10].mxu0  ;;  %v2355_v5 = vadd.f32 %v710_v2, %v676_v63  ;;  %v629_v6 = vpop.f32.mrb[10].mxu1  ;;  %v831_v50 = vadd.f32 %v830_v41, %v815_v34  ;;  %v886_v60 = vadd.f32 1e-07, %v2345_v49 }
 0x100   : > { %v651_v8 = vmul.f32 %v473_v4, %v473_v4  ;;  %v475_v9 = vpop.f32.mrb[11].mxu0  ;;  %v677_v10 = vmul.f32 %v629_v6, %v629_v6  ;;  %v631_v11 = vpop.f32.mrb[11].mxu1 }
 0x101   : > { %v685_v12 = vmul.f32 %v475_v9, %v475_v9  ;;  %1780 = vmatprep.mubr.f32.mxu1 %v2353_v3  ;;  %v711_v13 = vmul.f32 %v631_v11, %v631_v11  ;;  %v816_v43 = vmul.f32 %v2353_v3, %v2353_v3  ;;  %v1919_v9 = vpop.eup %1918  ;;  %1922 = vrcp.f32 %v886_v60 }
 0x102   : > { %v1921_v27 = vpop.eup %1920 }
 0x103   : > { %v2358_v14 = vadd.f32 %v685_v12, %v651_v8  ;;  %v479_v15 = vpop.f32.mrb[12].mxu0  ;;  %v635_v16 = vpop.f32.mrb[12].mxu1  ;;  %v2362_v20 = vadd.f32 %v711_v13, %v677_v10  ;;  %v832_v56 = vadd.f32 %v831_v50, %v816_v43  ;;  %v887_v8 = vadd.f32 1e-07, %v2350_v62 }
 0x104   : > { %v652_v18 = vmul.f32 %v479_v15, %v479_v15  ;;  %v481_v19 = vpop.f32.mrb[13].mxu0  ;;  %v678_v21 = vmul.f32 %v635_v16, %v635_v16  ;;  %v637_v22 = vpop.f32.mrb[13].mxu1 }
 0x105   : > { %v686_v23 = vmul.f32 %v481_v19, %v481_v19  ;;  %1781 = vmatmul.mubr.f32.gmra.mrb[20].mxu1 %v2358_v14  ;;  %v712_v25 = vmul.f32 %v637_v22, %v637_v22  ;;  %v817_v51 = vmul.f32 %v2358_v14, %v2358_v14  ;;  %1924 = vrcp.f32 %v887_v8 }
 0x106   : > { %v888_v22 = vadd.f32 1e-07, %v2355_v5  ;;  %v889_v7 = vadd.f32 1e-07, %v2362_v20 }
 0x107   : > { %v2370_v29 = vadd.f32 %v686_v23, %v652_v18  ;;  %v485_v31 = vpop.f32.mrb[14].mxu0  ;;  %v2372_v32 = vadd.f32 %v712_v25, %v678_v21  ;;  %v641_v33 = vpop.f32.mrb[14].mxu1  ;;  %v833_v63 = vadd.f32 %v832_v56, %v817_v51 }
 0x108   : > { %v653_v35 = vmul.f32 %v485_v31, %v485_v31  ;;  %v487_v36 = vpop.f32.mrb[15].mxu0  ;;  %v679_v38 = vmul.f32 %v641_v33, %v641_v33  ;;  %v643_v39 = vpop.f32.mrb[15].mxu1  ;;  %1926 = vrcp.f32 %v888_v22 }
 0x109   : > { %v687_v40 = vmul.f32 %v487_v36, %v487_v36  ;;  %1783 = vmatprep.mubr.f32.mxu1 %v2370_v29  ;;  %v713_v45 = vmul.f32 %v643_v39, %v643_v39  ;;  %v818_v58 = vmul.f32 %v2370_v29, %v2370_v29  ;;  %1928 = vrcp.f32 %v889_v7 }
 0x10a   : > { %v890_v56 = vadd.f32 1e-07, %v2372_v32 }
 0x10b   : > { %v2380_v46 = vadd.f32 %v687_v40, %v653_v35  ;;  %v491_v48 = vpop.f32.mrb[16].mxu0  ;;  %v2384_v54 = vadd.f32 %v713_v45, %v679_v38  ;;  %v834_v6 = vadd.f32 %v833_v63, %v818_v58  ;;  %v1923_v50 = vpop.eup %1922 }
 0x10c   : > { %v654_v52 = vmul.f32 %v491_v48, %v491_v48  ;;  %v493_v53 = vpop.f32.mrb[17].mxu0  ;;  %1930 = vrcp.f32 %v890_v56 }
 0x10d   : > { %v688_v55 = vmul.f32 %v493_v53, %v493_v53  ;;  %1784 = vmatmul.mubr.f32.gmra.mrb[22].mxu1 %v2380_v46  ;;  %v819_v0 = vmul.f32 %v2380_v46, %v2380_v46 }
 0x10f   : > { %v2389_v59 = vadd.f32 %v688_v55, %v654_v52  ;;  %v497_v61 = vpop.f32.mrb[18].mxu0  ;;  %v835_v13 = vadd.f32 %v834_v6, %v819_v0 }
 0x110   : > { %v655_v1 = vmul.f32 %v497_v61, %v497_v61  ;;  %v499_v2 = vpop.f32.mrb[19].mxu0  ;;  %v1925_v61 = vpop.eup %1924 }
 0x111   : > { %v689_v4 = vmul.f32 %v499_v2, %v499_v2  ;;  %1786 = vmatprep.mubr.f32.mxu1 %v2389_v59  ;;  %v820_v10 = vmul.f32 %v2389_v59, %v2389_v59 }
 0x113   : > { %v723_v11 = vadd.f32 %v689_v4, %v655_v1  ;;  %v503_v12 = vpop.f32.mrb[20].mxu0  ;;  %v836_v23 = vadd.f32 %v835_v13, %v820_v10  ;;  %v891_v10 = vadd.f32 1e-07, %v2384_v54 }
 0x114   : > { %v656_v15 = vmul.f32 %v503_v12, %v503_v12  ;;  %v505_v16 = vpop.f32.mrb[21].mxu0 }
 0x115   : > { %v2399_v17 = vsub.f32 %v723_v11, %v2335_v30  ;;  %v821_v18 = vmul.f32 %v723_v11, %v723_v11  ;;  %v867_v19 = vadd.f32 1e-07, %v723_v11  ;;  %v690_v21 = vmul.f32 %v505_v16, %v505_v16  ;;  %1787 = vmatmul.mubr.f32.gmra.mrb[24].mxu1 %v723_v11  ;;  %v1927_v16 = vpop.eup %1926 }
 0x116   : > { %1932 = vrcp.f32 %v891_v10 }
 0x117   : > { %v2402_v24 = vmul.f32 %v1919_v9, %v867_v19  ;;  %v724_v25 = vadd.f32 %v690_v21, %v656_v15  ;;  %v509_v26 = vpop.f32.mrb[22].mxu0  ;;  %v837_v34 = vadd.f32 %v836_v23, %v821_v18 }
 0x118   : > { %v657_v31 = vmul.f32 %v509_v26, %v509_v26  ;;  %v511_v33 = vpop.f32.mrb[23].mxu0  ;;  %v1929_v26 = vpop.eup %1928 }
 0x119   : > { %v2406_v35 = vsub.f32 %v724_v25, %v2340_v42  ;;  %v822_v36 = vmul.f32 %v724_v25, %v724_v25  ;;  %v868_v38 = vadd.f32 1e-07, %v724_v25  ;;  %1789 = vmatprep.mubr.f32.mxu1 %v724_v25  ;;  %v691_v39 = vmul.f32 %v511_v33, %v511_v33 }
 0x11b   : > { %v2408_v40 = vmul.f32 %v1921_v27, %v868_v38  ;;  %v515_v41 = vpop.f32.mrb[24].mxu0  ;;  %v838_v43 = vadd.f32 %v837_v34, %v822_v36  ;;  %v725_v44 = vadd.f32 %v691_v39, %v657_v31 }
 0x11c   : > { %v658_v45 = vmul.f32 %v515_v41, %v515_v41  ;;  %v517_v48 = vpop.f32.mrb[25].mxu0 }
 0x11d   : > { %v692_v51 = vmul.f32 %v517_v48, %v517_v48  ;;  %v2411_v52 = vsub.f32 %v725_v44, %v2345_v49  ;;  %v823_v53 = vmul.f32 %v725_v44, %v725_v44  ;;  %v869_v55 = vadd.f32 1e-07, %v725_v44  ;;  %1790 = vmatmul.mubr.f32.gmra.mrb[26].mxu1 %v725_v44 }
 0x11f   : > { %v726_v58 = vadd.f32 %v692_v51, %v658_v45  ;;  %v521_v60 = vpop.f32.mrb[26].mxu0  ;;  %v2414_v63 = vmul.f32 %v1923_v50, %v869_v55  ;;  %v839_v2 = vadd.f32 %v838_v43, %v823_v53  ;;  %v1931_v51 = vpop.eup %1930 }
 0x120   : > { %v659_v0 = vmul.f32 %v521_v60, %v521_v60  ;;  %v523_v1 = vpop.f32.mrb[27].mxu0 }
 0x121   : > { %v2417_v4 = vsub.f32 %v726_v58, %v2350_v62  ;;  %v870_v6 = vadd.f32 1e-07, %v726_v58  ;;  %v693_v8 = vmul.f32 %v523_v1, %v523_v1  ;;  %1792 = vmatprep.mubr.f32.mxu1 %v726_v58  ;;  %v824_v9 = vmul.f32 %v726_v58, %v726_v58 }
 0x123   : > { %v2420_v11 = vmul.f32 %v1925_v61, %v870_v6  ;;  %v727_v12 = vadd.f32 %v693_v8, %v659_v0  ;;  %v527_v13 = vpop.f32.mrb[28].mxu0  ;;  %v840_v15 = vadd.f32 %v839_v2, %v824_v9  ;;  %v1933_v8 = vpop.eup %1932 }
 0x124   : > { %v660_v18 = vmul.f32 %v527_v13, %v527_v13  ;;  %v529_v19 = vpop.f32.mrb[29].mxu0 }
 0x125   : > { %v871_v21 = vadd.f32 1e-07, %v727_v12  ;;  %v694_v22 = vmul.f32 %v529_v19, %v529_v19  ;;  %1793 = vmatmul.mubr.f32.gmra.mrb[28].mxu1 %v727_v12  ;;  %v825_v23 = vmul.f32 %v727_v12, %v727_v12  ;;  %v2423_v25 = vsub.f32 %v727_v12, %v2355_v5 }
 0x127   : > { %v728_v27 = vadd.f32 %v694_v22, %v660_v18  ;;  %v533_v31 = vpop.f32.mrb[30].mxu0  ;;  %v841_v33 = vadd.f32 %v840_v15, %v825_v23  ;;  %v2425_v7 = vmul.f32 %v1927_v16, %v871_v21 }
 0x128   : > { %v661_v34 = vmul.f32 %v533_v31, %v533_v31  ;;  %v535_v36 = vpop.f32.mrb[31].mxu0 }
 0x129   : > { %v872_v38 = vadd.f32 1e-07, %v728_v27  ;;  %v695_v39 = vmul.f32 %v535_v36, %v535_v36  ;;  %1795 = vmatprep.mubr.f32.mxu1 %v728_v27  ;;  %v826_v41 = vmul.f32 %v728_v27, %v728_v27  ;;  %v2428_v43 = vsub.f32 %v728_v27, %v2362_v20 }
 0x12b   : > { %v729_v44 = vadd.f32 %v695_v39, %v661_v34  ;;  %v539_v45 = vpop.f32.mrb[32].mxu0  ;;  %v842_v48 = vadd.f32 %v841_v33, %v826_v41  ;;  %v2430_v50 = vmul.f32 %v1929_v26, %v872_v38 }
 0x12c   : > { %v662_v53 = vmul.f32 %v539_v45, %v539_v45  ;;  %v541_v55 = vpop.f32.mrb[33].mxu0 }
 0x12d   : > { %v696_v56 = vmul.f32 %v541_v55, %v541_v55  ;;  %1796 = vmatmul.mubr.f32.gmra.mrb[30].mxu1 %v729_v44  ;;  %v827_v58 = vmul.f32 %v729_v44, %v729_v44  ;;  %v2433_v60 = vsub.f32 %v729_v44, %v2372_v32  ;;  %v873_v61 = vadd.f32 1e-07, %v729_v44 }
 0x12f   : > { %v730_v0 = vadd.f32 %v696_v56, %v662_v53  ;;  %v545_v1 = vpop.f32.mrb[34].mxu0  ;;  %v843_v2 = vadd.f32 %v842_v48, %v827_v58  ;;  %v2435_v6 = vmul.f32 %v1931_v51, %v873_v61 }
 0x130   : > { %v663_v9 = vmul.f32 %v545_v1, %v545_v1  ;;  %v547_v10 = vpop.f32.mrb[35].mxu0 }
 0x131   : > { %v697_v12 = vmul.f32 %v547_v10, %v547_v10  ;;  %1798 = vmatprep.mubr.f32.mxu1 %v730_v0  ;;  %v828_v13 = vmul.f32 %v730_v0, %v730_v0  ;;  %v2438_v15 = vsub.f32 %v730_v0, %v2384_v54  ;;  %v874_v16 = vadd.f32 1e-07, %v730_v0 }
 0x133   : > { %v731_v18 = vadd.f32 %v697_v12, %v663_v9  ;;  %v551_v19 = vpop.f32.mrb[36].mxu0  ;;  %v844_v21 = vadd.f32 %v843_v2, %v828_v13  ;;  %v2440_v22 = vmul.f32 %v1933_v8, %v874_v16  ;;  %v858_v12 = vadd.f32 1e-07, %v2333_v28 }
 0x134   : > { %v664_v23 = vmul.f32 %v551_v19, %v551_v19  ;;  %v553_v26 = vpop.f32.mrb[37].mxu0 }
 0x135   : > { %v875_v27 = vadd.f32 1e-07, %v731_v18  ;;  %v698_v31 = vmul.f32 %v553_v26, %v553_v26  ;;  %845 = vadd.xlane.f32.xlu0 %v844_v21  ;;  %1799 = vmatmul.mubr.f32.gmra.mrb[32].mxu1 %v731_v18  ;;  %v748_v33 = vsub.f32 %v2333_v28, %v731_v18 }
 0x137   : > { %1934 = vrcp.f32 %v875_v27  ;;  %v732_v34 = vadd.f32 %v698_v31, %v664_v23  ;;  %v557_v36 = vpop.f32.mrb[38].mxu0  ;;  %v766_v48 = vmul.f32 %v748_v33, %v748_v33 }
 0x138   : > { %v665_v38 = vmul.f32 %v557_v36, %v557_v36  ;;  %v559_v39 = vpop.f32.mrb[39].mxu0  ;;  %v859_v36 = vadd.f32 1e-07, %v2338_v37 }
 0x139   : > { %v749_v41 = vsub.f32 %v2338_v37, %v732_v34  ;;  %v876_v44 = vadd.f32 1e-07, %v732_v34  ;;  %v699_v45 = vmul.f32 %v559_v39, %v559_v39  ;;  %1801 = vmatprep.mubr.f32.mxu1 %v732_v34 }
 0x13b   : > { %v767_v51 = vmul.f32 %v749_v41, %v749_v41  ;;  %1936 = vrcp.f32 %v876_v44  ;;  %v733_v53 = vadd.f32 %v699_v45, %v665_v38  ;;  %v563_v55 = vpop.f32.mrb[40].mxu0 }
 0x13c   : > { %v666_v56 = vmul.f32 %v563_v55, %v563_v55  ;;  %v565_v58 = vpop.f32.mrb[41].mxu0 }
 0x13d   : > { %v783_v61 = vadd.f32 %v767_v51, %v766_v48  ;;  %v750_v0 = vsub.f32 %v2343_v47, %v733_v53  ;;  %v877_v1 = vadd.f32 1e-07, %v733_v53  ;;  %v700_v2 = vmul.f32 %v565_v58, %v565_v58  ;;  %1802 = vmatmul.mubr.f32.gmra.mrb[34].mxu1 %v733_v53 }
 0x13e   : > { %v860_v58 = vadd.f32 1e-07, %v2343_v47 }
 0x13f   : > { %v768_v8 = vmul.f32 %v750_v0, %v750_v0  ;;  %1938 = vrcp.f32 %v877_v1  ;;  %v734_v9 = vadd.f32 %v700_v2, %v666_v56  ;;  %v569_v10 = vpop.f32.mrb[42].mxu0 }
 0x140   : > { %v667_v13 = vmul.f32 %v569_v10, %v569_v10  ;;  %v571_v16 = vpop.f32.mrb[43].mxu0 }
 0x141   : > { %v1935_v18 = vpop.eup %1934  ;;  %v784_v19 = vadd.f32 %v783_v61, %v768_v8  ;;  %v751_v21 = vsub.f32 %v2348_v57, %v734_v9  ;;  %v878_v23 = vadd.f32 1e-07, %v734_v9  ;;  %v701_v26 = vmul.f32 %v571_v16, %v571_v16  ;;  %1804 = vmatprep.mubr.f32.mxu1 %v734_v9 }
 0x142   : > { %v893_v27 = vmul.f32 %v1935_v18, %v858_v12  ;;  %v861_v18 = vadd.f32 1e-07, %v2348_v57 }
 0x143   : > { %v769_v31 = vmul.f32 %v751_v21, %v751_v21  ;;  %1940 = vrcp.f32 %v878_v23  ;;  %v735_v33 = vadd.f32 %v701_v26, %v667_v13  ;;  %v575_v34 = vpop.f32.mrb[44].mxu0 }
 0x144   : > { %1942 = vlog2.f32 %v893_v27  ;;  %v668_v38 = vmul.f32 %v575_v34, %v575_v34  ;;  %v577_v39 = vpop.f32.mrb[45].mxu0 }
 0x145   : > { %v1937_v28 = vpop.eup %1936  ;;  %v785_v41 = vadd.f32 %v784_v19, %v769_v31  ;;  %v752_v44 = vsub.f32 %v2353_v3, %v735_v33  ;;  %v879_v45 = vadd.f32 1e-07, %v735_v33  ;;  %v702_v48 = vmul.f32 %v577_v39, %v577_v39  ;;  %1805 = vmatmul.mubr.f32.gmra.mrb[36].mxu1 %v735_v33 }
 0x146   : > { %v895_v51 = vmul.f32 %v1937_v28, %v859_v36  ;;  %v862_v28 = vadd.f32 1e-07, %v2353_v3 }
 0x147   : > { %v770_v53 = vmul.f32 %v752_v44, %v752_v44  ;;  %1944 = vrcp.f32 %v879_v45  ;;  %v736_v55 = vadd.f32 %v702_v48, %v668_v38  ;;  %v581_v56 = vpop.f32.mrb[46].mxu0 }
 0x148   : > { %1946 = vlog2.f32 %v895_v51  ;;  %v669_v61 = vmul.f32 %v581_v56, %v581_v56  ;;  %v583_v37 = vpop.f32.mrb[47].mxu0 }
 0x149   : > { %v1939_v0 = vpop.eup %1938  ;;  %v786_v1 = vadd.f32 %v785_v41, %v770_v53  ;;  %v753_v2 = vsub.f32 %v2358_v14, %v736_v55  ;;  %v880_v8 = vadd.f32 1e-07, %v736_v55  ;;  %v703_v9 = vmul.f32 %v583_v37, %v583_v37  ;;  %1807 = vmatprep.mubr.f32.mxu1 %v736_v55 }
 0x14a   : > { %v897_v10 = vmul.f32 %v1939_v0, %v860_v58  ;;  %v863_v0 = vadd.f32 1e-07, %v2358_v14 }
 0x14b   : > { %v771_v12 = vmul.f32 %v753_v2, %v753_v2  ;;  %1948 = vrcp.f32 %v880_v8  ;;  %v737_v13 = vadd.f32 %v703_v9, %v669_v61  ;;  %v587_v16 = vpop.f32.mrb[48].mxu0 }
 0x14c   : > { %1950 = vlog2.f32 %v897_v10  ;;  %v670_v19 = vmul.f32 %v587_v16, %v587_v16  ;;  %v589_v47 = vpop.f32.mrb[49].mxu0 }
 0x14d   : > { %v1941_v21 = vpop.eup %1940  ;;  %v787_v23 = vadd.f32 %v786_v1, %v771_v12  ;;  %v754_v26 = vsub.f32 %v2370_v29, %v737_v13  ;;  %v881_v27 = vadd.f32 1e-07, %v737_v13  ;;  %v704_v31 = vmul.f32 %v589_v47, %v589_v47  ;;  %1808 = vmatmul.mubr.f32.gmra.mrb[38].mxu1 %v737_v13 }
 0x14e   : > { %v1943_v33 = vpop.eup %1942  ;;  %v899_v34 = vmul.f32 %v1941_v21, %v861_v18  ;;  %v864_v47 = vadd.f32 1e-07, %v2370_v29  ;;  %v776_v29 = vmul.f32 %v2406_v35, %v2406_v35 }
 0x14f   : > { %v772_v36 = vmul.f32 %v754_v26, %v754_v26  ;;  %1952 = vrcp.f32 %v881_v27  ;;  %v738_v38 = vadd.f32 %v704_v31, %v670_v19  ;;  %v593_v39 = vpop.f32.mrb[50].mxu0  ;;  %v927_v45 = vmul.f32 0.6931472, %v1943_v33 }
 0x150   : > { %1954 = vlog2.f32 %v899_v34  ;;  %v671_v57 = vmul.f32 %v593_v39, %v593_v39  ;;  %v595_v41 = vpop.f32.mrb[51].mxu0  ;;  %v775_v27 = vmul.f32 %v2399_v17, %v2399_v17  ;;  %v777_v17 = vmul.f32 %v2411_v52, %v2411_v52 }
 0x151   : > { %v1945_v44 = vpop.eup %1944  ;;  %v788_v48 = vadd.f32 %v787_v23, %v772_v36  ;;  %v755_v51 = vsub.f32 %v2380_v46, %v738_v38  ;;  %v882_v53 = vadd.f32 1e-07, %v738_v38  ;;  %1810 = vmatprep.mubr.f32.mxu1 %v738_v38  ;;  %v705_v58 = vmul.f32 %v595_v41, %v595_v41 }
 0x152   : > { %v1947_v55 = vpop.eup %1946  ;;  %v901_v56 = vmul.f32 %v1945_v44, %v862_v28  ;;  %v960_v2 = vand.u32 2147483647, %v927_v45  ;;  %v779_v52 = vmul.f32 %v2423_v25, %v2423_v25  ;;  %v781_v25 = vmul.f32 %v2433_v60, %v2433_v60 }
 0x153   : > { %v929_v61 = vmul.f32 0.6931472, %v1947_v55  ;;  %v773_v37 = vmul.f32 %v755_v51, %v755_v51  ;;  %1956 = vrcp.f32 %v882_v53  ;;  %v739_v3 = vadd.f32 %v705_v58, %v671_v57 }
 0x154   : > { %1958 = vlog2.f32 %v901_v56  ;;  %v866_v51 = vadd.f32 1e-07, %v2389_v59  ;;  %v780_v56 = vmul.f32 %v2428_v43, %v2428_v43 }
 0x155   : > { %v1949_v1 = vpop.eup %1948  ;;  %v961_v8 = vand.u32 2147483647, %v929_v61  ;;  %v789_v9 = vadd.f32 %v788_v48, %v773_v37  ;;  %v756_v13 = vsub.f32 %v2389_v59, %v739_v3  ;;  %v883_v16 = vadd.f32 1e-07, %v739_v3  ;;  %1811 = vmatmul.mubr.f32.gmra.mrb[40].mxu1 %v739_v3 }
 0x156   : > { %v1951_v10 = vpop.eup %1950  ;;  %v903_v12 = vmul.f32 %v1949_v1, %v863_v0  ;;  %1813 = vmatprep.mubr.f32.mxu1 %v2335_v30  ;;  %v865_v30 = vadd.f32 1e-07, %v2380_v46 }
 0x157   : > { %v977_v18 = vadd.f32 %v961_v8, %v960_v2  ;;  %v931_v19 = vmul.f32 0.6931472, %v1951_v10  ;;  %v774_v14 = vmul.f32 %v756_v13, %v756_v13 }
 0x158   : > { %1960 = vlog2.f32 %v903_v12 }
 0x159   : > { %v1953_v21 = vpop.eup %1952  ;;  %v962_v23 = vand.u32 2147483647, %v931_v19  ;;  %1962 = vrcp.f32 %v883_v16  ;;  %v790_v33 = vadd.f32 %v789_v9, %v774_v14  ;;  %1814 = vmatmul.mubr.f32.gmra.mrb[42].mxu1 %v2340_v42 }
 0x15a   : > { %v1955_v26 = vpop.eup %1954  ;;  %v905_v31 = vmul.f32 %v1953_v21, %v864_v47  ;;  %1816 = vmatprep.mubr.f32.mxu1 %v2345_v49  ;;  %v778_v49 = vmul.f32 %v2417_v4, %v2417_v4 }
 0x15b   : > { %v978_v34 = vadd.f32 %v977_v18, %v962_v23  ;;  %v933_v36 = vmul.f32 0.6931472, %v1955_v26  ;;  %v791_v38 = vadd.f32 %v790_v33, %v775_v27 }
 0x15c   : > { %1964 = vlog2.f32 %v905_v31 }
 0x15d   : > { %v1957_v39 = vpop.eup %1956  ;;  %v963_v28 = vand.u32 2147483647, %v933_v36  ;;  %v792_v44 = vadd.f32 %v791_v38, %v776_v29  ;;  %1817 = vmatmul.mubr.f32.gmra.mrb[44].mxu1 %v2350_v62 }
 0x15e   : > { %v1959_v57 = vpop.eup %1958  ;;  %v907_v41 = vmul.f32 %v1957_v39, %v865_v30  ;;  %1819 = vmatprep.mubr.f32.mxu1 %v2355_v5 }
 0x15f   : > { %v979_v42 = vadd.f32 %v978_v34, %v963_v28  ;;  %v935_v45 = vmul.f32 0.6931472, %v1959_v57  ;;  %v793_v46 = vadd.f32 %v792_v44, %v777_v17 }
 0x160   : > { %1966 = vlog2.f32 %v907_v41 }
 0x161   : > { %v964_v35 = vand.u32 2147483647, %v935_v45  ;;  %1820 = vmatmul.mubr.f32.gmra.mrb[46].mxu1 %v2362_v20  ;;  %v794_v53 = vadd.f32 %v793_v46, %v778_v49  ;;  %1968 = vlog2.f32 %v2402_v24  ;;  %v782_v24 = vmul.f32 %v2438_v15, %v2438_v15 }
 0x162   : > { %v1961_v48 = vpop.eup %1960  ;;  %1822 = vmatprep.mubr.f32.mxu1 %v2372_v32  ;;  %1970 = vlog2.f32 %v2408_v40 }
 0x163   : > { %v1963_v62 = vpop.eup %1962  ;;  %v937_v55 = vmul.f32 0.6931472, %v1961_v48  ;;  %v980_v5 = vadd.f32 %v979_v42, %v964_v35  ;;  %v795_v58 = vadd.f32 %v794_v53, %v779_v52 }
 0x164   : > { %v909_v4 = vmul.f32 %v1963_v62, %v866_v51 }
 0x165   : > { %v965_v59 = vand.u32 2147483647, %v937_v55  ;;  %1823 = vmatmul.mubr.f32.gmra.mrb[48].mxu1 %v2384_v54  ;;  %v796_v61 = vadd.f32 %v795_v58, %v780_v56 }
 0x166   : > { %v1965_v20 = vpop.eup %1964  ;;  %1972 = vlog2.f32 %v909_v4 }
 0x167   : > { %v939_v32 = vmul.f32 0.6931472, %v1965_v20  ;;  %v981_v37 = vadd.f32 %v980_v5, %v965_v59  ;;  %1974 = vlog2.f32 %v2414_v63  ;;  %v797_v43 = vadd.f32 %v796_v61, %v781_v25 }
 0x168   : > { %1976 = vlog2.f32 %v2420_v11 }
 0x169   : > { %v966_v0 = vand.u32 2147483647, %v939_v32  ;;  %v798_v40 = vadd.f32 %v797_v43, %v782_v24  ;;  %1978 = vlog2.f32 %v2425_v7 }
 0x16a   : > { %v1967_v3 = vpop.eup %1966  ;;  %1980 = vlog2.f32 %v2430_v50 }
 0x16b   : > { %v941_v1 = vmul.f32 0.6931472, %v1967_v3  ;;  %v982_v2 = vadd.f32 %v981_v37, %v966_v0  ;;  %799 = vadd.xlane.f32.xlu0 %v798_v40  ;;  %v1969_v60 = vpop.eup %1968  ;;  %1982 = vlog2.f32 %v2435_v6 }
 0x16c   : > { %v1971_v8 = vpop.eup %1970  ;;  %v945_v15 = vmul.f32 0.6931472, %v1969_v60  ;;  %1984 = vlog2.f32 %v2440_v22 }
 0x16d   : > { %v967_v54 = vand.u32 2147483647, %v941_v1  ;;  %v947_v11 = vmul.f32 0.6931472, %v1971_v8 }
 0x16e   : > { %v969_v19 = vand.u32 2147483647, %v945_v15 }
 0x16f   : > { %v983_v63 = vadd.f32 %v982_v2, %v967_v54  ;;  %v970_v21 = vand.u32 2147483647, %v947_v11 }
 0x170   : > { %v1973_v9 = vpop.eup %1972 }
 0x171   : > { %v943_v10 = vmul.f32 0.6931472, %v1973_v9  ;;  %v1975_v12 = vpop.eup %1974 }
 0x172   : > { %v1977_v16 = vpop.eup %1976  ;;  %v949_v18 = vmul.f32 0.6931472, %v1975_v12 }
 0x173   : > { %v968_v13 = vand.u32 2147483647, %v943_v10  ;;  %v1979_v47 = vpop.eup %1978  ;;  %v951_v14 = vmul.f32 0.6931472, %v1977_v16 }
 0x174   : > { %v1981_v23 = vpop.eup %1980  ;;  %v953_v26 = vmul.f32 0.6931472, %v1979_v47  ;;  %v971_v27 = vand.u32 2147483647, %v949_v18 }
 0x175   : > { %v984_v7 = vadd.f32 %v983_v63, %v968_v13  ;;  %v1983_v6 = vpop.eup %1982  ;;  %v955_v33 = vmul.f32 0.6931472, %v1981_v23  ;;  %v972_v34 = vand.u32 2147483647, %v951_v14 }
 0x176   : > { %v1985_v22 = vpop.eup %1984  ;;  %v957_v30 = vmul.f32 0.6931472, %v1983_v6  ;;  %v973_v29 = vand.u32 2147483647, %v953_v26 }
 0x177   : > { %v985_v50 = vadd.f32 %v984_v7, %v969_v19  ;;  %v959_v39 = vmul.f32 0.6931472, %v1985_v22  ;;  %v974_v28 = vand.u32 2147483647, %v955_v33 }
 0x178   : > { %v975_v17 = vand.u32 2147483647, %v957_v30 }
 0x179   : > { %v986_v31 = vadd.f32 %v985_v50, %v970_v21  ;;  %v976_v44 = vand.u32 2147483647, %v959_v39 }
 0x17b   : > { %v987_v36 = vadd.f32 %v986_v31, %v971_v27 }
 0x17d   : > { %v988_v38 = vadd.f32 %v987_v36, %v972_v34 }
 0x17f   : > { %v989_v57 = vadd.f32 %v988_v38, %v973_v29 }
 0x181   : > { %v990_v41 = vadd.f32 %v989_v57, %v974_v28 }
 0x183   : > { %v991_v42 = vadd.f32 %v990_v41, %v975_v17 }
 0x185   : > { %v992_v45 = vadd.f32 %v991_v42, %v976_v44 }
 0x187   : > { %993 = vadd.xlane.f32.xlu1 %v992_v45 }
 0x1c2   : > { %v846_v18 = vpop.xlane.xlu0 %845 }
 0x1c3   : > { %v847_v47 = vrot.slane %v846_v18, 4 }
 0x1c5   : > { %v848_v26 = vadd.f32 %v847_v47, %v846_v18 }
 0x1c7   : > { %v849_v36 = vrot.slane %v848_v26, 2 }
 0x1c8   : > { %v2493_v49 = vpop.f32.mrb[16].mxu1 }
 0x1c9   : > { %v1339_v46 = vmul.f32 %v2493_v49, %v2493_v49  ;;  %v2497_v35 = vpop.f32.mrb[17].mxu1  ;;  %v850_v41 = vadd.f32 %v849_v36, %v848_v26 }
 0x1ca   : > { %v1338_v48 = vmul.f32 %v2497_v35, %v2497_v35  ;;  %v1401_v18 = vadd.f32 1e-07, %v2497_v35 }
 0x1cb   : > { %v1356_v51 = vsel %vm1291_vm1, %v1339_v46, 0.0 }
 0x1cc   : > { %v1355_v52 = vsel %vm1291_vm1, %v1338_v48, 0.0 }
 0x1cd   : > { %v1357_v53 = vadd.f32 %v1356_v51, %v1355_v52  ;;  %v851_v52 = vrot.slane %v850_v41, 1 }
 0x1d0   : > { %v2503_v62 = vpop.f32.mrb[18].mxu1 }
 0x1d1   : > { %v2505_v55 = vpop.f32.mrb[19].mxu1  ;;  %v1341_v5 = vmul.f32 %v2503_v62, %v2503_v62 }
 0x1d2   : > { %v1340_v4 = vmul.f32 %v2505_v55, %v2505_v55 }
 0x1d3   : > { %v1360_v59 = vsel %vm1291_vm1, %v1341_v5, 0.0 }
 0x1d4   : > { %v1358_v56 = vsel %vm1291_vm1, %v1340_v4, 0.0 }
 0x1d5   : > { %v1359_v58 = vadd.f32 %v1358_v56, %v1357_v53 }
 0x1d7   : > { %v1361_v20 = vadd.f32 %v1360_v59, %v1359_v58  ;;  %v852_v59 = vadd.f32 %v851_v52, %v850_v41  ;;  %v1402_v52 = vadd.f32 1e-07, %v2493_v49 }
 0x1d8   : > { %v2513_v25 = vpop.f32.mrb[20].mxu1 }
 0x1d9   : > { %v2515_v61 = vpop.f32.mrb[21].mxu1  ;;  %v1343_v32 = vmul.f32 %v2513_v25, %v2513_v25 }
 0x1da   : > { %v1342_v37 = vmul.f32 %v2515_v61, %v2515_v61 }
 0x1db   : > { %v1364_v0 = vsel %vm1291_vm1, %v1343_v32, 0.0 }
 0x1dc   : > { %v1362_v24 = vsel %vm1291_vm1, %v1342_v37, 0.0 }
 0x1dd   : > { %v1363_v43 = vadd.f32 %v1362_v24, %v1361_v20 }
 0x1df   : > { %v1365_v3 = vadd.f32 %v1364_v0, %v1363_v43 }
 0x1e0   : > { %v2523_v40 = vpop.f32.mrb[22].mxu1 }
 0x1e1   : > { %v2525_v1 = vpop.f32.mrb[23].mxu1  ;;  %v1345_v2 = vmul.f32 %v2523_v40, %v2523_v40 }
 0x1e2   : > { %v1344_v54 = vmul.f32 %v2525_v1, %v2525_v1 }
 0x1e3   : > { %v1368_v63 = vsel %vm1291_vm1, %v1345_v2, 0.0 }
 0x1e4   : > { %v1366_v60 = vsel %vm1291_vm1, %v1344_v54, 0.0 }
 0x1e5   : > { %v1367_v8 = vadd.f32 %v1366_v60, %v1365_v3 }
 0x1e7   : > { %v1369_v9 = vadd.f32 %v1368_v63, %v1367_v8 }
 0x1e8   : > { %v2533_v15 = vpop.f32.mrb[24].mxu1 }
 0x1e9   : > { %v2535_v10 = vpop.f32.mrb[25].mxu1  ;;  %v1347_v12 = vmul.f32 %v2533_v15, %v2533_v15 }
 0x1ea   : > { %v1346_v11 = vmul.f32 %v2535_v10, %v2535_v10 }
 0x1eb   : > { %v1372_v19 = vsel %vm1291_vm1, %v1347_v12, 0.0 }
 0x1ec   : > { %v1370_v13 = vsel %vm1291_vm1, %v1346_v11, 0.0 }
 0x1ed   : > { %v1371_v16 = vadd.f32 %v1370_v13, %v1369_v9 }
 0x1ef   : > { %v1373_v7 = vadd.f32 %v1372_v19, %v1371_v16 }
 0x1f0   : > { %v2543_v14 = vpop.f32.mrb[26].mxu1 }
 0x1f1   : > { %v2545_v21 = vpop.f32.mrb[27].mxu1  ;;  %v1349_v50 = vmul.f32 %v2543_v14, %v2543_v14 }
 0x1f2   : > { %v1348_v23 = vmul.f32 %v2545_v21, %v2545_v21 }
 0x1f3   : > { %v1376_v6 = vsel %vm1291_vm1, %v1349_v50, 0.0 }
 0x1f4   : > { %v1374_v27 = vsel %vm1291_vm1, %v1348_v23, 0.0 }
 0x1f5   : > { %v1375_v31 = vadd.f32 %v1374_v27, %v1373_v7 }
 0x1f7   : > { %v1377_v34 = vadd.f32 %v1376_v6, %v1375_v31 }
 0x1f8   : > { %v2553_v33 = vpop.f32.mrb[28].mxu1  ;;  %v800_v22 = vpop.xlane.xlu0 %799 }
 0x1f9   : > { %v2555_v30 = vpop.f32.mrb[29].mxu1  ;;  %v1351_v29 = vmul.f32 %v2553_v33, %v2553_v33  ;;  %v801_v38 = vrot.slane %v800_v22, 4 }
 0x1fa   : > { %v1350_v39 = vmul.f32 %v2555_v30, %v2555_v30 }
 0x1fb   : > { %v802_v28 = vadd.f32 %v801_v38, %v800_v22  ;;  %v1380_v44 = vsel %vm1291_vm1, %v1351_v29, 0.0 }
 0x1fc   : > { %v1378_v57 = vsel %vm1291_vm1, %v1350_v39, 0.0 }
 0x1fd   : > { %v1379_v17 = vadd.f32 %v1378_v57, %v1377_v34  ;;  %v803_v42 = vrot.slane %v802_v28, 2 }
 0x1ff   : > { %v1381_v45 = vadd.f32 %v1380_v44, %v1379_v17  ;;  %v804_v48 = vadd.f32 %v803_v42, %v802_v28  ;;  %v1403_v44 = vadd.f32 1e-07, %v2505_v55 }
 0x200   : > { %v2563_v46 = vpop.f32.mrb[30].mxu1 }
 0x201   : > { %v2565_v51 = vpop.f32.mrb[31].mxu1  ;;  %v1353_v53 = vmul.f32 %v2563_v46, %v2563_v46  ;;  %v805_v4 = vrot.slane %v804_v48, 1 }
 0x202   : > { %v1352_v5 = vmul.f32 %v2565_v51, %v2565_v51 }
 0x203   : > { %v806_v58 = vadd.f32 %v805_v4, %v804_v48  ;;  %v1384_v32 = vsel %vm1291_vm1, %v1353_v53, 0.0 }
 0x204   : > { %v1382_v56 = vsel %vm1291_vm1, %v1352_v5, 0.0 }
 0x205   : > { %v1383_v20 = vadd.f32 %v1382_v56, %v1381_v45  ;;  %1881 = vpush %v806_v58 }
 0x206   : > { %1883 = vpush %v852_v59 }
 0x207   : > { %v1385_v37 = vadd.f32 %v1384_v32, %v1383_v20 }
 0x208   : > { %v1800_v24 = vpop.f32.mrb[32].mxu1 }
 0x209   : > { %v1256_v43 = vsub.f32 %v2497_v35, %v1800_v24  ;;  %v1418_v0 = vadd.f32 1e-07, %v1800_v24  ;;  %v2574_v3 = vpop.f32.mrb[33].mxu1 }
 0x20a   : > { %v1354_v2 = vmul.f32 %v2574_v3, %v2574_v3 }
 0x20b   : > { %1986 = vrcp.f32 %v1418_v0  ;;  %v1274_v11 = vmul.f32 %v1256_v43, %v1256_v43 }
 0x20c   : > { %v1386_v54 = vsel %vm1291_vm1, %v1354_v2, 0.0 }
 0x20d   : > { %v1387_v60 = vadd.f32 %v1386_v54, %v1385_v37  ;;  %v1292_v26 = vsel %vm1291_vm1, %v1274_v11, 0.0  ;;  %v1404_v11 = vadd.f32 1e-07, %v2503_v62 }
 0x20f   : > { %1388 = vadd.xlane.f32.xlu0 %v1387_v60 }
 0x210   : > { %v1803_v8 = vpop.f32.mrb[34].mxu1 }
 0x211   : > { %v1258_v63 = vsub.f32 %v2505_v55, %v1803_v8  ;;  %v1420_v9 = vadd.f32 1e-07, %v1803_v8  ;;  %v1177_v12 = vpop.f32.mrb[35].mxu1  ;;  %v1405_v8 = vadd.f32 1e-07, %v2515_v61 }
 0x212   : > { %v1257_v13 = vsub.f32 %v2493_v49, %v1177_v12  ;;  %v1419_v16 = vadd.f32 1e-07, %v1177_v12 }
 0x213   : > { %1988 = vrcp.f32 %v1420_v9  ;;  %v1276_v19 = vmul.f32 %v1258_v63, %v1258_v63 }
 0x214   : > { %v1275_v7 = vmul.f32 %v1257_v13, %v1257_v13  ;;  %1990 = vrcp.f32 %v1419_v16  ;;  %v994_v47 = vpop.xlane.xlu1 %993 }
 0x215   : > { %v1987_v50 = vpop.eup %1986  ;;  %v995_v23 = vrot.slane %v994_v47, 4  ;;  %v1295_v36 = vsel %vm1291_vm1, %v1276_v19, 0.0 }
 0x216   : > { %v1436_v27 = vmul.f32 %v1987_v50, %v1401_v18  ;;  %v1293_v31 = vsel %vm1291_vm1, %v1275_v7, 0.0  ;;  %v1406_v7 = vadd.f32 1e-07, %v2513_v25 }
 0x217   : > { %v1294_v6 = vadd.f32 %v1293_v31, %v1292_v26  ;;  %v996_v34 = vadd.f32 %v995_v23, %v994_v47  ;;  %v2598_v47 = vadd.f32 1e-07, %v2523_v40  ;;  %v2602_v26 = vadd.f32 1e-07, %v2533_v15 }
 0x218   : > { %1992 = vlog2.f32 %v1436_v27  ;;  %v1806_v22 = vpop.f32.mrb[36].mxu1  ;;  %v2606_v27 = vadd.f32 1e-07, %v2535_v10 }
 0x219   : > { %v997_v29 = vrot.slane %v996_v34, 2  ;;  %v1260_v35 = vsub.f32 %v2515_v61, %v1806_v22  ;;  %v1422_v38 = vadd.f32 1e-07, %v1806_v22  ;;  %v1187_v39 = vpop.f32.mrb[37].mxu1  ;;  %v1296_v28 = vadd.f32 %v1295_v36, %v1294_v6 }
 0x21a   : > { %v1259_v57 = vsub.f32 %v2503_v62, %v1187_v39  ;;  %v1421_v17 = vadd.f32 1e-07, %v1187_v39  ;;  %v1407_v61 = vadd.f32 1e-07, %v2525_v1  ;;  %v2609_v36 = vadd.f32 1e-07, %v2543_v14 }
 0x21b   : > { %1994 = vrcp.f32 %v1422_v38  ;;  %v998_v41 = vadd.f32 %v997_v29, %v996_v34  ;;  %v1278_v42 = vmul.f32 %v1260_v35, %v1260_v35  ;;  %v2613_v38 = vadd.f32 1e-07, %v2545_v21 }
 0x21c   : > { %v1277_v45 = vmul.f32 %v1259_v57, %v1259_v57  ;;  %1996 = vrcp.f32 %v1421_v17  ;;  %v2617_v17 = vadd.f32 1e-07, %v2555_v30 }
 0x21d   : > { %v1989_v48 = vpop.eup %1988  ;;  %v999_v53 = vrot.slane %v998_v41, 1  ;;  %v1299_v32 = vsel %vm1291_vm1, %v1278_v42, 0.0 }
 0x21e   : > { %v1991_v5 = vpop.eup %1990  ;;  %v1440_v4 = vmul.f32 %v1989_v48, %v1403_v44  ;;  %v1297_v56 = vsel %vm1291_vm1, %v1277_v45, 0.0 }
 0x21f   : > { %v1438_v58 = vmul.f32 %v1991_v5, %v1402_v52  ;;  %v1298_v59 = vadd.f32 %v1297_v56, %v1296_v28  ;;  %v1000_v20 = vadd.f32 %v999_v53, %v998_v41 }
 0x220   : > { %1998 = vlog2.f32 %v1440_v4  ;;  %v1809_v37 = vpop.f32.mrb[38].mxu1 }
 0x221   : > { %2000 = vlog2.f32 %v1438_v58  ;;  %1885 = vpush %v1000_v20  ;;  %v1262_v55 = vsub.f32 %v2525_v1, %v1809_v37  ;;  %v1424_v24 = vadd.f32 1e-07, %v1809_v37  ;;  %v1197_v43 = vpop.f32.mrb[39].mxu1  ;;  %v1300_v0 = vadd.f32 %v1299_v32, %v1298_v59 }
 0x222   : > { %v1993_v49 = vpop.eup %1992  ;;  %v1261_v2 = vsub.f32 %v2513_v25, %v1197_v43  ;;  %v1423_v54 = vadd.f32 1e-07, %v1197_v43 }
 0x223   : > { %v1470_v60 = vmul.f32 0.6931472, %v1993_v49  ;;  %2002 = vrcp.f32 %v1424_v24  ;;  %v1280_v63 = vmul.f32 %v1262_v55, %v1262_v55 }
 0x224   : > { %v1279_v9 = vmul.f32 %v1261_v2, %v1261_v2  ;;  %2004 = vrcp.f32 %v1423_v54 }
 0x225   : > { %v1995_v12 = vpop.eup %1994  ;;  %v1504_v13 = vmul.f32 1.442695, %v1470_v60  ;;  %v1303_v62 = vsel %vm1291_vm1, %v1280_v63, 0.0 }
 0x226   : > { %v1997_v16 = vpop.eup %1996  ;;  %v1444_v18 = vmul.f32 %v1995_v12, %v1405_v8  ;;  %v1301_v19 = vsel %vm1291_vm1, %v1279_v9, 0.0 }
 0x227   : > { %v1442_v50 = vmul.f32 %v1997_v16, %v1404_v11  ;;  %v1302_v23 = vadd.f32 %v1301_v19, %v1300_v0  ;;  %v1521_v31 = vand.u32 2147483647, %v1504_v13 }
 0x228   : > { %2006 = vlog2.f32 %v1444_v18  ;;  %v1812_v6 = vpop.f32.mrb[40].mxu1 }
 0x229   : > { %2008 = vlog2.f32 %v1442_v50  ;;  %v1304_v25 = vadd.f32 %v1303_v62, %v1302_v23  ;;  %v1264_v22 = vsub.f32 %v2535_v10, %v1812_v6  ;;  %v1426_v1 = vadd.f32 1e-07, %v1812_v6  ;;  %v1207_v29 = vpop.f32.mrb[41].mxu1 }
 0x22a   : > { %v1999_v34 = vpop.eup %1998  ;;  %v1263_v28 = vsub.f32 %v2523_v40, %v1207_v29  ;;  %v1425_v57 = vadd.f32 1e-07, %v1207_v29  ;;  %v1538_v45 = vsel %vm1291_vm1, %v1521_v31, 0.0 }
 0x22b   : > { %v2001_v35 = vpop.eup %2000  ;;  %v1474_v39 = vmul.f32 0.6931472, %v1999_v34  ;;  %v1282_v44 = vmul.f32 %v1264_v22, %v1264_v22  ;;  %2010 = vrcp.f32 %v1426_v1 }
 0x22c   : > { %v1472_v41 = vmul.f32 0.6931472, %v2001_v35  ;;  %v1281_v48 = vmul.f32 %v1263_v28, %v1263_v28  ;;  %2012 = vrcp.f32 %v1425_v57  ;;  %v1815_v52 = vpop.f32.mrb[42].mxu1 }
 0x22d   : > { %v2003_v42 = vpop.eup %2002  ;;  %v1506_v10 = vmul.f32 1.442695, %v1474_v39  ;;  %v1307_v56 = vsel %vm1291_vm1, %v1282_v44, 0.0  ;;  %v1266_v40 = vsub.f32 %v2545_v21, %v1815_v52  ;;  %v1217_v58 = vpop.f32.mrb[43].mxu1  ;;  %v1428_v37 = vadd.f32 1e-07, %v1815_v52 }
 0x22e   : > { %v2005_v53 = vpop.eup %2004  ;;  %v1505_v5 = vmul.f32 1.442695, %v1472_v41  ;;  %v1448_v4 = vmul.f32 %v2003_v42, %v1407_v61  ;;  %v1305_v32 = vsel %vm1291_vm1, %v1281_v48, 0.0  ;;  %v1265_v49 = vsub.f32 %v2533_v15, %v1217_v58 }
 0x22f   : > { %v1523_v59 = vand.u32 2147483647, %v1506_v10  ;;  %v1446_v20 = vmul.f32 %v2005_v53, %v1406_v7  ;;  %v1306_v24 = vadd.f32 %v1305_v32, %v1304_v25  ;;  %v1284_v43 = vmul.f32 %v1266_v40, %v1266_v40 }
 0x230   : > { %v1522_v55 = vand.u32 2147483647, %v1505_v5  ;;  %2014 = vlog2.f32 %v1448_v4  ;;  %v1427_v2 = vadd.f32 1e-07, %v1217_v58  ;;  %v1818_v54 = vpop.f32.mrb[44].mxu1  ;;  %v1283_v16 = vmul.f32 %v1265_v49, %v1265_v49 }
 0x231   : > { %v1541_v0 = vsel %vm1291_vm1, %v1523_v59, 0.0  ;;  %2016 = vlog2.f32 %v1446_v20  ;;  %v1311_v8 = vsel %vm1291_vm1, %v1284_v43, 0.0  ;;  %v1308_v63 = vadd.f32 %v1307_v56, %v1306_v24  ;;  %v1227_v9 = vpop.f32.mrb[45].mxu1 }
 0x232   : > { %v2007_v21 = vpop.eup %2006  ;;  %v1539_v60 = vsel %vm1291_vm1, %v1522_v55, 0.0  ;;  %2018 = vrcp.f32 %v1428_v37  ;;  %v1268_v15 = vsub.f32 %v2555_v30, %v1818_v54  ;;  %v1430_v19 = vadd.f32 1e-07, %v1818_v54 }
 0x233   : > { %v2009_v12 = vpop.eup %2008  ;;  %v1540_v11 = vadd.f32 %v1539_v60, %v1538_v45  ;;  %v1478_v13 = vmul.f32 0.6931472, %v2007_v21  ;;  %2020 = vrcp.f32 %v1427_v2  ;;  %v1267_v7 = vsub.f32 %v2543_v14, %v1227_v9 }
 0x234   : > { %v1476_v18 = vmul.f32 0.6931472, %v2009_v12  ;;  %v1309_v61 = vsel %vm1291_vm1, %v1283_v16, 0.0  ;;  %v1429_v62 = vadd.f32 1e-07, %v1227_v9  ;;  %v1821_v31 = vpop.f32.mrb[46].mxu1  ;;  %v1286_v22 = vmul.f32 %v1268_v15, %v1268_v15 }
 0x235   : > { %v1508_v50 = vmul.f32 1.442695, %v1478_v13  ;;  %v1542_v23 = vadd.f32 %v1541_v0, %v1540_v11  ;;  %v2011_v6 = vpop.eup %2010  ;;  %v1310_v34 = vadd.f32 %v1309_v61, %v1308_v63  ;;  %2022 = vrcp.f32 %v1430_v19  ;;  %v1237_v1 = vpop.f32.mrb[47].mxu1 }
 0x236   : > { %v1507_v25 = vmul.f32 1.442695, %v1476_v18  ;;  %v2013_v29 = vpop.eup %2012  ;;  %v1452_v30 = vmul.f32 %v2011_v6, %v2606_v27  ;;  %v1285_v39 = vmul.f32 %v1267_v7, %v1267_v7  ;;  %2024 = vrcp.f32 %v1429_v62  ;;  %s1882_s21 = spop %1881 }
 0x237   : > { %v1525_v35 = vand.u32 2147483647, %v1508_v50  ;;  %v2636_v14 = vadd.f32 1e-07, %v2565_v51  ;;  %v1450_v57 = vmul.f32 %v2013_v29, %v2598_v47  ;;  %v1312_v41 = vadd.f32 %v1311_v8, %v1310_v34  ;;  %s808_s22 = sadd.f32 %s1882_s21, %s2623_s19  ;;  %s1884_s24 = spop %1883 }
 0x238   : > { %v1524_v28 = vand.u32 2147483647, %v1507_v25  ;;  %2026 = vlog2.f32 %v1452_v30  ;;  %v1315_v44 = vsel %vm1291_vm1, %v1286_v22, 0.0  ;;  %v1313_v42 = vsel %vm1291_vm1, %v1285_v39, 0.0  ;;  %s854_s25 = sadd.f32 %s1884_s24, %s2627_s20  ;;  %v1824_v27 = vpop.f32.mrb[48].mxu1 }
 0x239   : > { %v1270_v45 = vsub.f32 %v2565_v51, %v1821_v31  ;;  %2028 = vlog2.f32 %v1450_v57  ;;  %v1314_v52 = vadd.f32 %v1313_v42, %v1312_v41  ;;  %v1432_v53 = vadd.f32 1e-07, %v1821_v31  ;;  %810 = sst [smem:[#allocation2]] %s808_s22  ;;  %v1247_v47 = vpop.f32.mrb[49].mxu1 }
 0x23a   : > { %v2015_v10 = vpop.eup %2014  ;;  %v1543_v48 = vsel %vm1291_vm1, %v1524_v28, 0.0  ;;  %v1545_v4 = vsel %vm1291_vm1, %v1525_v35, 0.0  ;;  %v1269_v58 = vsub.f32 %v2553_v33, %v1237_v1  ;;  %856 = sst [smem:[#allocation2 + $0x1]] %s854_s25  ;;  %v1431_v32 = vadd.f32 1e-07, %v1237_v1 }
 0x23b   : > { %v2017_v5 = vpop.eup %2016  ;;  %v1544_v56 = vadd.f32 %v1543_v48, %v1542_v23  ;;  %v1482_v40 = vmul.f32 0.6931472, %v2015_v10  ;;  %2030 = vrcp.f32 %v1432_v53  ;;  %v1316_v20 = vadd.f32 %v1315_v44, %v1314_v52 }
 0x23c   : > { %v2019_v59 = vpop.eup %2018  ;;  %v1480_v51 = vmul.f32 0.6931472, %v2017_v5  ;;  %v1288_v0 = vmul.f32 %v1270_v45, %v1270_v45  ;;  %v1287_v54 = vmul.f32 %v1269_v58, %v1269_v58  ;;  %2032 = vrcp.f32 %v1431_v32 }
 0x23d   : > { %v2021_v37 = vpop.eup %2020  ;;  %v1510_v55 = vmul.f32 1.442695, %v1482_v40  ;;  %v1546_v24 = vadd.f32 %v1545_v4, %v1544_v56  ;;  %v1456_v43 = vmul.f32 %v2019_v59, %v2613_v38  ;;  %v1272_v60 = vsub.f32 %v2574_v3, %v1824_v27 }
 0x23e   : > { %v1509_v49 = vmul.f32 1.442695, %v1480_v51  ;;  %v1454_v2 = vmul.f32 %v2021_v37, %v2602_v26  ;;  %v1434_v8 = vadd.f32 1e-07, %v1824_v27  ;;  %v1317_v12 = vsel %vm1291_vm1, %v1287_v54, 0.0 }
 0x23f   : > { %v1527_v21 = vand.u32 2147483647, %v1510_v55  ;;  %2034 = vlog2.f32 %v1456_v43  ;;  %v2023_v63 = vpop.eup %2022  ;;  %v1271_v11 = vsub.f32 %v2563_v46, %v1247_v47  ;;  %v1319_v16 = vsel %vm1291_vm1, %v1288_v0, 0.0 }
 0x240   : > { %v1526_v9 = vand.u32 2147483647, %v1509_v49  ;;  %2036 = vlog2.f32 %v1454_v2  ;;  %v2025_v13 = vpop.eup %2024  ;;  %v1460_v38 = vmul.f32 %v2023_v63, %v2617_v17  ;;  %v1318_v26 = vadd.f32 %v1317_v12, %v1316_v20 }
 0x241   : > { %v1290_v18 = vmul.f32 %v1272_v60, %v1272_v60  ;;  %v1458_v19 = vmul.f32 %v2025_v13, %v2609_v36  ;;  %2038 = vrcp.f32 %v1434_v8  ;;  %v1289_v7 = vmul.f32 %v1271_v11, %v1271_v11 }
 0x242   : > { %v1547_v15 = vsel %vm1291_vm1, %v1526_v9, 0.0  ;;  %v2027_v50 = vpop.eup %2026  ;;  %2040 = vlog2.f32 %v1460_v38  ;;  %v1433_v61 = vadd.f32 1e-07, %v1247_v47  ;;  %v1320_v62 = vadd.f32 %v1319_v16, %v1318_v26 }
 0x243   : > { %v1548_v23 = vadd.f32 %v1547_v15, %v1546_v24  ;;  %v2029_v31 = vpop.eup %2028  ;;  %v1549_v6 = vsel %vm1291_vm1, %v1527_v21, 0.0  ;;  %v1486_v25 = vmul.f32 0.6931472, %v2027_v50  ;;  %2042 = vlog2.f32 %v1458_v19 }
 0x244   : > { %v1321_v17 = vsel %vm1291_vm1, %v1289_v7, 0.0  ;;  %v1484_v34 = vmul.f32 0.6931472, %v2029_v31  ;;  %2044 = vrcp.f32 %v1433_v61  ;;  %v1323_v35 = vsel %vm1291_vm1, %v1290_v18, 0.0 }
 0x245   : > { %v1322_v22 = vadd.f32 %v1321_v17, %v1320_v62  ;;  %v1550_v1 = vadd.f32 %v1549_v6, %v1548_v23  ;;  %v2031_v29 = vpop.eup %2030  ;;  %v1512_v36 = vmul.f32 1.442695, %v1486_v25  ;;  %v1414_v30 = vadd.f32 1e-07, %v2553_v33 }
 0x246   : > { %v1511_v39 = vmul.f32 1.442695, %v1484_v34  ;;  %v1464_v57 = vmul.f32 %v2031_v29, %v2636_v14  ;;  %v2033_v41 = vpop.eup %2032  ;;  %v1417_v52 = vadd.f32 1e-07, %v2574_v3  ;;  %v1416_v51 = vadd.f32 1e-07, %v2563_v46 }
 0x247   : > { %v1324_v28 = vadd.f32 %v1323_v35, %v1322_v22  ;;  %v1529_v42 = vand.u32 2147483647, %v1512_v36  ;;  %v1462_v27 = vmul.f32 %v2033_v41, %v1414_v30 }
 0x248   : > { %v1528_v45 = vand.u32 2147483647, %v1511_v39  ;;  %2046 = vlog2.f32 %v1464_v57 }
 0x249   : > { %v2035_v44 = vpop.eup %2034  ;;  %1325 = vadd.xlane.f32.xlu1 %v1324_v28  ;;  %2048 = vlog2.f32 %v1462_v27  ;;  %v1553_v58 = vsel %vm1291_vm1, %v1529_v42, 0.0 }
 0x24a   : > { %v2037_v10 = vpop.eup %2036  ;;  %v1490_v48 = vmul.f32 0.6931472, %v2035_v44  ;;  %v1551_v53 = vsel %vm1291_vm1, %v1528_v45, 0.0 }
 0x24b   : > { %v1488_v33 = vmul.f32 0.6931472, %v2037_v10  ;;  %v2039_v47 = vpop.eup %2038  ;;  %v1552_v14 = vadd.f32 %v1551_v53, %v1550_v1 }
 0x24c   : > { %v1514_v5 = vmul.f32 1.442695, %v1490_v48  ;;  %v2041_v4 = vpop.eup %2040  ;;  %v1468_v40 = vmul.f32 %v2039_v47, %v1417_v52 }
 0x24d   : > { %v1513_v56 = vmul.f32 1.442695, %v1488_v33  ;;  %v2043_v59 = vpop.eup %2042  ;;  %v1494_v20 = vmul.f32 0.6931472, %v2041_v4  ;;  %v1554_v32 = vadd.f32 %v1553_v58, %v1552_v14 }
 0x24e   : > { %v2045_v37 = vpop.eup %2044  ;;  %v1492_v55 = vmul.f32 0.6931472, %v2043_v59  ;;  %2050 = vlog2.f32 %v1468_v40  ;;  %v1531_v24 = vand.u32 2147483647, %v1514_v5 }
 0x24f   : > { %v1530_v3 = vand.u32 2147483647, %v1513_v56  ;;  %v1466_v43 = vmul.f32 %v2045_v37, %v1416_v51  ;;  %v1516_v0 = vmul.f32 1.442695, %v1494_v20 }
 0x250   : > { %v1515_v49 = vmul.f32 1.442695, %v1492_v55  ;;  %v1557_v8 = vsel %vm1291_vm1, %v1531_v24, 0.0 }
 0x251   : > { %v1555_v2 = vsel %vm1291_vm1, %v1530_v3, 0.0  ;;  %2052 = vlog2.f32 %v1466_v43  ;;  %v1533_v46 = vand.u32 2147483647, %v1516_v0 }
 0x252   : > { %s1886_s27 = spop %1885  ;;  %v1556_v54 = vadd.f32 %v1555_v2, %v1554_v32  ;;  %v2047_v21 = vpop.eup %2046  ;;  %v1532_v60 = vand.u32 2147483647, %v1515_v49 }
 0x253   : > { %s1002_s28 = sadd.f32 %s1886_s27, %s2661_s26  ;;  %v1498_v63 = vmul.f32 0.6931472, %v2047_v21  ;;  %v2049_v12 = vpop.eup %2048  ;;  %v1561_v26 = vsel %vm1291_vm1, %v1533_v46, 0.0 }
 0x254   : > { %v1558_v9 = vadd.f32 %v1557_v8, %v1556_v54  ;;  %v1559_v11 = vsel %vm1291_vm1, %v1532_v60, 0.0  ;;  %v1496_v13 = vmul.f32 0.6931472, %v2049_v12 }
 0x255   : > { %1004 = sst [smem:[#allocation2 + $0x2]] %s1002_s28  ;;  %v1518_v38 = vmul.f32 1.442695, %v1498_v63 }
 0x256   : > { %v1560_v16 = vadd.f32 %v1559_v11, %v1558_v9  ;;  %v1517_v18 = vmul.f32 1.442695, %v1496_v13 }
 0x257   : > { %v1535_v23 = vand.u32 2147483647, %v1518_v38 }
 0x258   : > { %v1562_v15 = vadd.f32 %v1561_v26, %v1560_v16  ;;  %v2051_v19 = vpop.eup %2050  ;;  %v1534_v50 = vand.u32 2147483647, %v1517_v18 }
 0x259   : > { %v1502_v7 = vmul.f32 0.6931472, %v2051_v19  ;;  %v1565_v17 = vsel %vm1291_vm1, %v1535_v23, 0.0 }
 0x25a   : > { %v1563_v62 = vsel %vm1291_vm1, %v1534_v50, 0.0 }
 0x25b   : > { %v2053_v61 = vpop.eup %2052  ;;  %v1520_v6 = vmul.f32 1.442695, %v1502_v7  ;;  %v1564_v25 = vadd.f32 %v1563_v62, %v1562_v15 }
 0x25c   : > { %v1500_v31 = vmul.f32 0.6931472, %v2053_v61 }
 0x25d   : > { %v1566_v22 = vadd.f32 %v1565_v17, %v1564_v25  ;;  %v1537_v29 = vand.u32 2147483647, %v1520_v6 }
 0x25e   : > { %v1519_v34 = vmul.f32 1.442695, %v1500_v31 }
 0x25f   : > { %v1569_v30 = vsel %vm1291_vm1, %v1537_v29, 0.0 }
 0x260   : > { %v1536_v1 = vand.u32 2147483647, %v1519_v34 }
 0x262   : > { %v1567_v36 = vsel %vm1291_vm1, %v1536_v1, 0.0 }
 0x263   : > { %v1568_v35 = vadd.f32 %v1567_v36, %v1566_v22 }
 0x265   : > { %v1570_v39 = vadd.f32 %v1569_v30, %v1568_v35 }
 0x267   : > { %1571 = vadd.xlane.f32.xlu1 %v1570_v39 }
 0x29c   : > { %v1389_v28 = vpop.xlane.xlu0 %1388 }
 0x29d   : > { %v1390_v57 = vrot.slane %v1389_v28, 4 }
 0x29f   : > { %v1391_v41 = vadd.f32 %v1390_v57, %v1389_v28 }
 0x2a1   : > { %v1392_v44 = vrot.slane %v1391_v41, 2 }
 0x2a3   : > { %v1393_v10 = vadd.f32 %v1392_v44, %v1391_v41 }
 0x2a5   : > { %v1394_v53 = vrot.slane %v1393_v10, 1 }
 0x2a7   : > { %v1395_v5 = vadd.f32 %v1394_v53, %v1393_v10 }
 0x2d6   : > { %v1326_v42 = vpop.xlane.xlu1 %1325 }
 0x2d7   : > { %v1327_v45 = vrot.slane %v1326_v42, 4 }
 0x2d9   : > { %v1328_v27 = vadd.f32 %v1327_v45, %v1326_v42 }
 0x2db   : > { %v1329_v48 = vrot.slane %v1328_v27, 2 }
 0x2dd   : > { %v1330_v52 = vadd.f32 %v1329_v48, %v1328_v27 }
 0x2df   : > { %v1331_v33 = vrot.slane %v1330_v52, 1 }
 0x2e1   : > { %v1332_v47 = vadd.f32 %v1331_v33, %v1330_v52 }
 0x2e3   : > { %1887 = vpush %v1332_v47 }
 0x2e4   : > { %1889 = vpush %v1395_v5 }
 0x2f4   : > { %v1572_v14 = vpop.xlane.xlu1 %1571 }
 0x2f5   : > { %v1573_v4 = vrot.slane %v1572_v14, 4 }
 0x2f7   : > { %v1574_v56 = vadd.f32 %v1573_v4, %v1572_v14 }
 0x2f9   : > { %v1575_v40 = vrot.slane %v1574_v56, 2 }
 0x2fb   : > { %v1576_v58 = vadd.f32 %v1575_v40, %v1574_v56 }
 0x2fd   : > { %v1577_v59 = vrot.slane %v1576_v58, 1 }
 0x2ff   : > { %v1578_v51 = vadd.f32 %v1577_v59, %v1576_v58 }
 0x301   : > { %1891 = vpush %v1578_v51 }
 0x314   : > { %s1888_s5 = spop %1887 }
 0x315   : > { %s1334_s6 = sadd.f32 %s1888_s5, %s1685_s29  ;;  %s1890_s7 = spop %1889 }
 0x316   : > { %s1397_s8 = sadd.f32 %s1890_s7, %s1686_s30 }
 0x317   : > { %1336 = sst [smem:[#allocation2 + $0x3]] %s1334_s6 }
 0x318   : > { %1399 = sst [smem:[#allocation2 + $0x4]] %s1397_s8 }
 0x332   : > { %s1892_s13 = spop %1891 }
 0x333   : > { %s1580_s14 = sadd.f32 %s1892_s13, %s1687_s9 }
 0x335   : > { %1582 = sst [smem:[#allocation2 + $0x5]] %s1580_s14 }
 0x336   : > { %2067 = shalt.err (!%p2064_p12)
}
 0x337   : > { %s2082_s18 = smov [#allocation2]  }
 0x338   : > { %1901 = dma.smem_to_vmem (%p1905_p5), %s2082_s18, 16, %s1591_s12, [#allocation3]  }
 0x339   : > { %2073 = dma.done.wait (%p1905_p5), [#allocation3], 16  }
 0x33a   : > { %2075 = vsyncadd (%p1905_p5), [#allocation3], 4294967280 }
 0x33b   : > { %1598 = sfence }
 0x33c PF: > { %s15_s15 = sadd.s32 1, %s2078_s15  }
 0x33d   : > { %p12_p13 = scmp.ge.s32.totalorder %s15_s15, 4  }
 0x33f   :  { %14 = sbr.rel (!%p12_p13) target bundleno = 1 (0x1), region = 82 }
 0x346   :  { %1604 = vsyncpa [#allocation3], 1 }
 0x347   :  { %1606 = vsyncpa [#allocation3 + $0x1], 1 }

// kernel: hybrid_loss.3
= control target key start
LH: loop header
LB: loop body
LE: loop exit
PB: predicated region body
PF: predicated region fallthrough
CT: control target
= control target key end

     0   :  { %8 = vsyncpa [#allocation3], 0  ;;  %s1452_s12 = smov 0   ;;  %s1660_s0 = inlined_call_operand.vmem [shape: f32[528,32], index: 0, kind: input, shape index: {}]   ;;  %s1661_s1 = inlined_call_operand.vmem [shape: f32[528,32], index: 1, kind: input, shape index: {}]   ;;  %s1662_s2 = inlined_call_operand.vmem [shape: f32[32,256], index: 2, kind: input, shape index: {}]   ;;  %s1663_s3 = inlined_call_operand.vmem [shape: f32[3], index: 3, kind: output, shape index: {}]  }
   0x1 LB: > { %s1458_s13 = sadd.s32 4294967295, %s1427_s12   ;;  %p1221_p0 = scmp.ge.s32.totalorder %s1427_s12, 1  ;;  %s1427_s12 = sphi %s1452_s12, %s14_s12  }
   0x2   : > { %p145_p1 = scmp.lt.s32.totalorder %s1427_s12, 4 }
   0x4   : > { %p146_p2 = pnand %p1221_p0, %p145_p1 }
   0x5   : > { %v236_v0 = vld [vmem:[%s1662_s2 + $0x8] sm:$0xff] (!%p146_p2)  ;;  %v238_v1 = vld [vmem:[%s1662_s2 + $0x18] sm:$0xff] (!%p146_p2)  ;;  %v235_v2 = vld [vmem:[%s1662_s2] sm:$0xff] (!%p146_p2)  ;;  %s169_s20 = smul.u32 (!%p146_p2), 22, %s1458_s13  ;;  %v1429_v7 = vmov (!%p146_p2), 0.0   ;;  %vm243_vm0 = vcmask (!%p146_p2), 261120  }
   0x6   : > { %149 = sbr.rel (%p146_p2) target bundleno = 571 (0x23b), region = 32  ;;  %v1275_v3 = vpack.c.bf16 (!%p146_p2), %v238_v1, %v236_v0  ;;  %v237_v4 = vld [vmem:[%s1662_s2 + $0x10] sm:$0xff] (!%p146_p2)  ;;  %v240_v5 = vld [vmem:[%s1662_s2 + $0x28] sm:$0xff] (!%p146_p2)  ;;  %v242_v6 = vld [vmem:[%s1662_s2 + $0x38] sm:$0xff] (!%p146_p2)  ;;  %440 = vmatprep.mubr.f32.mxu0 (!%p146_p2), %v1429_v7  ;;  %572 = vmatprep.mubr.f32.mxu1 (!%p146_p2), %v1429_v7  ;;  %p1301_p4 = scmp.eq.s32.totalorder (!%p146_p2), %s1458_s13, 0 }
   0x7   : > { %v1277_v8 = vpack.c.bf16 (!%p146_p2), %v237_v4, %v235_v2  ;;  %v1279_v9 = vpack.c.bf16 (!%p146_p2), %v242_v6, %v240_v5  ;;  %v239_v10 = vld [vmem:[%s1662_s2 + $0x20] sm:$0xff] (!%p146_p2)  ;;  %v241_v11 = vld [vmem:[%s1662_s2 + $0x30] sm:$0xff] (!%p146_p2)  ;;  %p170_p3 = scmp.lt.s32.totalorder (!%p146_p2), %s169_s20, 65  ;;  %s1430_s11 = smov (!%p146_p2), 0.0  }
   0x8   : > { %1276 = vmatprep.subr.bf16.mxu0 (!%p146_p2), %v1275_v3  ;;  %1283 = vmatprep.subr.bf16.mxu1 (!%p146_p2), %v1275_v3  ;;  %v1281_v12 = vpack.c.bf16 (!%p146_p2), %v241_v11, %v239_v10  ;;  %s1166_s23 = sshll.u32 (!%p146_p2), %s1663_s3, 4  ;;  %p1302_p5 = scmp.eq.s32.totalorder (!%p146_p2), %s1458_s13, 2  ;;  %s1167_s23 = int_to_ptr.vmem [resolvable:$true] %s1166_s23 }
   0x9   : > { %1278 = vmatpush1.bf16.msra.mxu0 (!%p146_p2), %v1277_v8  ;;  %1285 = vmatpush1.bf16.msra.mxu1 (!%p146_p2), %v1277_v8  ;;  %s1403_s26 = scalar_lea.vmem (!%p146_p2), %s1167_s23, 16  ;;  %p1410_p9 = scmp.lt.s32.totalorder (!%p146_p2), %s1167_s23, %s1167_s23 }
   0xa   : > { %1280 = vmatprep.subr.bf16.mxu0 (!%p146_p2), %v1279_v9  ;;  %1284 = vmatprep.subr.bf16.mxu1 (!%p146_p2), %v1279_v9  ;;  %p1404_p6 = scmp.ne.s32.totalorder (!%p146_p2), %s1167_s23, %s1403_s26  ;;  %p1411_p10 = scmp.lt.s32.totalorder (!%p146_p2), %s1403_s26, %s1403_s26 }
   0xc   : > { %p1405_p7 = pnand (!%p146_p2), %p1404_p6, %p1302_p5  ;;  %p1412_p11 = por (!%p146_p2), %p1411_p10, %p1410_p9 }
   0xd   : > { %s1665_s20 = smov (!%p170_p3, %s169_s20), 65  ;;  %1282 = vmatpush1.bf16.msra.mxu0 %v1281_v12  ;;  %1286 = vmatpush1.bf16.msra.mxu1 %v1281_v12  ;;  %1294 = sst [smem:[#allocation2]] (%p1301_p4), %s1430_s11 }
   0xe   : > { %s1222_s4 = sshll.u32 %s1665_s20, 3  ;;  %1295 = sst [smem:[#allocation2 + $0x1]] (%p1301_p4), %s1430_s11 }
   0xf   : > { %s1492_s7 = scalar_lea.vmem %s1660_s0, %s1222_s4  ;;  %s1497_s10 = scalar_lea.vmem %s1661_s1, %s1222_s4 }
  0x10   : > { %v191_v13 = vld [vmem:[%s1492_s7] sm:$0xff]  ;;  %v192_v15 = vld [vmem:[%s1492_s7 + $0x8] sm:$0xff]  ;;  %v193_v17 = vld [vmem:[%s1492_s7 + $0x10] sm:$0xff]  ;;  %1296 = sst [smem:[#allocation2 + $0x2]] (%p1301_p4), %s1430_s11  ;;  %s859_s14 = sld [smem:[#allocation2]] }
  0x11   : > { %v213_v14 = vld [vmem:[%s1497_s10] sm:$0xff]  ;;  %1225 = vmatmul.mubr.msk.f32.vlgmr.msra.gmra.mrb[0].mxu0 %vm243_vm0, %v191_v13  ;;  %v214_v16 = vld [vmem:[%s1497_s10 + $0x8] sm:$0xff]  ;;  %v215_v18 = vld [vmem:[%s1497_s10 + $0x10] sm:$0xff]  ;;  %s1269_s15 = sld [smem:[#allocation2 + $0x1]]  ;;  %s1270_s20 = sld [smem:[#allocation2 + $0x2]] }
  0x12   : > { %1247 = vmatmul.mubr.msk.f32.vlgmr.msra.gmra.mrb[0].mxu1 %vm243_vm0, %v213_v14  ;;  %446 = vmatprep.mubr.f32.mxu0 %v1429_v7  ;;  %v194_v19 = vld [vmem:[%s1492_s7 + $0x18] sm:$0xff]  ;;  %v195_v21 = vld [vmem:[%s1492_s7 + $0x20] sm:$0xff]  ;;  %v196_v23 = vld [vmem:[%s1492_s7 + $0x28] sm:$0xff]  ;;  %p1406_p8 = pneg %p1405_p7 }
  0x13   : > { %578 = vmatprep.mubr.f32.mxu1 %v1429_v7  ;;  %v216_v20 = vld [vmem:[%s1497_s10 + $0x18] sm:$0xff]  ;;  %v217_v22 = vld [vmem:[%s1497_s10 + $0x20] sm:$0xff]  ;;  %v218_v24 = vld [vmem:[%s1497_s10 + $0x28] sm:$0xff] }
  0x14   : > { %v197_v25 = vld [vmem:[%s1492_s7 + $0x30] sm:$0xff]  ;;  %v198_v27 = vld [vmem:[%s1492_s7 + $0x38] sm:$0xff]  ;;  %v199_v29 = vld [vmem:[%s1492_s7 + $0x40] sm:$0xff]  ;;  %p1413_p12 = pnand %p1412_p11, %p1406_p8 }
  0x15   : > { %1226 = vmatmul.mubr.msk.f32.gmra.mrb[2].mxu0 %vm243_vm0, %v192_v15  ;;  %v219_v26 = vld [vmem:[%s1497_s10 + $0x30] sm:$0xff]  ;;  %v220_v28 = vld [vmem:[%s1497_s10 + $0x38] sm:$0xff]  ;;  %v221_v30 = vld [vmem:[%s1497_s10 + $0x40] sm:$0xff] }
  0x16   : > { %1248 = vmatmul.mubr.msk.f32.gmra.mrb[2].mxu1 %vm243_vm0, %v214_v16  ;;  %452 = vmatprep.mubr.f32.mxu0 %v1429_v7  ;;  %v200_v31 = vld [vmem:[%s1492_s7 + $0x48] sm:$0xff]  ;;  %v201_v33 = vld [vmem:[%s1492_s7 + $0x50] sm:$0xff]  ;;  %v202_v35 = vld [vmem:[%s1492_s7 + $0x58] sm:$0xff] }
  0x17   : > { %584 = vmatprep.mubr.f32.mxu1 %v1429_v7  ;;  %v222_v32 = vld [vmem:[%s1497_s10 + $0x48] sm:$0xff]  ;;  %v223_v34 = vld [vmem:[%s1497_s10 + $0x50] sm:$0xff]  ;;  %v224_v36 = vld [vmem:[%s1497_s10 + $0x58] sm:$0xff] }
  0x18   : > { %v203_v37 = vld [vmem:[%s1492_s7 + $0x60] sm:$0xff]  ;;  %v204_v39 = vld [vmem:[%s1492_s7 + $0x68] sm:$0xff]  ;;  %v205_v41 = vld [vmem:[%s1492_s7 + $0x70] sm:$0xff] }
  0x19   : > { %1227 = vmatmul.mubr.msk.f32.gmra.mrb[4].mxu0 %vm243_vm0, %v193_v17  ;;  %v225_v38 = vld [vmem:[%s1497_s10 + $0x60] sm:$0xff]  ;;  %v226_v40 = vld [vmem:[%s1497_s10 + $0x68] sm:$0xff]  ;;  %v227_v42 = vld [vmem:[%s1497_s10 + $0x70] sm:$0xff] }
  0x1a   : > { %1249 = vmatmul.mubr.msk.f32.gmra.mrb[4].mxu1 %vm243_vm0, %v215_v18  ;;  %458 = vmatprep.mubr.f32.mxu0 %v1429_v7  ;;  %v206_v43 = vld [vmem:[%s1492_s7 + $0x78] sm:$0xff]  ;;  %v207_v45 = vld [vmem:[%s1492_s7 + $0x80] sm:$0xff]  ;;  %v208_v47 = vld [vmem:[%s1492_s7 + $0x88] sm:$0xff] }
  0x1b   : > { %590 = vmatprep.mubr.f32.mxu1 %v1429_v7  ;;  %v228_v44 = vld [vmem:[%s1497_s10 + $0x78] sm:$0xff]  ;;  %v229_v46 = vld [vmem:[%s1497_s10 + $0x80] sm:$0xff]  ;;  %v230_v48 = vld [vmem:[%s1497_s10 + $0x88] sm:$0xff] }
  0x1c   : > { %v209_v49 = vld [vmem:[%s1492_s7 + $0x90] sm:$0xff]  ;;  %v210_v51 = vld [vmem:[%s1492_s7 + $0x98] sm:$0xff]  ;;  %v211_v53 = vld [vmem:[%s1492_s7 + $0xa0] sm:$0xff] }
  0x1d   : > { %1228 = vmatmul.mubr.msk.f32.gmra.mrb[6].mxu0 %vm243_vm0, %v194_v19  ;;  %v231_v50 = vld [vmem:[%s1497_s10 + $0x90] sm:$0xff]  ;;  %v232_v52 = vld [vmem:[%s1497_s10 + $0x98] sm:$0xff]  ;;  %v233_v54 = vld [vmem:[%s1497_s10 + $0xa0] sm:$0xff] }
  0x1e   : > { %1250 = vmatmul.mubr.msk.f32.gmra.mrb[6].mxu1 %vm243_vm0, %v216_v20  ;;  %464 = vmatprep.mubr.f32.mxu0 %v1429_v7  ;;  %v212_v55 = vld [vmem:[%s1492_s7 + $0xa8] sm:$0xff] }
  0x1f   : > { %596 = vmatprep.mubr.f32.mxu1 %v1429_v7  ;;  %v234_v56 = vld [vmem:[%s1497_s10 + $0xa8] sm:$0xff] }
  0x21   : > { %1229 = vmatmul.mubr.msk.f32.gmra.mrb[8].mxu0 %vm243_vm0, %v195_v21 }
  0x22   : > { %1251 = vmatmul.mubr.msk.f32.gmra.mrb[8].mxu1 %vm243_vm0, %v217_v22  ;;  %470 = vmatprep.mubr.f32.mxu0 %v1429_v7 }
  0x23   : > { %602 = vmatprep.mubr.f32.mxu1 %v1429_v7 }
  0x25   : > { %1230 = vmatmul.mubr.msk.f32.gmra.mrb[10].mxu0 %vm243_vm0, %v196_v23 }
  0x26   : > { %1252 = vmatmul.mubr.msk.f32.gmra.mrb[10].mxu1 %vm243_vm0, %v218_v24  ;;  %476 = vmatprep.mubr.f32.mxu0 %v1429_v7 }
  0x27   : > { %608 = vmatprep.mubr.f32.mxu1 %v1429_v7 }
  0x29   : > { %1231 = vmatmul.mubr.msk.f32.gmra.mrb[12].mxu0 %vm243_vm0, %v197_v25 }
  0x2a   : > { %1253 = vmatmul.mubr.msk.f32.gmra.mrb[12].mxu1 %vm243_vm0, %v219_v26  ;;  %482 = vmatprep.mubr.f32.mxu0 %v1429_v7 }
  0x2b   : > { %614 = vmatprep.mubr.f32.mxu1 %v1429_v7 }
  0x2d   : > { %1232 = vmatmul.mubr.msk.f32.gmra.mrb[14].mxu0 %vm243_vm0, %v198_v27 }
  0x2e   : > { %1254 = vmatmul.mubr.msk.f32.gmra.mrb[14].mxu1 %vm243_vm0, %v220_v28  ;;  %488 = vmatprep.mubr.f32.mxu0 %v1429_v7 }
  0x2f   : > { %620 = vmatprep.mubr.f32.mxu1 %v1429_v7 }
  0x31   : > { %1233 = vmatmul.mubr.msk.f32.gmra.mrb[16].mxu0 %vm243_vm0, %v199_v29 }
  0x32   : > { %1255 = vmatmul.mubr.msk.f32.gmra.mrb[16].mxu1 %vm243_vm0, %v221_v30  ;;  %494 = vmatprep.mubr.f32.mxu0 %v1429_v7 }
  0x33   : > { %626 = vmatprep.mubr.f32.mxu1 %v1429_v7 }
  0x35   : > { %1234 = vmatmul.mubr.msk.f32.gmra.mrb[18].mxu0 %vm243_vm0, %v200_v31 }
  0x36   : > { %1256 = vmatmul.mubr.msk.f32.gmra.mrb[18].mxu1 %vm243_vm0, %v222_v32  ;;  %500 = vmatprep.mubr.f32.mxu0 %v1429_v7 }
  0x37   : > { %632 = vmatprep.mubr.f32.mxu1 %v1429_v7 }
  0x39   : > { %1235 = vmatmul.mubr.msk.f32.gmra.mrb[20].mxu0 %vm243_vm0, %v201_v33 }
  0x3a   : > { %1257 = vmatmul.mubr.msk.f32.gmra.mrb[20].mxu1 %vm243_vm0, %v223_v34  ;;  %506 = vmatprep.mubr.f32.mxu0 %v1429_v7 }
  0x3b   : > { %638 = vmatprep.mubr.f32.mxu1 %v1429_v7 }
  0x3d   : > { %1236 = vmatmul.mubr.msk.f32.gmra.mrb[22].mxu0 %vm243_vm0, %v202_v35 }
  0x3e   : > { %1258 = vmatmul.mubr.msk.f32.gmra.mrb[22].mxu1 %vm243_vm0, %v224_v36  ;;  %512 = vmatprep.mubr.f32.mxu0 %v1429_v7 }
  0x3f   : > { %644 = vmatprep.mubr.f32.mxu1 %v1429_v7 }
  0x41   : > { %1237 = vmatmul.mubr.msk.f32.gmra.mrb[24].mxu0 %vm243_vm0, %v203_v37 }
  0x42   : > { %1259 = vmatmul.mubr.msk.f32.gmra.mrb[24].mxu1 %vm243_vm0, %v225_v38  ;;  %518 = vmatprep.mubr.f32.mxu0 %v1429_v7 }
  0x43   : > { %650 = vmatprep.mubr.f32.mxu1 %v1429_v7 }
  0x45   : > { %1238 = vmatmul.mubr.msk.f32.gmra.mrb[26].mxu0 %vm243_vm0, %v204_v39 }
  0x46   : > { %1260 = vmatmul.mubr.msk.f32.gmra.mrb[26].mxu1 %vm243_vm0, %v226_v40  ;;  %524 = vmatprep.mubr.f32.mxu0 %v1429_v7 }
  0x47   : > { %656 = vmatprep.mubr.f32.mxu1 %v1429_v7 }
  0x49   : > { %1239 = vmatmul.mubr.msk.f32.gmra.mrb[28].mxu0 %vm243_vm0, %v205_v41 }
  0x4a   : > { %1261 = vmatmul.mubr.msk.f32.gmra.mrb[28].mxu1 %vm243_vm0, %v227_v42  ;;  %530 = vmatprep.mubr.f32.mxu0 %v1429_v7 }
  0x4b   : > { %662 = vmatprep.mubr.f32.mxu1 %v1429_v7 }
  0x4d   : > { %1240 = vmatmul.mubr.msk.f32.gmra.mrb[30].mxu0 %vm243_vm0, %v206_v43 }
  0x4e   : > { %1262 = vmatmul.mubr.msk.f32.gmra.mrb[30].mxu1 %vm243_vm0, %v228_v44  ;;  %536 = vmatprep.mubr.f32.mxu0 %v1429_v7 }
  0x4f   : > { %668 = vmatprep.mubr.f32.mxu1 %v1429_v7 }
  0x51   : > { %1241 = vmatmul.mubr.msk.f32.gmra.mrb[32].mxu0 %vm243_vm0, %v207_v45 }
  0x52   : > { %1263 = vmatmul.mubr.msk.f32.gmra.mrb[32].mxu1 %vm243_vm0, %v229_v46  ;;  %542 = vmatprep.mubr.f32.mxu0 %v1429_v7 }
  0x53   : > { %674 = vmatprep.mubr.f32.mxu1 %v1429_v7 }
  0x55   : > { %1242 = vmatmul.mubr.msk.f32.gmra.mrb[34].mxu0 %vm243_vm0, %v208_v47 }
  0x56   : > { %1264 = vmatmul.mubr.msk.f32.gmra.mrb[34].mxu1 %vm243_vm0, %v230_v48  ;;  %548 = vmatprep.mubr.f32.mxu0 %v1429_v7 }
  0x57   : > { %680 = vmatprep.mubr.f32.mxu1 %v1429_v7 }
  0x59   : > { %1243 = vmatmul.mubr.msk.f32.gmra.mrb[36].mxu0 %vm243_vm0, %v209_v49 }
  0x5a   : > { %1265 = vmatmul.mubr.msk.f32.gmra.mrb[36].mxu1 %vm243_vm0, %v231_v50  ;;  %554 = vmatprep.mubr.f32.mxu0 %v1429_v7 }
  0x5b   : > { %686 = vmatprep.mubr.f32.mxu1 %v1429_v7 }
  0x5d   : > { %1244 = vmatmul.mubr.msk.f32.gmra.mrb[38].mxu0 %vm243_vm0, %v210_v51 }
  0x5e   : > { %1266 = vmatmul.mubr.msk.f32.gmra.mrb[38].mxu1 %vm243_vm0, %v232_v52  ;;  %560 = vmatprep.mubr.f32.mxu0 %v1429_v7 }
  0x5f   : > { %692 = vmatprep.mubr.f32.mxu1 %v1429_v7 }
  0x61   : > { %1245 = vmatmul.mubr.msk.f32.gmra.mrb[40].mxu0 %vm243_vm0, %v211_v53 }
  0x62   : > { %1267 = vmatmul.mubr.msk.f32.gmra.mrb[40].mxu1 %vm243_vm0, %v233_v54  ;;  %566 = vmatprep.mubr.f32.mxu0 %v1429_v7 }
  0x63   : > { %698 = vmatprep.mubr.f32.mxu1 %v1429_v7 }
  0x65   : > { %1246 = vmatmul.mubr.msk.f32.gmra.mrb[42].mxu0 %vm243_vm0, %v212_v55 }
  0x66   : > { %1268 = vmatmul.mubr.msk.f32.gmra.mrb[42].mxu1 %vm243_vm0, %v234_v56 }
  0xe4   : > { %v442_v57 = vpop.f32.mrb[0].mxu0 }
  0xe5   : > { %v574_v58 = vpop.f32.mrb[0].mxu1  ;;  %v705_v59 = vmul.f32 %v442_v57, %v442_v57  ;;  %v444_v61 = vpop.f32.mrb[1].mxu0 }
  0xe6   : > { %v727_v60 = vmul.f32 %v574_v58, %v574_v58  ;;  %v576_v62 = vpop.f32.mrb[1].mxu1  ;;  %v749_v63 = vmul.f32 %v444_v61, %v444_v61 }
  0xe7   : > { %v771_v0 = vmul.f32 %v576_v62, %v576_v62 }
  0xe8   : > { %v793_v1 = vadd.f32 %v749_v63, %v705_v59  ;;  %v448_v3 = vpop.f32.mrb[2].mxu0 }
  0xe9   : > { %v815_v2 = vadd.f32 %v771_v0, %v727_v60  ;;  %v580_v4 = vpop.f32.mrb[2].mxu1  ;;  %v706_v5 = vmul.f32 %v448_v3, %v448_v3  ;;  %v450_v7 = vpop.f32.mrb[3].mxu0 }
  0xea   : > { %v728_v6 = vmul.f32 %v580_v4, %v580_v4  ;;  %v582_v8 = vpop.f32.mrb[3].mxu1  ;;  %v750_v11 = vmul.f32 %v450_v7, %v450_v7  ;;  %v916_v13 = vmul.f32 %v793_v1, %v793_v1  ;;  %v972_v37 = vadd.f32 1e-07, %v793_v1 }
  0xeb   : > { %v837_v9 = vsub.f32 %v793_v1, %v815_v2  ;;  %v994_v10 = vadd.f32 1e-07, %v815_v2  ;;  %v772_v12 = vmul.f32 %v582_v8, %v582_v8 }
  0xec   : > { %v454_v14 = vpop.f32.mrb[4].mxu0  ;;  %v794_v16 = vadd.f32 %v750_v11, %v706_v5 }
  0xed   : > { %1315 = vrcp.f32 %v994_v10  ;;  %v586_v15 = vpop.f32.mrb[4].mxu1  ;;  %v816_v17 = vadd.f32 %v772_v12, %v728_v6  ;;  %v707_v18 = vmul.f32 %v454_v14, %v454_v14  ;;  %v456_v20 = vpop.f32.mrb[5].mxu0  ;;  %v860_v27 = vmul.f32 %v837_v9, %v837_v9 }
  0xee   : > { %v729_v19 = vmul.f32 %v586_v15, %v586_v15  ;;  %v588_v21 = vpop.f32.mrb[5].mxu1  ;;  %v751_v22 = vmul.f32 %v456_v20, %v456_v20  ;;  %v917_v24 = vmul.f32 %v794_v16, %v794_v16  ;;  %v973_v62 = vadd.f32 1e-07, %v794_v16 }
  0xef   : > { %v773_v23 = vmul.f32 %v588_v21, %v588_v21  ;;  %v838_v25 = vsub.f32 %v794_v16, %v816_v17  ;;  %v995_v26 = vadd.f32 1e-07, %v816_v17 }
  0xf0   : > { %v795_v28 = vadd.f32 %v751_v22, %v707_v18  ;;  %v460_v30 = vpop.f32.mrb[6].mxu0  ;;  %v938_v32 = vadd.f32 %v917_v24, %v916_v13 }
  0xf1   : > { %v817_v29 = vadd.f32 %v773_v23, %v729_v19  ;;  %v592_v31 = vpop.f32.mrb[6].mxu1  ;;  %v861_v33 = vmul.f32 %v838_v25, %v838_v25  ;;  %1317 = vrcp.f32 %v995_v26  ;;  %v708_v34 = vmul.f32 %v460_v30, %v460_v30  ;;  %v462_v35 = vpop.f32.mrb[7].mxu0 }
  0xf2   : > { %v594_v36 = vpop.f32.mrb[7].mxu1  ;;  %v918_v38 = vmul.f32 %v795_v28, %v795_v28  ;;  %v730_v42 = vmul.f32 %v592_v31, %v592_v31  ;;  %v752_v43 = vmul.f32 %v462_v35, %v462_v35  ;;  %v974_v9 = vadd.f32 1e-07, %v795_v28 }
  0xf3   : > { %v839_v39 = vsub.f32 %v795_v28, %v817_v29  ;;  %v996_v40 = vadd.f32 1e-07, %v817_v29  ;;  %v882_v41 = vadd.f32 %v861_v33, %v860_v27  ;;  %v774_v44 = vmul.f32 %v594_v36, %v594_v36 }
  0xf4   : > { %v939_v45 = vadd.f32 %v938_v32, %v918_v38  ;;  %v466_v47 = vpop.f32.mrb[8].mxu0  ;;  %v796_v49 = vadd.f32 %v752_v43, %v708_v34 }
  0xf5   : > { %v862_v46 = vmul.f32 %v839_v39, %v839_v39  ;;  %1319 = vrcp.f32 %v996_v40  ;;  %v598_v48 = vpop.f32.mrb[8].mxu1  ;;  %v818_v50 = vadd.f32 %v774_v44, %v730_v42  ;;  %v709_v51 = vmul.f32 %v466_v47, %v466_v47  ;;  %v468_v53 = vpop.f32.mrb[9].mxu0 }
  0xf6   : > { %v731_v52 = vmul.f32 %v598_v48, %v598_v48  ;;  %v600_v54 = vpop.f32.mrb[9].mxu1  ;;  %v753_v57 = vmul.f32 %v468_v53, %v468_v53  ;;  %v919_v60 = vmul.f32 %v796_v49, %v796_v49  ;;  %v975_v35 = vadd.f32 1e-07, %v796_v49 }
  0xf7   : > { %v1316_v55 = vpop.eup %1315  ;;  %v883_v56 = vadd.f32 %v882_v41, %v862_v46  ;;  %v775_v58 = vmul.f32 %v600_v54, %v600_v54  ;;  %v840_v61 = vsub.f32 %v796_v49, %v818_v50  ;;  %v997_v63 = vadd.f32 1e-07, %v818_v50 }
  0xf8   : > { %v1017_v59 = vmul.f32 %v1316_v55, %v972_v37  ;;  %v797_v0 = vadd.f32 %v753_v57, %v709_v51  ;;  %v472_v2 = vpop.f32.mrb[10].mxu0  ;;  %v940_v4 = vadd.f32 %v939_v45, %v919_v60 }
  0xf9   : > { %v819_v1 = vadd.f32 %v775_v58, %v731_v52  ;;  %v604_v3 = vpop.f32.mrb[10].mxu1  ;;  %v863_v5 = vmul.f32 %v840_v61, %v840_v61  ;;  %v710_v6 = vmul.f32 %v472_v2, %v472_v2  ;;  %v474_v7 = vpop.f32.mrb[11].mxu0 }
  0xfa   : > { %1321 = vlog2.f32 %v1017_v59  ;;  %v606_v8 = vpop.f32.mrb[11].mxu1  ;;  %v920_v10 = vmul.f32 %v797_v0, %v797_v0  ;;  %v732_v15 = vmul.f32 %v604_v3, %v604_v3  ;;  %v754_v16 = vmul.f32 %v474_v7, %v474_v7 }
  0xfb   : > { %1323 = vrcp.f32 %v997_v63  ;;  %v841_v11 = vsub.f32 %v797_v0, %v819_v1  ;;  %v1318_v12 = vpop.eup %1317  ;;  %v884_v13 = vadd.f32 %v883_v56, %v863_v5  ;;  %v998_v14 = vadd.f32 1e-07, %v819_v1 }
  0xfc   : > { %v1019_v17 = vmul.f32 %v1318_v12, %v973_v62  ;;  %v941_v18 = vadd.f32 %v940_v4, %v920_v10  ;;  %v776_v20 = vmul.f32 %v606_v8, %v606_v8  ;;  %v478_v21 = vpop.f32.mrb[12].mxu0  ;;  %v798_v23 = vadd.f32 %v754_v16, %v710_v6 }
  0xfd   : > { %v864_v19 = vmul.f32 %v841_v11, %v841_v11  ;;  %v610_v22 = vpop.f32.mrb[12].mxu1  ;;  %1325 = vrcp.f32 %v998_v14  ;;  %v711_v24 = vmul.f32 %v478_v21, %v478_v21  ;;  %v480_v26 = vpop.f32.mrb[13].mxu0  ;;  %v976_v46 = vadd.f32 1e-07, %v797_v0 }
  0xfe   : > { %v733_v25 = vmul.f32 %v610_v22, %v610_v22  ;;  %v612_v27 = vpop.f32.mrb[13].mxu1  ;;  %1327 = vlog2.f32 %v1019_v17  ;;  %v820_v30 = vadd.f32 %v776_v20, %v732_v15  ;;  %v755_v31 = vmul.f32 %v480_v26, %v480_v26 }
  0xff   : > { %v1320_v28 = vpop.eup %1319  ;;  %v885_v29 = vadd.f32 %v884_v13, %v864_v19  ;;  %v921_v33 = vmul.f32 %v798_v23, %v798_v23  ;;  %v777_v34 = vmul.f32 %v612_v27, %v612_v27  ;;  %v977_v2 = vadd.f32 1e-07, %v798_v23 }
 0x100   : > { %v1021_v32 = vmul.f32 %v1320_v28, %v974_v9  ;;  %v842_v36 = vsub.f32 %v798_v23, %v820_v30  ;;  %v999_v37 = vadd.f32 1e-07, %v820_v30  ;;  %v799_v38 = vadd.f32 %v755_v31, %v711_v24  ;;  %v484_v39 = vpop.f32.mrb[14].mxu0 }
 0x101   : > { %v616_v40 = vpop.f32.mrb[14].mxu1  ;;  %v942_v41 = vadd.f32 %v941_v18, %v921_v33  ;;  %v821_v42 = vadd.f32 %v777_v34, %v733_v25  ;;  %v712_v43 = vmul.f32 %v484_v39, %v484_v39  ;;  %v486_v44 = vpop.f32.mrb[15].mxu0 }
 0x102   : > { %1329 = vlog2.f32 %v1021_v32  ;;  %v618_v45 = vpop.f32.mrb[15].mxu1  ;;  %v865_v47 = vmul.f32 %v842_v36, %v842_v36  ;;  %v922_v48 = vmul.f32 %v799_v38, %v799_v38  ;;  %v734_v53 = vmul.f32 %v616_v40, %v616_v40 }
 0x103   : > { %1331 = vrcp.f32 %v999_v37  ;;  %v843_v51 = vsub.f32 %v799_v38, %v821_v42  ;;  %v1000_v52 = vadd.f32 1e-07, %v821_v42  ;;  %v756_v49 = vmul.f32 %v486_v44, %v486_v44 }
 0x104   : > { %v1322_v50 = vpop.eup %1321  ;;  %v886_v56 = vadd.f32 %v885_v29, %v865_v47  ;;  %v943_v57 = vadd.f32 %v942_v41, %v922_v48  ;;  %v778_v58 = vmul.f32 %v618_v45, %v618_v45  ;;  %v490_v59 = vpop.f32.mrb[16].mxu0  ;;  %v978_v3 = vadd.f32 1e-07, %v799_v38 }
 0x105   : > { %v1324_v54 = vpop.eup %1323  ;;  %v1061_v55 = vmul.f32 0.6931472, %v1322_v50  ;;  %v622_v60 = vpop.f32.mrb[16].mxu1  ;;  %v866_v62 = vmul.f32 %v843_v51, %v843_v51  ;;  %1333 = vrcp.f32 %v1000_v52  ;;  %v800_v63 = vadd.f32 %v756_v49, %v712_v43 }
 0x106   : > { %v1023_v61 = vmul.f32 %v1324_v54, %v975_v35  ;;  %v492_v0 = vpop.f32.mrb[17].mxu0  ;;  %v624_v1 = vpop.f32.mrb[17].mxu1  ;;  %v822_v4 = vadd.f32 %v778_v58, %v734_v53  ;;  %v713_v5 = vmul.f32 %v490_v59, %v490_v59  ;;  %v735_v9 = vmul.f32 %v622_v60, %v622_v60 }
 0x107   : > { %v1326_v6 = vpop.eup %1325  ;;  %v887_v7 = vadd.f32 %v886_v56, %v866_v62  ;;  %v923_v8 = vmul.f32 %v800_v63, %v800_v63  ;;  %v757_v14 = vmul.f32 %v492_v0, %v492_v0  ;;  %v1104_v17 = vand.u32 2147483647, %v1061_v55 }
 0x108   : > { %1335 = vlog2.f32 %v1023_v61  ;;  %v1328_v10 = vpop.eup %1327  ;;  %v1025_v11 = vmul.f32 %v1326_v6, %v976_v46  ;;  %v844_v12 = vsub.f32 %v800_v63, %v822_v4  ;;  %v1001_v13 = vadd.f32 1e-07, %v822_v4  ;;  %v496_v15 = vpop.f32.mrb[18].mxu0 }
 0x109   : > { %v628_v16 = vpop.f32.mrb[18].mxu1  ;;  %v1063_v18 = vmul.f32 0.6931472, %v1328_v10  ;;  %v944_v19 = vadd.f32 %v943_v57, %v923_v8  ;;  %v779_v20 = vmul.f32 %v624_v1, %v624_v1  ;;  %v498_v21 = vpop.f32.mrb[19].mxu0  ;;  %v801_v24 = vadd.f32 %v757_v14, %v713_v5 }
 0x10a   : > { %v630_v22 = vpop.f32.mrb[19].mxu1  ;;  %1337 = vlog2.f32 %v1025_v11  ;;  %v867_v23 = vmul.f32 %v844_v12, %v844_v12  ;;  %v714_v25 = vmul.f32 %v496_v15, %v496_v15  ;;  %v758_v29 = vmul.f32 %v498_v21, %v498_v21 }
 0x10b   : > { %v1105_v27 = vand.u32 2147483647, %v1063_v18  ;;  %1339 = vrcp.f32 %v1001_v13  ;;  %v823_v28 = vadd.f32 %v779_v20, %v735_v9  ;;  %v924_v33 = vmul.f32 %v801_v24, %v801_v24 }
 0x10c   : > { %v1330_v26 = vpop.eup %1329  ;;  %v888_v32 = vadd.f32 %v887_v7, %v867_v23  ;;  %v736_v34 = vmul.f32 %v628_v16, %v628_v16  ;;  %v502_v35 = vpop.f32.mrb[20].mxu0  ;;  %v802_v45 = vadd.f32 %v758_v29, %v714_v25  ;;  %v780_v46 = vmul.f32 %v630_v22, %v630_v22 }
 0x10d   : > { %v1332_v30 = vpop.eup %1331  ;;  %v1065_v31 = vmul.f32 0.6931472, %v1330_v26  ;;  %v634_v36 = vpop.f32.mrb[20].mxu1  ;;  %v1126_v37 = vadd.f32 %v1105_v27, %v1104_v17  ;;  %v845_v39 = vsub.f32 %v801_v24, %v823_v28  ;;  %v1002_v40 = vadd.f32 1e-07, %v823_v28 }
 0x10e   : > { %v1027_v38 = vmul.f32 %v1332_v30, %v977_v2  ;;  %v504_v41 = vpop.f32.mrb[21].mxu0  ;;  %v636_v42 = vpop.f32.mrb[21].mxu1  ;;  %v945_v44 = vadd.f32 %v944_v19, %v924_v33  ;;  %v715_v50 = vmul.f32 %v502_v35, %v502_v35  ;;  %v737_v51 = vmul.f32 %v634_v36, %v634_v36 }
 0x10f   : > { %v1106_v43 = vand.u32 2147483647, %v1065_v31  ;;  %v1334_v47 = vpop.eup %1333  ;;  %v868_v48 = vmul.f32 %v845_v39, %v845_v39  ;;  %v925_v49 = vmul.f32 %v802_v45, %v802_v45  ;;  %v979_v57 = vadd.f32 1e-07, %v800_v63 }
 0x110   : > { %1341 = vlog2.f32 %v1027_v38  ;;  %v1029_v53 = vmul.f32 %v1334_v47, %v978_v3  ;;  %v508_v54 = vpop.f32.mrb[22].mxu0  ;;  %v824_v59 = vadd.f32 %v780_v46, %v736_v34  ;;  %v759_v60 = vmul.f32 %v504_v41, %v504_v41 }
 0x111   : > { %v1127_v52 = vadd.f32 %v1126_v37, %v1106_v43  ;;  %1343 = vrcp.f32 %v1002_v40  ;;  %v640_v55 = vpop.f32.mrb[22].mxu1  ;;  %v889_v58 = vadd.f32 %v888_v32, %v868_v48  ;;  %v510_v61 = vpop.f32.mrb[23].mxu0  ;;  %v946_v1 = vadd.f32 %v945_v44, %v925_v49 }
 0x112   : > { %v1336_v56 = vpop.eup %1335  ;;  %v642_v62 = vpop.f32.mrb[23].mxu1  ;;  %1345 = vlog2.f32 %v1029_v53  ;;  %v781_v2 = vmul.f32 %v636_v42, %v636_v42  ;;  %v980_v4 = vadd.f32 1e-07, %v801_v24  ;;  %v846_v5 = vsub.f32 %v802_v45, %v824_v59 }
 0x113   : > { %v1067_v0 = vmul.f32 0.6931472, %v1336_v56  ;;  %v1003_v6 = vadd.f32 1e-07, %v824_v59  ;;  %v1629_v7 = vadd.f32 %v759_v60, %v715_v50  ;;  %v716_v10 = vmul.f32 %v508_v54, %v508_v54 }
 0x114   : > { %v1338_v3 = vpop.eup %1337  ;;  %v825_v9 = vadd.f32 %v781_v2, %v737_v51  ;;  %v760_v11 = vmul.f32 %v510_v61, %v510_v61  ;;  %v514_v63 = vpop.f32.mrb[24].mxu0  ;;  %v869_v15 = vmul.f32 %v846_v5, %v846_v5  ;;  %v738_v22 = vmul.f32 %v640_v55, %v640_v55 }
 0x115   : > { %v1107_v8 = vand.u32 2147483647, %v1067_v0  ;;  %v646_v12 = vpop.f32.mrb[24].mxu1  ;;  %v1340_v13 = vpop.eup %1339  ;;  %v1069_v14 = vmul.f32 0.6931472, %v1338_v3  ;;  %1347 = vrcp.f32 %v1003_v6  ;;  %v926_v16 = vmul.f32 %v1629_v7, %v1629_v7 }
 0x116   : > { %v516_v17 = vpop.f32.mrb[25].mxu0  ;;  %v648_v18 = vpop.f32.mrb[25].mxu1  ;;  %v1031_v20 = vmul.f32 %v1340_v13, %v979_v57  ;;  %v847_v21 = vsub.f32 %v1629_v7, %v825_v9  ;;  %v890_v24 = vadd.f32 %v889_v58, %v869_v15  ;;  %v1004_v26 = vadd.f32 1e-07, %v825_v9 }
 0x117   : > { %v1128_v19 = vadd.f32 %v1127_v52, %v1107_v8  ;;  %v1108_v23 = vand.u32 2147483647, %v1069_v14  ;;  %v947_v25 = vadd.f32 %v946_v1, %v926_v16  ;;  %v804_v28 = vadd.f32 %v760_v11, %v716_v10 }
 0x118   : > { %1349 = vlog2.f32 %v1031_v20  ;;  %v870_v27 = vmul.f32 %v847_v21, %v847_v21  ;;  %v782_v29 = vmul.f32 %v642_v62, %v642_v62  ;;  %v520_v30 = vpop.f32.mrb[26].mxu0  ;;  %v981_v34 = vadd.f32 1e-07, %v802_v45 }
 0x119   : > { %v652_v31 = vpop.f32.mrb[26].mxu1  ;;  %v1129_v33 = vadd.f32 %v1128_v19, %v1108_v23  ;;  %1351 = vrcp.f32 %v1004_v26  ;;  %v717_v35 = vmul.f32 %v514_v63, %v514_v63  ;;  %v522_v36 = vpop.f32.mrb[27].mxu0  ;;  %v927_v41 = vmul.f32 %v804_v28, %v804_v28 }
 0x11a   : > { %v1342_v32 = vpop.eup %1341  ;;  %v654_v37 = vpop.f32.mrb[27].mxu1  ;;  %v891_v40 = vadd.f32 %v890_v24, %v870_v27  ;;  %v739_v42 = vmul.f32 %v646_v12, %v646_v12  ;;  %v826_v44 = vadd.f32 %v782_v29, %v738_v22  ;;  %v761_v46 = vmul.f32 %v516_v17, %v516_v17 }
 0x11b   : > { %v1344_v38 = vpop.eup %1343  ;;  %v1071_v39 = vmul.f32 0.6931472, %v1342_v32  ;;  %v783_v47 = vmul.f32 %v648_v18, %v648_v18  ;;  %v948_v51 = vadd.f32 %v947_v25, %v927_v41  ;;  %v718_v52 = vmul.f32 %v520_v30, %v520_v30 }
 0x11c   : > { %v1033_v43 = vmul.f32 %v1344_v38, %v980_v4  ;;  %v1346_v48 = vpop.eup %1345  ;;  %v740_v53 = vmul.f32 %v652_v31, %v652_v31  ;;  %v526_v49 = vpop.f32.mrb[28].mxu0  ;;  %v848_v55 = vsub.f32 %v804_v28, %v826_v44  ;;  %v1005_v56 = vadd.f32 1e-07, %v826_v44 }
 0x11d   : > { %v1109_v50 = vand.u32 2147483647, %v1071_v39  ;;  %v658_v45 = vpop.f32.mrb[28].mxu1  ;;  %v1073_v54 = vmul.f32 0.6931472, %v1346_v48  ;;  %v528_v57 = vpop.f32.mrb[29].mxu0  ;;  %v805_v60 = vadd.f32 %v761_v46, %v717_v35  ;;  %v827_v61 = vadd.f32 %v783_v47, %v739_v42 }
 0x11e   : > { %1353 = vlog2.f32 %v1033_v43  ;;  %v660_v58 = vpop.f32.mrb[29].mxu1  ;;  %v762_v62 = vmul.f32 %v522_v36, %v522_v36  ;;  %v871_v2 = vmul.f32 %v848_v55, %v848_v55  ;;  %v784_v4 = vmul.f32 %v654_v37, %v654_v37 }
 0x11f   : > { %v1130_v59 = vadd.f32 %v1129_v33, %v1109_v50  ;;  %v1348_v0 = vpop.eup %1347  ;;  %v1110_v1 = vand.u32 2147483647, %v1073_v54  ;;  %1355 = vrcp.f32 %v1005_v56  ;;  %v982_v6 = vadd.f32 1e-07, %v1629_v7 }
 0x120   : > { %v1035_v5 = vmul.f32 %v1348_v0, %v981_v34  ;;  %v928_v3 = vmul.f32 %v805_v60, %v805_v60  ;;  %v849_v8 = vsub.f32 %v805_v60, %v827_v61  ;;  %v532_v9 = vpop.f32.mrb[30].mxu0  ;;  %v892_v63 = vadd.f32 %v891_v40, %v871_v2 }
 0x121   : > { %v664_v10 = vpop.f32.mrb[30].mxu1  ;;  %v1131_v11 = vadd.f32 %v1130_v59, %v1110_v1  ;;  %v1006_v12 = vadd.f32 1e-07, %v827_v61  ;;  %v806_v13 = vadd.f32 %v762_v62, %v718_v52  ;;  %v534_v14 = vpop.f32.mrb[31].mxu0  ;;  %v828_v19 = vadd.f32 %v784_v4, %v740_v53 }
 0x122   : > { %v666_v15 = vpop.f32.mrb[31].mxu1  ;;  %v1350_v16 = vpop.eup %1349  ;;  %1357 = vlog2.f32 %v1035_v5  ;;  %v949_v17 = vadd.f32 %v948_v51, %v928_v3  ;;  %v872_v18 = vmul.f32 %v849_v8, %v849_v8  ;;  %v983_v22 = vadd.f32 1e-07, %v804_v28 }
 0x123   : > { %v1352_v20 = vpop.eup %1351  ;;  %v1075_v21 = vmul.f32 0.6931472, %v1350_v16  ;;  %1359 = vrcp.f32 %v1006_v12  ;;  %v929_v7 = vmul.f32 %v806_v13, %v806_v13  ;;  %v850_v25 = vsub.f32 %v806_v13, %v828_v19 }
 0x124   : > { %v1037_v23 = vmul.f32 %v1352_v20, %v982_v6  ;;  %v893_v24 = vadd.f32 %v892_v63, %v872_v18  ;;  %v1007_v26 = vadd.f32 1e-07, %v828_v19  ;;  %v538_v27 = vpop.f32.mrb[32].mxu0  ;;  %v719_v32 = vmul.f32 %v526_v49, %v526_v49 }
 0x125   : > { %v670_v29 = vpop.f32.mrb[32].mxu1  ;;  %v1111_v30 = vand.u32 2147483647, %v1075_v21  ;;  %v950_v31 = vadd.f32 %v949_v17, %v929_v7  ;;  %v741_v33 = vmul.f32 %v658_v45, %v658_v45  ;;  %v540_v34 = vpop.f32.mrb[33].mxu0  ;;  %v873_v36 = vmul.f32 %v850_v25, %v850_v25 }
 0x126   : > { %v672_v35 = vpop.f32.mrb[33].mxu1  ;;  %1361 = vlog2.f32 %v1037_v23  ;;  %v763_v37 = vmul.f32 %v528_v57, %v528_v57  ;;  %v785_v38 = vmul.f32 %v660_v58, %v660_v58  ;;  %v720_v40 = vmul.f32 %v532_v9, %v532_v9 }
 0x127   : > { %v1132_v28 = vadd.f32 %v1131_v11, %v1111_v30  ;;  %1363 = vrcp.f32 %v1007_v26  ;;  %v742_v41 = vmul.f32 %v664_v10, %v664_v10  ;;  %v894_v43 = vadd.f32 %v893_v24, %v873_v36 }
 0x128   : > { %v1354_v39 = vpop.eup %1353  ;;  %v807_v44 = vadd.f32 %v763_v37, %v719_v32  ;;  %v829_v46 = vadd.f32 %v785_v38, %v741_v33  ;;  %v544_v47 = vpop.f32.mrb[34].mxu0  ;;  %v984_v51 = vadd.f32 1e-07, %v805_v60  ;;  %v985_v52 = vadd.f32 1e-07, %v806_v13 }
 0x129   : > { %v1077_v42 = vmul.f32 0.6931472, %v1354_v39  ;;  %v676_v48 = vpop.f32.mrb[34].mxu1  ;;  %v1356_v50 = vpop.eup %1355  ;;  %v764_v53 = vmul.f32 %v534_v14, %v534_v14  ;;  %v786_v49 = vmul.f32 %v666_v15, %v666_v15  ;;  %v721_v58 = vmul.f32 %v538_v27, %v538_v27 }
 0x12a   : > { %v546_v45 = vpop.f32.mrb[35].mxu0  ;;  %v678_v54 = vpop.f32.mrb[35].mxu1  ;;  %v1039_v56 = vmul.f32 %v1356_v50, %v983_v22  ;;  %v930_v57 = vmul.f32 %v807_v44, %v807_v44  ;;  %v851_v59 = vsub.f32 %v807_v44, %v829_v46  ;;  %v1008_v61 = vadd.f32 1e-07, %v829_v46 }
 0x12b   : > { %v1112_v55 = vand.u32 2147483647, %v1077_v42  ;;  %v808_v62 = vadd.f32 %v764_v53, %v720_v40  ;;  %v830_v0 = vadd.f32 %v786_v49, %v742_v41  ;;  %v765_v5 = vmul.f32 %v540_v34, %v540_v34 }
 0x12c   : > { %v1358_v1 = vpop.eup %1357  ;;  %1365 = vlog2.f32 %v1039_v56  ;;  %v951_v4 = vadd.f32 %v950_v31, %v930_v57  ;;  %v550_v6 = vpop.f32.mrb[36].mxu0  ;;  %v874_v9 = vmul.f32 %v851_v59, %v851_v59  ;;  %v743_v15 = vmul.f32 %v670_v29, %v670_v29 }
 0x12d   : > { %v1133_v2 = vadd.f32 %v1132_v28, %v1112_v55  ;;  %v682_v60 = vpop.f32.mrb[36].mxu1  ;;  %v1360_v3 = vpop.eup %1359  ;;  %v1079_v8 = vmul.f32 0.6931472, %v1358_v1  ;;  %1367 = vrcp.f32 %v1008_v61  ;;  %v931_v10 = vmul.f32 %v808_v62, %v808_v62 }
 0x12e   : > { %v552_v11 = vpop.f32.mrb[37].mxu0  ;;  %v684_v63 = vpop.f32.mrb[37].mxu1  ;;  %v1041_v12 = vmul.f32 %v1360_v3, %v984_v51  ;;  %v852_v13 = vsub.f32 %v808_v62, %v830_v0  ;;  %v1009_v14 = vadd.f32 1e-07, %v830_v0  ;;  %v895_v17 = vadd.f32 %v894_v43, %v874_v9 }
 0x12f   : > { %v1113_v16 = vand.u32 2147483647, %v1079_v8  ;;  %v952_v18 = vadd.f32 %v951_v4, %v931_v10  ;;  %v809_v19 = vadd.f32 %v765_v5, %v721_v58  ;;  %v787_v22 = vmul.f32 %v672_v35, %v672_v35 }
 0x130   : > { %v1362_v20 = vpop.eup %1361  ;;  %1369 = vlog2.f32 %v1041_v12  ;;  %v875_v21 = vmul.f32 %v852_v13, %v852_v13  ;;  %v722_v7 = vmul.f32 %v544_v47, %v544_v47  ;;  %v556_v23 = vpop.f32.mrb[38].mxu0  ;;  %v744_v38 = vmul.f32 %v676_v48, %v676_v48 }
 0x131   : > { %v688_v24 = vpop.f32.mrb[38].mxu1  ;;  %v1364_v25 = vpop.eup %1363  ;;  %v1134_v26 = vadd.f32 %v1133_v2, %v1113_v16  ;;  %v1081_v27 = vmul.f32 0.6931472, %v1362_v20  ;;  %1371 = vrcp.f32 %v1009_v14  ;;  %v932_v30 = vmul.f32 %v809_v19, %v809_v19 }
 0x132   : > { %v558_v31 = vpop.f32.mrb[39].mxu0  ;;  %v690_v32 = vpop.f32.mrb[39].mxu1  ;;  %v1043_v33 = vmul.f32 %v1364_v25, %v985_v52  ;;  %v896_v29 = vadd.f32 %v895_v17, %v875_v21  ;;  %v831_v34 = vadd.f32 %v787_v22, %v743_v15  ;;  %v766_v39 = vmul.f32 %v546_v45, %v546_v45 }
 0x133   : > { %v1114_v36 = vand.u32 2147483647, %v1081_v27  ;;  %v953_v37 = vadd.f32 %v952_v18, %v932_v30  ;;  %v986_v28 = vadd.f32 1e-07, %v807_v44  ;;  %v788_v41 = vmul.f32 %v678_v54, %v678_v54 }
 0x134   : > { %v853_v40 = vsub.f32 %v809_v19, %v831_v34  ;;  %v1010_v35 = vadd.f32 1e-07, %v831_v34  ;;  %v562_v42 = vpop.f32.mrb[40].mxu0  ;;  %v810_v47 = vadd.f32 %v766_v39, %v722_v7  ;;  %v723_v50 = vmul.f32 %v550_v6, %v550_v6 }
 0x135   : > { %v694_v43 = vpop.f32.mrb[40].mxu1  ;;  %v1635_v46 = vadd.f32 %v1134_v26, %v1114_v36  ;;  %v745_v51 = vmul.f32 %v682_v60, %v682_v60  ;;  %v564_v53 = vpop.f32.mrb[41].mxu0  ;;  %v987_v55 = vadd.f32 1e-07, %v808_v62  ;;  %v832_v57 = vadd.f32 %v788_v41, %v744_v38 }
 0x136   : > { %v696_v49 = vpop.f32.mrb[41].mxu1  ;;  %v1366_v52 = vpop.eup %1365  ;;  %v876_v56 = vmul.f32 %v853_v40, %v853_v40  ;;  %v767_v58 = vmul.f32 %v552_v11, %v552_v11  ;;  %1373 = vrcp.f32 %v1010_v35  ;;  %v933_v44 = vmul.f32 %v810_v47, %v810_v47 }
 0x137   : > { %v1368_v48 = vpop.eup %1367  ;;  %v1637_v45 = vmul.f32 0.6931472, %v1366_v52  ;;  %v789_v54 = vmul.f32 %v684_v63, %v684_v63  ;;  %v854_v0 = vsub.f32 %v810_v47, %v832_v57  ;;  %v1011_v1 = vadd.f32 1e-07, %v832_v57 }
 0x138   : > { %v1045_v59 = vmul.f32 %v1368_v48, %v986_v28  ;;  %v897_v61 = vadd.f32 %v896_v29, %v876_v56  ;;  %v568_v2 = vpop.f32.mrb[42].mxu0  ;;  %1375 = vlog2.f32 %v1043_v33  ;;  %v954_v5 = vadd.f32 %v953_v37, %v933_v44 }
 0x139   : > { %v700_v4 = vpop.f32.mrb[42].mxu1  ;;  %v811_v6 = vadd.f32 %v767_v58, %v723_v50  ;;  %v833_v60 = vadd.f32 %v789_v54, %v745_v51  ;;  %v570_v62 = vpop.f32.mrb[43].mxu0  ;;  %v988_v9 = vadd.f32 1e-07, %v809_v19  ;;  %v989_v10 = vadd.f32 1e-07, %v810_v47 }
 0x13a   : > { %v702_v3 = vpop.f32.mrb[43].mxu1  ;;  %v1370_v8 = vpop.eup %1369  ;;  %1377 = vlog2.f32 %v1045_v59  ;;  %v877_v11 = vmul.f32 %v854_v0, %v854_v0  ;;  %v1115_v63 = vand.u32 2147483647, %v1637_v45  ;;  %v724_v13 = vmul.f32 %v556_v23, %v556_v23 }
 0x13b   : > { %v1372_v12 = vpop.eup %1371  ;;  %1379 = vrcp.f32 %v1011_v1  ;;  %v746_v14 = vmul.f32 %v688_v24, %v688_v24  ;;  %v855_v17 = vsub.f32 %v811_v6, %v833_v60  ;;  %v1012_v18 = vadd.f32 1e-07, %v833_v60 }
 0x13c   : > { %v1047_v15 = vmul.f32 %v1372_v12, %v987_v55  ;;  %v898_v16 = vadd.f32 %v897_v61, %v877_v11  ;;  %v1640_v20 = vmul.f32 0.6931472, %v1370_v8  ;;  %v768_v21 = vmul.f32 %v558_v31, %v558_v31 }
 0x13d   : > { %v790_v22 = vmul.f32 %v690_v32, %v690_v32  ;;  %v725_v7 = vmul.f32 %v562_v42, %v562_v42  ;;  %v878_v25 = vmul.f32 %v855_v17, %v855_v17  ;;  %v747_v19 = vmul.f32 %v694_v43, %v694_v43 }
 0x13e   : > { %1381 = vlog2.f32 %v1047_v15  ;;  %v769_v26 = vmul.f32 %v564_v53, %v564_v53  ;;  %v812_v27 = vadd.f32 %v768_v21, %v724_v13  ;;  %v791_v33 = vmul.f32 %v696_v49, %v696_v49 }
 0x13f   : > { %1383 = vrcp.f32 %v1012_v18  ;;  %v834_v30 = vadd.f32 %v790_v22, %v746_v14  ;;  %v726_v23 = vmul.f32 %v568_v2, %v568_v2  ;;  %v748_v24 = vmul.f32 %v700_v4, %v700_v4 }
 0x140   : > { %v813_v29 = vadd.f32 %v769_v26, %v725_v7  ;;  %v770_v34 = vmul.f32 %v570_v62, %v570_v62  ;;  %v1374_v36 = vpop.eup %1373  ;;  %v934_v37 = vmul.f32 %v811_v6, %v811_v6  ;;  %v990_v38 = vadd.f32 1e-07, %v811_v6 }
 0x141   : > { %v856_v39 = vsub.f32 %v812_v27, %v834_v30  ;;  %v1013_v28 = vadd.f32 1e-07, %v834_v30  ;;  %v1116_v31 = vand.u32 2147483647, %v1640_v20  ;;  %v835_v32 = vadd.f32 %v791_v33, %v747_v19 }
 0x142   : > { %v814_v40 = vadd.f32 %v770_v34, %v726_v23  ;;  %v792_v35 = vmul.f32 %v702_v3, %v702_v3  ;;  %v1376_v41 = vpop.eup %1375  ;;  %v935_v42 = vmul.f32 %v812_v27, %v812_v27  ;;  %v899_v47 = vadd.f32 %v898_v16, %v878_v25 }
 0x143   : > { %v879_v43 = vmul.f32 %v856_v39, %v856_v39  ;;  %1385 = vrcp.f32 %v1013_v28  ;;  %v1014_v51 = vadd.f32 1e-07, %v835_v32  ;;  %v857_v49 = vsub.f32 %v813_v29, %v835_v32 }
 0x144   : > { %v1378_v50 = vpop.eup %1377  ;;  %v836_v53 = vadd.f32 %v792_v35, %v748_v24  ;;  %v936_v52 = vmul.f32 %v813_v29, %v813_v29  ;;  %v937_v57 = vmul.f32 %v814_v40, %v814_v40  ;;  %v955_v58 = vadd.f32 %v954_v5, %v934_v37 }
 0x145   : > { %v1380_v55 = vpop.eup %1379  ;;  %v900_v56 = vadd.f32 %v899_v47, %v879_v43  ;;  %v1049_v48 = vmul.f32 %v1374_v36, %v988_v9  ;;  %1387 = vrcp.f32 %v1014_v51  ;;  %v880_v54 = vmul.f32 %v857_v49, %v857_v49 }
 0x146   : > { %v1015_v45 = vadd.f32 1e-07, %v836_v53  ;;  %v858_v44 = vsub.f32 %v814_v40, %v836_v53  ;;  %v956_v59 = vadd.f32 %v955_v58, %v935_v42  ;;  %v1051_v61 = vmul.f32 %v1380_v55, %v989_v10 }
 0x147   : > { %v1087_v0 = vmul.f32 0.6931472, %v1376_v41  ;;  %v1089_v1 = vmul.f32 0.6931472, %v1378_v50  ;;  %v901_v6 = vadd.f32 %v900_v56, %v880_v54  ;;  %v1136_v60 = vadd.f32 %v1635_v46, %v1115_v63 }
 0x148   : > { %v1382_v2 = vpop.eup %1381  ;;  %1389 = vrcp.f32 %v1015_v45  ;;  %v881_v4 = vmul.f32 %v858_v44, %v858_v44  ;;  %v957_v3 = vadd.f32 %v956_v59, %v936_v52  ;;  %v991_v9 = vadd.f32 1e-07, %v812_v27 }
 0x149   : > { %v1384_v62 = vpop.eup %1383  ;;  %v1091_v8 = vmul.f32 0.6931472, %v1382_v2  ;;  %1391 = vlog2.f32 %v1049_v48  ;;  %v1117_v5 = vand.u32 2147483647, %v1087_v0  ;;  %v1118_v14 = vand.u32 2147483647, %v1089_v1 }
 0x14a   : > { %v902_v11 = vadd.f32 %v901_v6, %v881_v4  ;;  %v1053_v12 = vmul.f32 %v1384_v62, %v990_v38  ;;  %1393 = vlog2.f32 %v1051_v61  ;;  %v958_v13 = vadd.f32 %v957_v3, %v937_v57 }
 0x14b   : > { %v1137_v10 = vadd.f32 %v1136_v60, %v1116_v31  ;;  %v992_v16 = vadd.f32 1e-07, %v813_v29  ;;  %v1119_v17 = vand.u32 2147483647, %v1091_v8  ;;  %v993_v46 = vadd.f32 1e-07, %v814_v40 }
 0x14c   : > { %903 = vadd.xlane.f32.xlu0 %v902_v11  ;;  %1395 = vlog2.f32 %v1053_v12 }
 0x14d   : > { %v1386_v15 = vpop.eup %1385  ;;  %v1138_v18 = vadd.f32 %v1137_v10, %v1117_v5 }
 0x14e   : > { %v1055_v20 = vmul.f32 %v1386_v15, %v991_v9 }
 0x14f   : > { %v1139_v63 = vadd.f32 %v1138_v18, %v1118_v14  ;;  %v1388_v21 = vpop.eup %1387 }
 0x150   : > { %959 = vadd.xlane.f32.xlu0 %v958_v13  ;;  %1397 = vlog2.f32 %v1055_v20  ;;  %v1057_v22 = vmul.f32 %v1388_v21, %v992_v16 }
 0x151   : > { %v1140_v7 = vadd.f32 %v1139_v63, %v1119_v17 }
 0x152   : > { %v1390_v25 = vpop.eup %1389  ;;  %1399 = vlog2.f32 %v1057_v22 }
 0x153   : > { %v1392_v19 = vpop.eup %1391  ;;  %v1059_v26 = vmul.f32 %v1390_v25, %v993_v46 }
 0x154   : > { %v1394_v27 = vpop.eup %1393  ;;  %v1093_v30 = vmul.f32 0.6931472, %v1392_v19 }
 0x155   : > { %v1095_v33 = vmul.f32 0.6931472, %v1394_v27  ;;  %1401 = vlog2.f32 %v1059_v26 }
 0x156   : > { %v1396_v23 = vpop.eup %1395  ;;  %v1120_v29 = vand.u32 2147483647, %v1093_v30 }
 0x157   : > { %v1097_v24 = vmul.f32 0.6931472, %v1396_v23  ;;  %v1121_v34 = vand.u32 2147483647, %v1095_v33 }
 0x158   : > { %v1141_v36 = vadd.f32 %v1140_v7, %v1120_v29 }
 0x159   : > { %v1122_v37 = vand.u32 2147483647, %v1097_v24 }
 0x15a   : > { %v1398_v38 = vpop.eup %1397  ;;  %v1142_v39 = vadd.f32 %v1141_v36, %v1121_v34 }
 0x15b   : > { %v1099_v28 = vmul.f32 0.6931472, %v1398_v38 }
 0x15c   : > { %v1143_v31 = vadd.f32 %v1142_v39, %v1122_v37  ;;  %v1400_v32 = vpop.eup %1399 }
 0x15d   : > { %v1123_v40 = vand.u32 2147483647, %v1099_v28  ;;  %v1101_v35 = vmul.f32 0.6931472, %v1400_v32 }
 0x15f   : > { %v1402_v41 = vpop.eup %1401  ;;  %v1144_v42 = vadd.f32 %v1143_v31, %v1123_v40  ;;  %v1124_v47 = vand.u32 2147483647, %v1101_v35 }
 0x160   : > { %v1103_v43 = vmul.f32 0.6931472, %v1402_v41 }
 0x161   : > { %v1145_v51 = vadd.f32 %v1144_v42, %v1124_v47 }
 0x162   : > { %v1125_v50 = vand.u32 2147483647, %v1103_v43 }
 0x164   : > { %v1146_v53 = vadd.f32 %v1145_v51, %v1125_v50 }
 0x166   : > { %1147 = vadd.xlane.f32.xlu1 %v1146_v53 }
 0x1d9   : > { %v904_v49 = vpop.xlane.xlu0 %903 }
 0x1da   : > { %v905_v52 = vrot.slane %v904_v49, 4 }
 0x1dc   : > { %v906_v55 = vadd.f32 %v905_v52, %v904_v49 }
 0x1dd   : > { %v960_v56 = vpop.xlane.xlu0 %959 }
 0x1de   : > { %v907_v57 = vrot.slane %v906_v55, 2  ;;  %v961_v58 = vrot.slane %v960_v56, 4 }
 0x1e0   : > { %v962_v48 = vadd.f32 %v961_v58, %v960_v56  ;;  %v908_v45 = vadd.f32 %v907_v57, %v906_v55 }
 0x1e2   : > { %v963_v44 = vrot.slane %v962_v48, 2  ;;  %v909_v54 = vrot.slane %v908_v45, 1 }
 0x1e4   : > { %v964_v59 = vadd.f32 %v963_v44, %v962_v48  ;;  %v910_v61 = vadd.f32 %v909_v54, %v908_v45 }
 0x1e6   : > { %1287 = vpush %v910_v61  ;;  %v965_v0 = vrot.slane %v964_v59, 1 }
 0x1e8   : > { %v966_v1 = vadd.f32 %v965_v0, %v964_v59 }
 0x1ea   : > { %1289 = vpush %v966_v1 }
 0x1f3   : > { %v1148_v2 = vpop.xlane.xlu1 %1147 }
 0x1f4   : > { %v1149_v4 = vrot.slane %v1148_v2, 4 }
 0x1f6   : > { %v1150_v6 = vadd.f32 %v1149_v4, %v1148_v2 }
 0x1f8   : > { %v1151_v60 = vrot.slane %v1150_v6, 2 }
 0x1fa   : > { %v1152_v62 = vadd.f32 %v1151_v60, %v1150_v6 }
 0x1fc   : > { %v1153_v3 = vrot.slane %v1152_v62, 1 }
 0x1fe   : > { %v1154_v8 = vadd.f32 %v1153_v3, %v1152_v62 }
 0x200   : > { %1291 = vpush %v1154_v8 }
 0x217   : > { %s1288_s16 = spop %1287 }
 0x218   : > { %s912_s17 = sadd.f32 %s1288_s16, %s859_s14 }
 0x21a   : > { %914 = sst [smem:[#allocation2]] %s912_s17 }
 0x21b   : > { %s1290_s18 = spop %1289 }
 0x21c   : > { %s968_s19 = sadd.f32 %s1290_s18, %s1269_s15 }
 0x21e   : > { %970 = sst [smem:[#allocation2 + $0x1]] %s968_s19 }
 0x231   : > { %s1292_s24 = spop %1291 }
 0x232   : > { %s1156_s25 = sadd.f32 %s1292_s24, %s1270_s20 }
 0x234   : > { %1158 = sst [smem:[#allocation2 + $0x2]] %s1156_s25 }
 0x235   : > { %1416 = shalt.err (!%p1413_p12)
}
 0x236   : > { %s1431_s27 = smov [#allocation2]  }
 0x237   : > { %1298 = dma.smem_to_vmem (%p1302_p5), %s1431_s27, 16, %s1167_s23, [#allocation3]  }
 0x238   : > { %1422 = dma.done.wait (%p1302_p5), [#allocation3], 16  }
 0x239   : > { %1424 = vsyncadd (%p1302_p5), [#allocation3], 4294967280 }
 0x23a   : > { %1174 = sfence }
 0x23b PF: > { %s14_s12 = sadd.s32 1, %s1427_s12  }
 0x23c   : > { %p11_p13 = scmp.ge.s32.totalorder %s14_s12, 5  }
 0x23e   :  { %13 = sbr.rel (!%p11_p13) target bundleno = 1 (0x1), region = 72 }
 0x245   :  { %1180 = vsyncpa [#allocation3], 1 }
 0x246   :  { %1182 = vsyncpa [#allocation3 + $0x1], 1 }

</bundles_post_ra>
